<compile_context>
chip_gen: v7x
topology: tpu7x:2x2x1
jax: 0.10.0
libtpu: 0.0.40
codegen_flags: <defaults>
</compile_context>

<pallas_src>
import functools
import math

import jax
import jax.numpy as jnp
from jax.experimental import pallas as pl
from jax.experimental.pallas import tpu as pltpu

EPS = 1e-5
INV_SQRT2 = 1.0 / math.sqrt(2.0)
LANE = 128          # pad every feature dim to a lane multiple -> lane-dense, unmasked stores
TOK_GRAN = 16       # token-tile granularity (safe for bf16 sublane packing)


def _round_up(n, m):
    return (n + m - 1) // m * m


def _pad2d(a, rows, cols):
    r, c = a.shape
    return jnp.pad(a, ((0, rows - r), (0, cols - c)))


def _vmem_cap_bytes():
    """Physical per-core VMEM (v5e/v6e: 128 MiB, v7x: 64 MiB). Conservative fallback."""
    try:
        cap = int(pltpu.get_tpu_info().vmem_capacity_bytes)
        if cap > 0:
            return cap
    except Exception:
        pass
    return 64 << 20  # assume the smallest (v7x per-TC) if the query is unavailable


def _vmem_estimate(block_tokens, in_p, hid_p, out_p, x_bytes, single_buffer):
    iv = 1 if single_buffer else 2                               # grid-invariant blocks
    weights = (in_p * hid_p + hid_p * out_p) * 2 * iv            # bf16 weights
    vecs = (3 * in_p + 4 * hid_p + out_p) * 4 * iv               # masks/gamma/beta/bias (f32)
    acts = block_tokens * (in_p * x_bytes + out_p * 4) * 2       # x / out, double-buffered
    interm = block_tokens * (2 * in_p + 3 * hid_p) * 4           # f32 temporaries
    return int((weights + vecs + acts + interm) * 1.25) + (2 << 20)


def mlp_kernel(x_ref,
               m1_ref, g1_ref, b1_ref,       # LN1 lane-mask / gamma / beta   (1, in_p)  f32
               w1_ref, bb1_ref,              # dense1 W (in_p,hid_p) bf16, bias (1,hid_p) f32
               m2_ref, g2_ref, b2_ref,       # LN2 lane-mask / gamma / beta   (1, hid_p) f32
               w2_ref, bb2_ref,              # dense2 W (hid_p,out_p) bf16, bias (1,out_p) f32
               o_ref, *, inv_n_in, inv_n_hid):
    x = x_ref[...].astype(jnp.float32)

    # ---- LayerNorm 1: two-pass stats; padded lanes zeroed via mask ----------
    mu1 = jnp.sum(x, axis=-1, keepdims=True) * inv_n_in
    d1 = (x - mu1) * m1_ref[...]
    var1 = jnp.sum(d1 * d1, axis=-1, keepdims=True) * inv_n_in
    # gamma/beta padded with zeros -> padded lanes stay exactly 0.
    xn = (d1 * jax.lax.rsqrt(var1 + EPS) * g1_ref[...] + b1_ref[...]).astype(jnp.bfloat16)

    # ---- Dense 1 on the MXU: bf16 operands, f32 accumulation ----------------
    h = jnp.dot(xn, w1_ref[...], preferred_element_type=jnp.float32) + bb1_ref[...]

    # ---- LayerNorm 2 ---------------------------------------------------------
    mu2 = jnp.sum(h, axis=-1, keepdims=True) * inv_n_hid
    d2 = (h - mu2) * m2_ref[...]
    var2 = jnp.sum(d2 * d2, axis=-1, keepdims=True) * inv_n_hid
    hn = d2 * jax.lax.rsqrt(var2 + EPS) * g2_ref[...] + b2_ref[...]

    # ---- exact erf-GELU (matches nn.GELU() default numerics) ----------------
    a = (0.5 * hn * (1.0 + jax.lax.erf(hn * INV_SQRT2))).astype(jnp.bfloat16)

    # ---- Dense 2 on the MXU --------------------------------------------------
    out = jnp.dot(a, w2_ref[...], preferred_element_type=jnp.float32) + bb2_ref[...]
    o_ref[...] = out.astype(o_ref.dtype)


def prepare_params(params, weight_dtype=jnp.bfloat16):
    """Pad feature dims to lane multiples and cast weights to bf16 ONCE (hoisted out of the
    per-call path). gamma/beta/bias/masks padded with zeros so padded lanes stay inert."""
    in_f, hid_f = params["w1"].shape
    out_f = params["w2"].shape[1]
    in_p, hid_p, out_p = (_round_up(n, LANE) for n in (in_f, hid_f, out_f))
    f32 = jnp.float32
    vec = lambda v, n: _pad2d(v.reshape(1, -1).astype(f32), 1, n)
    return {
        "_prepared": True,
        "_dims": (in_f, hid_f, out_f),
        "_pdims": (in_p, hid_p, out_p),
        "m1": _pad2d(jnp.ones((1, in_f), f32), 1, in_p),
        "g1": vec(params["g1"], in_p),
        "b1": vec(params["b1"], in_p),
        "w1": _pad2d(params["w1"].astype(weight_dtype), in_p, hid_p),
        "bb1": vec(params["bb1"], hid_p),
        "m2": _pad2d(jnp.ones((1, hid_f), f32), 1, hid_p),
        "g2": vec(params["g2"], hid_p),
        "b2": vec(params["b2"], hid_p),
        "w2": _pad2d(params["w2"].astype(weight_dtype), hid_p, out_p),
        "bb2": vec(params["bb2"], out_p),
    }


def two_layer_mlp(x, params, *, block_tokens=None, single_buffer_invariants=True,
                  stream_dtype=jnp.bfloat16):
    """x: (..., in_features). params: raw dict from init_params OR dict from prepare_params."""
    p = params if (isinstance(params, dict) and params.get("_prepared", False)) \
        else prepare_params(params)
    in_f, hid_f, out_f = p["_dims"]
    in_p, hid_p, out_p = p["_pdims"]
    assert x.shape[-1] == in_f
    lead = x.shape[:-1]

    xt = x.reshape(-1, in_f)
    n_tok = xt.shape[0]

    vmem_cap = _vmem_cap_bytes()
    vmem_budget = max(24 << 20, vmem_cap - (12 << 20))   # leave headroom below physical VMEM
    x_bytes = jnp.dtype(stream_dtype).itemsize if stream_dtype is not None else x.dtype.itemsize

    # Token tile: per-generation default, then shrink to fit VMEM and to give >=2 grid steps.
    if block_tokens is None:
        block_tokens = 512 if vmem_cap >= (100 << 20) else 256
    block_tokens = max(TOK_GRAN, min(_round_up(block_tokens, TOK_GRAN),
                                     _round_up(n_tok, TOK_GRAN)))
    while block_tokens > TOK_GRAN and _vmem_estimate(block_tokens, in_p, hid_p, out_p,
                                                     x_bytes, True) > vmem_budget:
        block_tokens = max(TOK_GRAN, _round_up(block_tokens // 2, TOK_GRAN))
    # >=2 steps so the "parallel" token axis can shard across v7x's 2 TensorCores
    # (harmless ~0.35us/step overhead on single-TC v5e/v6e).
    while block_tokens > TOK_GRAN and _round_up(n_tok, block_tokens) // block_tokens < 2:
        block_tokens = max(TOK_GRAN, _round_up(block_tokens // 2, TOK_GRAN))

    n_tok_p = _round_up(n_tok, block_tokens)
    grid = (n_tok_p // block_tokens,)

    # Zero-pad tokens/lanes; stream activations in bf16 (kernel upcasts to f32 for LN stats).
    xt = jnp.pad(xt, ((0, n_tok_p - n_tok), (0, in_p - in_f)))
    if stream_dtype is not None and xt.dtype != jnp.dtype(stream_dtype):
        xt = xt.astype(stream_dtype)

    kernel = functools.partial(mlp_kernel, inv_n_in=1.0 / in_f, inv_n_hid=1.0 / hid_f)

    def _run(single_buffer):
        inv_kw = {"pipeline_mode": pl.Buffered(1)} if single_buffer else {}
        tok_in_spec = pl.BlockSpec((block_tokens, in_p), lambda i: (i, 0))
        tok_out_spec = pl.BlockSpec((block_tokens, out_p), lambda i: (i, 0))
        vec_spec = lambda c: pl.BlockSpec((1, c), lambda i: (0, 0), **inv_kw)
        w_spec = lambda r, c: pl.BlockSpec((r, c), lambda i: (0, 0), **inv_kw)

        vmem_limit = int(min(vmem_budget,
                             max(32 << 20,
                                 _vmem_estimate(block_tokens, in_p, hid_p, out_p,
                                                x_bytes, single_buffer))))
        return pl.pallas_call(
            kernel,
            out_shape=jax.ShapeDtypeStruct((n_tok_p, out_p), x.dtype),
            grid_spec=pltpu.PrefetchScalarGridSpec(
                num_scalar_prefetch=0,
                grid=grid,
                in_specs=[
                    tok_in_spec,                                        # x tile
                    vec_spec(in_p), vec_spec(in_p), vec_spec(in_p),     # mask1, gamma1, beta1
                    w_spec(in_p, hid_p), vec_spec(hid_p),               # W1, bias1
                    vec_spec(hid_p), vec_spec(hid_p), vec_spec(hid_p),  # mask2, gamma2, beta2
                    w_spec(hid_p, out_p), vec_spec(out_p),              # W2, bias2
                ],
                out_specs=tok_out_spec,
            ),
            compiler_params=pltpu.CompilerParams(
                dimension_semantics=("parallel",),       # token tiles shard across v7x's 2 TCs
                vmem_limit_bytes=vmem_limit,
            ),
        )(xt, p["m1"], p["g1"], p["b1"], p["w1"], p["bb1"],
          p["m2"], p["g2"], p["b2"], p["w2"], p["bb2"])

    if single_buffer_invariants:
        try:
            y = _run(True)
        except Exception:
            # Fallback if this JAX build rejects pipeline_mode=pl.Buffered(1).
            y = _run(False)
    else:
        y = _run(False)

    return y[:n_tok, :out_f].reshape(*lead, out_f)


def init_params(key, in_features, hidden_features, out_features, dtype=jnp.float32):
    k1, k2, k3, k4 = jax.random.split(key, 4)
    # nn.Linear default init: U(-1/sqrt(fan_in), 1/sqrt(fan_in)); weights pre-transposed to (in,out).
    bnd1 = 1.0 / math.sqrt(in_features)
    bnd2 = 1.0 / math.sqrt(hidden_features)
    return {
        "g1":  jnp.ones((in_features,), dtype),
        "b1":  jnp.zeros((in_features,), dtype),
        "w1":  jax.random.uniform(k1, (in_features, hidden_features), dtype, -bnd1, bnd1),
        "bb1": jax.random.uniform(k2, (hidden_features,), dtype, -bnd1, bnd1),
        "g2":  jnp.ones((hidden_features,), dtype),
        "b2":  jnp.zeros((hidden_features,), dtype),
        "w2":  jax.random.uniform(k3, (hidden_features, out_features), dtype, -bnd2, bnd2),
        "bb2": jax.random.uniform(k4, (out_features,), dtype, -bnd2, bnd2),
    }


def reference(x, p):
    """Pure-JAX f32 reference with the module's exact semantics."""
    def ln(v, g, b):
        mu = jnp.mean(v, -1, keepdims=True)
        var = jnp.mean((v - mu) ** 2, -1, keepdims=True)
        return (v - mu) / jnp.sqrt(var + EPS) * g + b
    h = ln(x, p["g1"], p["b1"]) @ p["w1"] + p["bb1"]
    h = ln(h, p["g2"], p["b2"])
    h = 0.5 * h * (1.0 + jax.lax.erf(h * INV_SQRT2))
    return h @ p["w2"] + p["bb2"]


if __name__ == "__main__":
    key = jax.random.PRNGKey(0)
    kx, kp = jax.random.split(key)

    batch, seq = 2, 256                      # 512 tokens -> >=2 grid steps of <=256 rows
    in_features, hidden_features, out_features = 32, 64, 16

    x = jax.random.normal(kx, (batch, seq, in_features), jnp.float32)
    params = init_params(kp, in_features, hidden_features, out_features)
    prepared = prepare_params(params)        # pad + bf16-cast weights once, outside hot path

    y = jax.block_until_ready(two_layer_mlp(x, prepared))

    y_ref = reference(x.reshape(-1, in_features), params).reshape(batch, seq, out_features)
    assert y.shape == (batch, seq, out_features)
    max_err = float(jnp.max(jnp.abs(y - y_ref)))
    # bf16 activation stream + bf16 MXU operands (f32 accumulation) -> small drift vs pure f32.
    assert jnp.allclose(y, y_ref, atol=5e-2, rtol=5e-2), \
        f"mismatch vs reference (max abs err {max_err})"

    print("KERNEL_OK")
</pallas_src>

<mosaic_0001>
module attributes {stable_mosaic.version = 11 : i64} {
  func.func @mlp_kernel(%arg0: i32, %arg1: memref<256x128xbf16, #tpu.memory_space<vmem>>, %arg2: memref<1x128xf32, #tpu.memory_space<vmem>>, %arg3: memref<1x128xf32, #tpu.memory_space<vmem>>, %arg4: memref<1x128xf32, #tpu.memory_space<vmem>>, %arg5: memref<128x128xbf16, #tpu.memory_space<vmem>>, %arg6: memref<1x128xf32, #tpu.memory_space<vmem>>, %arg7: memref<1x128xf32, #tpu.memory_space<vmem>>, %arg8: memref<1x128xf32, #tpu.memory_space<vmem>>, %arg9: memref<1x128xf32, #tpu.memory_space<vmem>>, %arg10: memref<128x128xbf16, #tpu.memory_space<vmem>>, %arg11: memref<1x128xf32, #tpu.memory_space<vmem>>, %arg12: memref<256x128xf32, #tpu.memory_space<vmem>>) attributes {dimension_semantics = [#tpu.dimension_semantics<parallel>], iteration_bounds = array<i64: 2>, scalar_prefetch = 0 : i64, scratch_operands = 0 : i64, tpu.core_type = #tpu.core_type<tc>, window_params = [{transform_indices = @transform_0, window_bounds = array<i64: 256, 128>}, {pipeline_mode = #tpu.pipeline_mode<synchronous>, transform_indices = @transform_1, window_bounds = array<i64: 1, 128>}, {pipeline_mode = #tpu.pipeline_mode<synchronous>, transform_indices = @transform_2, window_bounds = array<i64: 1, 128>}, {pipeline_mode = #tpu.pipeline_mode<synchronous>, transform_indices = @transform_3, window_bounds = array<i64: 1, 128>}, {pipeline_mode = #tpu.pipeline_mode<synchronous>, transform_indices = @transform_4, window_bounds = array<i64: 128, 128>}, {pipeline_mode = #tpu.pipeline_mode<synchronous>, transform_indices = @transform_5, window_bounds = array<i64: 1, 128>}, {pipeline_mode = #tpu.pipeline_mode<synchronous>, transform_indices = @transform_6, window_bounds = array<i64: 1, 128>}, {pipeline_mode = #tpu.pipeline_mode<synchronous>, transform_indices = @transform_7, window_bounds = array<i64: 1, 128>}, {pipeline_mode = #tpu.pipeline_mode<synchronous>, transform_indices = @transform_8, window_bounds = array<i64: 1, 128>}, {pipeline_mode = #tpu.pipeline_mode<synchronous>, transform_indices = @transform_9, window_bounds = array<i64: 128, 128>}, {pipeline_mode = #tpu.pipeline_mode<synchronous>, transform_indices = @transform_10, window_bounds = array<i64: 1, 128>}, {transform_indices = @transform_11, window_bounds = array<i64: 256, 128>}]} {
    %c0 = arith.constant 0 : index
    %c0_0 = arith.constant 0 : index
    %0 = vector.load %arg1[%c0, %c0_0] : memref<256x128xbf16, #tpu.memory_space<vmem>>, vector<256x128xbf16>
    %1 = arith.extf %0 : vector<256x128xbf16> to vector<256x128xf32>
    %cst = arith.constant dense<0.000000e+00> : vector<256xf32>
    %2 = vector.multi_reduction <add>, %1, %cst [1] : vector<256x128xf32> to vector<256xf32>
    %3 = vector.shape_cast %2 : vector<256xf32> to vector<256x1xf32>
    %cst_1 = arith.constant 3.125000e-02 : f32
    %4 = vector.broadcast %cst_1 : f32 to vector<256x1xf32>
    %5 = arith.mulf %3, %4 : vector<256x1xf32>
    %6 = vector.broadcast %5 : vector<256x1xf32> to vector<256x128xf32>
    %7 = arith.subf %1, %6 : vector<256x128xf32>
    %c0_2 = arith.constant 0 : index
    %c0_3 = arith.constant 0 : index
    %8 = vector.load %arg2[%c0_2, %c0_3] : memref<1x128xf32, #tpu.memory_space<vmem>>, vector<1x128xf32>
    %9 = vector.broadcast %8 : vector<1x128xf32> to vector<256x128xf32>
    %10 = arith.mulf %7, %9 : vector<256x128xf32>
    %11 = arith.mulf %10, %10 : vector<256x128xf32>
    %cst_4 = arith.constant dense<0.000000e+00> : vector<256xf32>
    %12 = vector.multi_reduction <add>, %11, %cst_4 [1] : vector<256x128xf32> to vector<256xf32>
    %13 = vector.shape_cast %12 : vector<256xf32> to vector<256x1xf32>
    %cst_5 = arith.constant 3.125000e-02 : f32
    %14 = vector.broadcast %cst_5 : f32 to vector<256x1xf32>
    %15 = arith.mulf %13, %14 : vector<256x1xf32>
    %cst_6 = arith.constant 9.99999974E-6 : f32
    %16 = vector.broadcast %cst_6 : f32 to vector<256x1xf32>
    %17 = arith.addf %15, %16 : vector<256x1xf32>
    %18 = math.rsqrt %17 : vector<256x1xf32>
    %19 = vector.broadcast %18 : vector<256x1xf32> to vector<256x128xf32>
    %20 = arith.mulf %10, %19 : vector<256x128xf32>
    %c0_7 = arith.constant 0 : index
    %c0_8 = arith.constant 0 : index
    %21 = vector.load %arg3[%c0_7, %c0_8] : memref<1x128xf32, #tpu.memory_space<vmem>>, vector<1x128xf32>
    %22 = vector.broadcast %21 : vector<1x128xf32> to vector<256x128xf32>
    %23 = arith.mulf %20, %22 : vector<256x128xf32>
    %c0_9 = arith.constant 0 : index
    %c0_10 = arith.constant 0 : index
    %24 = vector.load %arg4[%c0_9, %c0_10] : memref<1x128xf32, #tpu.memory_space<vmem>>, vector<1x128xf32>
    %25 = vector.broadcast %24 : vector<1x128xf32> to vector<256x128xf32>
    %26 = arith.addf %23, %25 : vector<256x128xf32>
    %27 = arith.truncf %26 : vector<256x128xf32> to vector<256x128xbf16>
    %c0_11 = arith.constant 0 : index
    %c0_12 = arith.constant 0 : index
    %28 = vector.load %arg5[%c0_11, %c0_12] : memref<128x128xbf16, #tpu.memory_space<vmem>>, vector<128x128xbf16>
    %cst_13 = arith.constant dense<0.000000e+00> : vector<256x128xf32>
    %29 = tpu.matmul %27, %28, %cst_13 {dimension_numbers = #tpu.dot_dimension_numbers<[1], [0], [0], [1], [0, 0, 1, 1], [], []>} : vector<256x128xbf16>, vector<128x128xbf16>, vector<256x128xf32> -> vector<256x128xf32>
    %c0_14 = arith.constant 0 : index
    %c0_15 = arith.constant 0 : index
    %30 = vector.load %arg6[%c0_14, %c0_15] : memref<1x128xf32, #tpu.memory_space<vmem>>, vector<1x128xf32>
    %31 = vector.broadcast %30 : vector<1x128xf32> to vector<256x128xf32>
    %32 = arith.addf %29, %31 : vector<256x128xf32>
    %cst_16 = arith.constant dense<0.000000e+00> : vector<256xf32>
    %33 = vector.multi_reduction <add>, %32, %cst_16 [1] : vector<256x128xf32> to vector<256xf32>
    %34 = vector.shape_cast %33 : vector<256xf32> to vector<256x1xf32>
    %cst_17 = arith.constant 1.562500e-02 : f32
    %35 = vector.broadcast %cst_17 : f32 to vector<256x1xf32>
    %36 = arith.mulf %34, %35 : vector<256x1xf32>
    %37 = vector.broadcast %36 : vector<256x1xf32> to vector<256x128xf32>
    %38 = arith.subf %32, %37 : vector<256x128xf32>
    %c0_18 = arith.constant 0 : index
    %c0_19 = arith.constant 0 : index
    %39 = vector.load %arg7[%c0_18, %c0_19] : memref<1x128xf32, #tpu.memory_space<vmem>>, vector<1x128xf32>
    %40 = vector.broadcast %39 : vector<1x128xf32> to vector<256x128xf32>
    %41 = arith.mulf %38, %40 : vector<256x128xf32>
    %42 = arith.mulf %41, %41 : vector<256x128xf32>
    %cst_20 = arith.constant dense<0.000000e+00> : vector<256xf32>
    %43 = vector.multi_reduction <add>, %42, %cst_20 [1] : vector<256x128xf32> to vector<256xf32>
    %44 = vector.shape_cast %43 : vector<256xf32> to vector<256x1xf32>
    %cst_21 = arith.constant 1.562500e-02 : f32
    %45 = vector.broadcast %cst_21 : f32 to vector<256x1xf32>
    %46 = arith.mulf %44, %45 : vector<256x1xf32>
    %cst_22 = arith.constant 9.99999974E-6 : f32
    %47 = vector.broadcast %cst_22 : f32 to vector<256x1xf32>
    %48 = arith.addf %46, %47 : vector<256x1xf32>
    %49 = math.rsqrt %48 : vector<256x1xf32>
    %50 = vector.broadcast %49 : vector<256x1xf32> to vector<256x128xf32>
    %51 = arith.mulf %41, %50 : vector<256x128xf32>
    %c0_23 = arith.constant 0 : index
    %c0_24 = arith.constant 0 : index
    %52 = vector.load %arg8[%c0_23, %c0_24] : memref<1x128xf32, #tpu.memory_space<vmem>>, vector<1x128xf32>
    %53 = vector.broadcast %52 : vector<1x128xf32> to vector<256x128xf32>
    %54 = arith.mulf %51, %53 : vector<256x128xf32>
    %c0_25 = arith.constant 0 : index
    %c0_26 = arith.constant 0 : index
    %55 = vector.load %arg9[%c0_25, %c0_26] : memref<1x128xf32, #tpu.memory_space<vmem>>, vector<1x128xf32>
    %56 = vector.broadcast %55 : vector<1x128xf32> to vector<256x128xf32>
    %57 = arith.addf %54, %56 : vector<256x128xf32>
    %cst_27 = arith.constant 5.000000e-01 : f32
    %58 = vector.broadcast %cst_27 : f32 to vector<256x128xf32>
    %59 = arith.mulf %58, %57 : vector<256x128xf32>
    %cst_28 = arith.constant 0.707106769 : f32
    %60 = vector.broadcast %cst_28 : f32 to vector<256x128xf32>
    %61 = arith.mulf %57, %60 : vector<256x128xf32>
    %62 = math.erf %61 : vector<256x128xf32>
    %cst_29 = arith.constant 1.000000e+00 : f32
    %63 = vector.broadcast %cst_29 : f32 to vector<256x128xf32>
    %64 = arith.addf %63, %62 : vector<256x128xf32>
    %65 = arith.mulf %59, %64 : vector<256x128xf32>
    %66 = arith.truncf %65 : vector<256x128xf32> to vector<256x128xbf16>
    %c0_30 = arith.constant 0 : index
    %c0_31 = arith.constant 0 : index
    %67 = vector.load %arg10[%c0_30, %c0_31] : memref<128x128xbf16, #tpu.memory_space<vmem>>, vector<128x128xbf16>
    %cst_32 = arith.constant dense<0.000000e+00> : vector<256x128xf32>
    %68 = tpu.matmul %66, %67, %cst_32 {dimension_numbers = #tpu.dot_dimension_numbers<[1], [0], [0], [1], [0, 0, 1, 1], [], []>} : vector<256x128xbf16>, vector<128x128xbf16>, vector<256x128xf32> -> vector<256x128xf32>
    %c0_33 = arith.constant 0 : index
    %c0_34 = arith.constant 0 : index
    %69 = vector.load %arg11[%c0_33, %c0_34] : memref<1x128xf32, #tpu.memory_space<vmem>>, vector<1x128xf32>
    %70 = vector.broadcast %69 : vector<1x128xf32> to vector<256x128xf32>
    %71 = arith.addf %68, %70 : vector<256x128xf32>
    %c0_35 = arith.constant 0 : index
    %c0_36 = arith.constant 0 : index
    %72 = vector.load %arg12[%c0_35, %c0_36] : memref<256x128xf32, #tpu.memory_space<vmem>>, vector<256x128xf32>
    tpu.vector_store %arg12[%c0_35, %c0_36], %71 {strides = array<i32>} : memref<256x128xf32, #tpu.memory_space<vmem>>, vector<256x128xf32>,
    return
  }
  func.func @transform_0(%arg0: i32) -> (i32, i32) {
    %c0_i32 = arith.constant 0 : i32
    %c0_i32_0 = arith.constant 0 : i32
    return %arg0, %c0_i32 : i32, i32
  }
  func.func @transform_1(%arg0: i32) -> (i32, i32) {
    %c0_i32 = arith.constant 0 : i32
    %c0_i32_0 = arith.constant 0 : i32
    %c0_i32_1 = arith.constant 0 : i32
    return %c0_i32, %c0_i32_0 : i32, i32
  }
  func.func @transform_2(%arg0: i32) -> (i32, i32) {
    %c0_i32 = arith.constant 0 : i32
    %c0_i32_0 = arith.constant 0 : i32
    %c0_i32_1 = arith.constant 0 : i32
    return %c0_i32, %c0_i32_0 : i32, i32
  }
  func.func @transform_3(%arg0: i32) -> (i32, i32) {
    %c0_i32 = arith.constant 0 : i32
    %c0_i32_0 = arith.constant 0 : i32
    %c0_i32_1 = arith.constant 0 : i32
    return %c0_i32, %c0_i32_0 : i32, i32
  }
  func.func @transform_4(%arg0: i32) -> (i32, i32) {
    %c0_i32 = arith.constant 0 : i32
    %c0_i32_0 = arith.constant 0 : i32
    %c0_i32_1 = arith.constant 0 : i32
    return %c0_i32, %c0_i32_0 : i32, i32
  }
  func.func @transform_5(%arg0: i32) -> (i32, i32) {
    %c0_i32 = arith.constant 0 : i32
    %c0_i32_0 = arith.constant 0 : i32
    %c0_i32_1 = arith.constant 0 : i32
    return %c0_i32, %c0_i32_0 : i32, i32
  }
  func.func @transform_6(%arg0: i32) -> (i32, i32) {
    %c0_i32 = arith.constant 0 : i32
    %c0_i32_0 = arith.constant 0 : i32
    %c0_i32_1 = arith.constant 0 : i32
    return %c0_i32, %c0_i32_0 : i32, i32
  }
  func.func @transform_7(%arg0: i32) -> (i32, i32) {
    %c0_i32 = arith.constant 0 : i32
    %c0_i32_0 = arith.constant 0 : i32
    %c0_i32_1 = arith.constant 0 : i32
    return %c0_i32, %c0_i32_0 : i32, i32
  }
  func.func @transform_8(%arg0: i32) -> (i32, i32) {
    %c0_i32 = arith.constant 0 : i32
    %c0_i32_0 = arith.constant 0 : i32
    %c0_i32_1 = arith.constant 0 : i32
    return %c0_i32, %c0_i32_0 : i32, i32
  }
  func.func @transform_9(%arg0: i32) -> (i32, i32) {
    %c0_i32 = arith.constant 0 : i32
    %c0_i32_0 = arith.constant 0 : i32
    %c0_i32_1 = arith.constant 0 : i32
    return %c0_i32, %c0_i32_0 : i32, i32
  }
  func.func @transform_10(%arg0: i32) -> (i32, i32) {
    %c0_i32 = arith.constant 0 : i32
    %c0_i32_0 = arith.constant 0 : i32
    %c0_i32_1 = arith.constant 0 : i32
    return %c0_i32, %c0_i32_0 : i32, i32
  }
  func.func @transform_11(%arg0: i32) -> (i32, i32) {
    %c0_i32 = arith.constant 0 : i32
    %c0_i32_0 = arith.constant 0 : i32
    return %arg0, %c0_i32 : i32, i32
  }
}

module attributes {stable_mosaic.version = 11 : i64} {
  func.func @mlp_kernel(%arg0: i32, %arg1: memref<256x128xbf16, #tpu.memory_space<vmem>>, %arg2: memref<1x128xf32, #tpu.memory_space<vmem>>, %arg3: memref<1x128xf32, #tpu.memory_space<vmem>>, %arg4: memref<1x128xf32, #tpu.memory_space<vmem>>, %arg5: memref<128x128xbf16, #tpu.memory_space<vmem>>, %arg6: memref<1x128xf32, #tpu.memory_space<vmem>>, %arg7: memref<1x128xf32, #tpu.memory_space<vmem>>, %arg8: memref<1x128xf32, #tpu.memory_space<vmem>>, %arg9: memref<1x128xf32, #tpu.memory_space<vmem>>, %arg10: memref<128x128xbf16, #tpu.memory_space<vmem>>, %arg11: memref<1x128xf32, #tpu.memory_space<vmem>>, %arg12: memref<256x128xf32, #tpu.memory_space<vmem>>) attributes {dimension_semantics = [#tpu.dimension_semantics<parallel>], iteration_bounds = array<i64: 2>, scalar_prefetch = 0 : i64, scratch_operands = 0 : i64, tpu.core_type = #tpu.core_type<tc>, window_params = [{transform_indices = @transform_0, window_bounds = array<i64: 256, 128>}, {pipeline_mode = #tpu.pipeline_mode<synchronous>, transform_indices = @transform_1, window_bounds = array<i64: 1, 128>}, {pipeline_mode = #tpu.pipeline_mode<synchronous>, transform_indices = @transform_2, window_bounds = array<i64: 1, 128>}, {pipeline_mode = #tpu.pipeline_mode<synchronous>, transform_indices = @transform_3, window_bounds = array<i64: 1, 128>}, {pipeline_mode = #tpu.pipeline_mode<synchronous>, transform_indices = @transform_4, window_bounds = array<i64: 128, 128>}, {pipeline_mode = #tpu.pipeline_mode<synchronous>, transform_indices = @transform_5, window_bounds = array<i64: 1, 128>}, {pipeline_mode = #tpu.pipeline_mode<synchronous>, transform_indices = @transform_6, window_bounds = array<i64: 1, 128>}, {pipeline_mode = #tpu.pipeline_mode<synchronous>, transform_indices = @transform_7, window_bounds = array<i64: 1, 128>}, {pipeline_mode = #tpu.pipeline_mode<synchronous>, transform_indices = @transform_8, window_bounds = array<i64: 1, 128>}, {pipeline_mode = #tpu.pipeline_mode<synchronous>, transform_indices = @transform_9, window_bounds = array<i64: 128, 128>}, {pipeline_mode = #tpu.pipeline_mode<synchronous>, transform_indices = @transform_10, window_bounds = array<i64: 1, 128>}, {transform_indices = @transform_11, window_bounds = array<i64: 256, 128>}]} {
    %c0 = arith.constant 0 : index
    %c0_0 = arith.constant 0 : index
    %0 = vector.load %arg1[%c0, %c0_0] : memref<256x128xbf16, #tpu.memory_space<vmem>>, vector<256x128xbf16>
    %1 = arith.extf %0 : vector<256x128xbf16> to vector<256x128xf32>
    %cst = arith.constant dense<0.000000e+00> : vector<256xf32>
    %2 = vector.multi_reduction <add>, %1, %cst [1] : vector<256x128xf32> to vector<256xf32>
    %3 = vector.shape_cast %2 : vector<256xf32> to vector<256x1xf32>
    %cst_1 = arith.constant 3.125000e-02 : f32
    %4 = vector.broadcast %cst_1 : f32 to vector<256x1xf32>
    %5 = arith.mulf %3, %4 : vector<256x1xf32>
    %6 = vector.broadcast %5 : vector<256x1xf32> to vector<256x128xf32>
    %7 = arith.subf %1, %6 : vector<256x128xf32>
    %c0_2 = arith.constant 0 : index
    %c0_3 = arith.constant 0 : index
    %8 = vector.load %arg2[%c0_2, %c0_3] : memref<1x128xf32, #tpu.memory_space<vmem>>, vector<1x128xf32>
    %9 = vector.broadcast %8 : vector<1x128xf32> to vector<256x128xf32>
    %10 = arith.mulf %7, %9 : vector<256x128xf32>
    %11 = arith.mulf %10, %10 : vector<256x128xf32>
    %cst_4 = arith.constant dense<0.000000e+00> : vector<256xf32>
    %12 = vector.multi_reduction <add>, %11, %cst_4 [1] : vector<256x128xf32> to vector<256xf32>
    %13 = vector.shape_cast %12 : vector<256xf32> to vector<256x1xf32>
    %cst_5 = arith.constant 3.125000e-02 : f32
    %14 = vector.broadcast %cst_5 : f32 to vector<256x1xf32>
    %15 = arith.mulf %13, %14 : vector<256x1xf32>
    %cst_6 = arith.constant 9.99999974E-6 : f32
    %16 = vector.broadcast %cst_6 : f32 to vector<256x1xf32>
    %17 = arith.addf %15, %16 : vector<256x1xf32>
    %18 = math.rsqrt %17 : vector<256x1xf32>
    %19 = vector.broadcast %18 : vector<256x1xf32> to vector<256x128xf32>
    %20 = arith.mulf %10, %19 : vector<256x128xf32>
    %c0_7 = arith.constant 0 : index
    %c0_8 = arith.constant 0 : index
    %21 = vector.load %arg3[%c0_7, %c0_8] : memref<1x128xf32, #tpu.memory_space<vmem>>, vector<1x128xf32>
    %22 = vector.broadcast %21 : vector<1x128xf32> to vector<256x128xf32>
    %23 = arith.mulf %20, %22 : vector<256x128xf32>
    %c0_9 = arith.constant 0 : index
    %c0_10 = arith.constant 0 : index
    %24 = vector.load %arg4[%c0_9, %c0_10] : memref<1x128xf32, #tpu.memory_space<vmem>>, vector<1x128xf32>
    %25 = vector.broadcast %24 : vector<1x128xf32> to vector<256x128xf32>
    %26 = arith.addf %23, %25 : vector<256x128xf32>
    %27 = arith.truncf %26 : vector<256x128xf32> to vector<256x128xbf16>
    %c0_11 = arith.constant 0 : index
    %c0_12 = arith.constant 0 : index
    %28 = vector.load %arg5[%c0_11, %c0_12] : memref<128x128xbf16, #tpu.memory_space<vmem>>, vector<128x128xbf16>
    %cst_13 = arith.constant dense<0.000000e+00> : vector<256x128xf32>
    %29 = tpu.matmul %27, %28, %cst_13 {dimension_numbers = #tpu.dot_dimension_numbers<[1], [0], [0], [1], [0, 0, 1, 1], [], []>} : vector<256x128xbf16>, vector<128x128xbf16>, vector<256x128xf32> -> vector<256x128xf32>
    %c0_14 = arith.constant 0 : index
    %c0_15 = arith.constant 0 : index
    %30 = vector.load %arg6[%c0_14, %c0_15] : memref<1x128xf32, #tpu.memory_space<vmem>>, vector<1x128xf32>
    %31 = vector.broadcast %30 : vector<1x128xf32> to vector<256x128xf32>
    %32 = arith.addf %29, %31 : vector<256x128xf32>
    %cst_16 = arith.constant dense<0.000000e+00> : vector<256xf32>
    %33 = vector.multi_reduction <add>, %32, %cst_16 [1] : vector<256x128xf32> to vector<256xf32>
    %34 = vector.shape_cast %33 : vector<256xf32> to vector<256x1xf32>
    %cst_17 = arith.constant 1.562500e-02 : f32
    %35 = vector.broadcast %cst_17 : f32 to vector<256x1xf32>
    %36 = arith.mulf %34, %35 : vector<256x1xf32>
    %37 = vector.broadcast %36 : vector<256x1xf32> to vector<256x128xf32>
    %38 = arith.subf %32, %37 : vector<256x128xf32>
    %c0_18 = arith.constant 0 : index
    %c0_19 = arith.constant 0 : index
    %39 = vector.load %arg7[%c0_18, %c0_19] : memref<1x128xf32, #tpu.memory_space<vmem>>, vector<1x128xf32>
    %40 = vector.broadcast %39 : vector<1x128xf32> to vector<256x128xf32>
    %41 = arith.mulf %38, %40 : vector<256x128xf32>
    %42 = arith.mulf %41, %41 : vector<256x128xf32>
    %cst_20 = arith.constant dense<0.000000e+00> : vector<256xf32>
    %43 = vector.multi_reduction <add>, %42, %cst_20 [1] : vector<256x128xf32> to vector<256xf32>
    %44 = vector.shape_cast %43 : vector<256xf32> to vector<256x1xf32>
    %cst_21 = arith.constant 1.562500e-02 : f32
    %45 = vector.broadcast %cst_21 : f32 to vector<256x1xf32>
    %46 = arith.mulf %44, %45 : vector<256x1xf32>
    %cst_22 = arith.constant 9.99999974E-6 : f32
    %47 = vector.broadcast %cst_22 : f32 to vector<256x1xf32>
    %48 = arith.addf %46, %47 : vector<256x1xf32>
    %49 = math.rsqrt %48 : vector<256x1xf32>
    %50 = vector.broadcast %49 : vector<256x1xf32> to vector<256x128xf32>
    %51 = arith.mulf %41, %50 : vector<256x128xf32>
    %c0_23 = arith.constant 0 : index
    %c0_24 = arith.constant 0 : index
    %52 = vector.load %arg8[%c0_23, %c0_24] : memref<1x128xf32, #tpu.memory_space<vmem>>, vector<1x128xf32>
    %53 = vector.broadcast %52 : vector<1x128xf32> to vector<256x128xf32>
    %54 = arith.mulf %51, %53 : vector<256x128xf32>
    %c0_25 = arith.constant 0 : index
    %c0_26 = arith.constant 0 : index
    %55 = vector.load %arg9[%c0_25, %c0_26] : memref<1x128xf32, #tpu.memory_space<vmem>>, vector<1x128xf32>
    %56 = vector.broadcast %55 : vector<1x128xf32> to vector<256x128xf32>
    %57 = arith.addf %54, %56 : vector<256x128xf32>
    %cst_27 = arith.constant 5.000000e-01 : f32
    %58 = vector.broadcast %cst_27 : f32 to vector<256x128xf32>
    %59 = arith.mulf %58, %57 : vector<256x128xf32>
    %cst_28 = arith.constant 0.707106769 : f32
    %60 = vector.broadcast %cst_28 : f32 to vector<256x128xf32>
    %61 = arith.mulf %57, %60 : vector<256x128xf32>
    %62 = math.erf %61 : vector<256x128xf32>
    %cst_29 = arith.constant 1.000000e+00 : f32
    %63 = vector.broadcast %cst_29 : f32 to vector<256x128xf32>
    %64 = arith.addf %63, %62 : vector<256x128xf32>
    %65 = arith.mulf %59, %64 : vector<256x128xf32>
    %66 = arith.truncf %65 : vector<256x128xf32> to vector<256x128xbf16>
    %c0_30 = arith.constant 0 : index
    %c0_31 = arith.constant 0 : index
    %67 = vector.load %arg10[%c0_30, %c0_31] : memref<128x128xbf16, #tpu.memory_space<vmem>>, vector<128x128xbf16>
    %cst_32 = arith.constant dense<0.000000e+00> : vector<256x128xf32>
    %68 = tpu.matmul %66, %67, %cst_32 {dimension_numbers = #tpu.dot_dimension_numbers<[1], [0], [0], [1], [0, 0, 1, 1], [], []>} : vector<256x128xbf16>, vector<128x128xbf16>, vector<256x128xf32> -> vector<256x128xf32>
    %c0_33 = arith.constant 0 : index
    %c0_34 = arith.constant 0 : index
    %69 = vector.load %arg11[%c0_33, %c0_34] : memref<1x128xf32, #tpu.memory_space<vmem>>, vector<1x128xf32>
    %70 = vector.broadcast %69 : vector<1x128xf32> to vector<256x128xf32>
    %71 = arith.addf %68, %70 : vector<256x128xf32>
    %c0_35 = arith.constant 0 : index
    %c0_36 = arith.constant 0 : index
    %72 = vector.load %arg12[%c0_35, %c0_36] : memref<256x128xf32, #tpu.memory_space<vmem>>, vector<256x128xf32>
    tpu.vector_store %arg12[%c0_35, %c0_36], %71 {strides = array<i32>} : memref<256x128xf32, #tpu.memory_space<vmem>>, vector<256x128xf32>,
    return
  }
  func.func @transform_0(%arg0: i32) -> (i32, i32) {
    %c0_i32 = arith.constant 0 : i32
    %c0_i32_0 = arith.constant 0 : i32
    return %arg0, %c0_i32 : i32, i32
  }
  func.func @transform_1(%arg0: i32) -> (i32, i32) {
    %c0_i32 = arith.constant 0 : i32
    %c0_i32_0 = arith.constant 0 : i32
    %c0_i32_1 = arith.constant 0 : i32
    return %c0_i32, %c0_i32_0 : i32, i32
  }
  func.func @transform_2(%arg0: i32) -> (i32, i32) {
    %c0_i32 = arith.constant 0 : i32
    %c0_i32_0 = arith.constant 0 : i32
    %c0_i32_1 = arith.constant 0 : i32
    return %c0_i32, %c0_i32_0 : i32, i32
  }
  func.func @transform_3(%arg0: i32) -> (i32, i32) {
    %c0_i32 = arith.constant 0 : i32
    %c0_i32_0 = arith.constant 0 : i32
    %c0_i32_1 = arith.constant 0 : i32
    return %c0_i32, %c0_i32_0 : i32, i32
  }
  func.func @transform_4(%arg0: i32) -> (i32, i32) {
    %c0_i32 = arith.constant 0 : i32
    %c0_i32_0 = arith.constant 0 : i32
    %c0_i32_1 = arith.constant 0 : i32
    return %c0_i32, %c0_i32_0 : i32, i32
  }
  func.func @transform_5(%arg0: i32) -> (i32, i32) {
    %c0_i32 = arith.constant 0 : i32
    %c0_i32_0 = arith.constant 0 : i32
    %c0_i32_1 = arith.constant 0 : i32
    return %c0_i32, %c0_i32_0 : i32, i32
  }
  func.func @transform_6(%arg0: i32) -> (i32, i32) {
    %c0_i32 = arith.constant 0 : i32
    %c0_i32_0 = arith.constant 0 : i32
    %c0_i32_1 = arith.constant 0 : i32
    return %c0_i32, %c0_i32_0 : i32, i32
  }
  func.func @transform_7(%arg0: i32) -> (i32, i32) {
    %c0_i32 = arith.constant 0 : i32
    %c0_i32_0 = arith.constant 0 : i32
    %c0_i32_1 = arith.constant 0 : i32
    return %c0_i32, %c0_i32_0 : i32, i32
  }
  func.func @transform_8(%arg0: i32) -> (i32, i32) {
    %c0_i32 = arith.constant 0 : i32
    %c0_i32_0 = arith.constant 0 : i32
    %c0_i32_1 = arith.constant 0 : i32
    return %c0_i32, %c0_i32_0 : i32, i32
  }
  func.func @transform_9(%arg0: i32) -> (i32, i32) {
    %c0_i32 = arith.constant 0 : i32
    %c0_i32_0 = arith.constant 0 : i32
    %c0_i32_1 = arith.constant 0 : i32
    return %c0_i32, %c0_i32_0 : i32, i32
  }
  func.func @transform_10(%arg0: i32) -> (i32, i32) {
    %c0_i32 = arith.constant 0 : i32
    %c0_i32_0 = arith.constant 0 : i32
    %c0_i32_1 = arith.constant 0 : i32
    return %c0_i32, %c0_i32_0 : i32, i32
  }
  func.func @transform_11(%arg0: i32) -> (i32, i32) {
    %c0_i32 = arith.constant 0 : i32
    %c0_i32_0 = arith.constant 0 : i32
    return %arg0, %c0_i32 : i32, i32
  }
}

</mosaic_0001>

<bundles_post_ra>
// kernel: tpu_custom_call.1
= control target key start
LH: loop header
LB: loop body
LE: loop exit
PB: predicated region body
PF: predicated region fallthrough
CT: control target
= control target key end

     0   :  { %s4297_s0 = inlined_call_operand.hbm [shape: bf16[512,128], index: 0, kind: input, shape index: {}]   ;;  %s4298_s1 = inlined_call_operand.vmem [shape: f32[1,128], index: 1, kind: input, shape index: {}]   ;;  %s4299_s2 = inlined_call_operand.vmem [shape: f32[1,128], index: 2, kind: input, shape index: {}]   ;;  %s4300_s3 = inlined_call_operand.vmem [shape: f32[1,128], index: 3, kind: input, shape index: {}]   ;;  %s4301_s4 = inlined_call_operand.hbm [shape: bf16[128,128], index: 4, kind: input, shape index: {}]   ;;  %s4302_s5 = inlined_call_operand.vmem [shape: f32[1,128], index: 5, kind: input, shape index: {}]   ;;  %s4303_s6 = inlined_call_operand.vmem [shape: f32[1,128], index: 6, kind: input, shape index: {}]   ;;  %s4304_s7 = inlined_call_operand.vmem [shape: f32[1,128], index: 7, kind: input, shape index: {}]   ;;  %s4305_s8 = inlined_call_operand.vmem [shape: f32[1,128], index: 8, kind: input, shape index: {}]   ;;  %s4306_s9 = inlined_call_operand.hbm [shape: bf16[128,128], index: 9, kind: input, shape index: {}]   ;;  %s4307_s10 = inlined_call_operand.vmem [shape: f32[1,128], index: 10, kind: input, shape index: {}]   ;;  %s4308_s11 = inlined_call_operand.hbm [shape: f32[512,128], index: 11, kind: output, shape index: {}]  }
   0x1   :  { %4317 = sst [smem:[#allocation14_spill]] %s4308_s11 }
   0x2   :  { %16 = vsyncpa [#allocation3], 0 }
   0x3   :  { %18 = vsyncpa [#allocation3 + $0x1], 0 }
   0x4   :  { %19 = vsyncpa [#allocation6], 0 }
   0x5   :  { %20 = vsyncpa [#allocation4], 0 }
   0x6   :  { %22 = vsyncpa [#allocation4 + $0x1], 0  ;;  %s3005_s17 = smov 0   ;;  %s3007_s18 = smov 0  }
   0x7   :  { %s3009_s19 = smov 0   ;;  %s3011_s20 = smov 0  }
   0x8 LB: > { %4318 = sst [smem:[#allocation12_spill]] %s2923_s17  ;;  %s3026_s21 = sadd.s32 4294967295, %s2935_s20   ;;  %s2935_s20 = sphi %s3011_s20, %s4341_s20   ;;  %s2931_s19 = sphi %s3009_s19, %s4340_s19   ;;  %s2927_s18 = sphi %s3007_s18, %s4339_s18   ;;  %s2923_s17 = sphi %s3005_s17, %s4338_s17  }
   0x9   : > { %s2233_s22 = sadd.s32 4294967294, %s2935_s20   ;;  %p48_p0 = scmp.ne.s32.totalorder %s2927_s18, %s2923_s17 }
   0xa   : > { %p4309_p1 = scmp.eq.s32.totalorder %s3026_s21, 0  ;;  %p288_p3 = scmp.eq.s32.totalorder %s2233_s22, 1 }
   0xb   : > { %p2234_p5 = scmp.ge.s32.totalorder %s2935_s20, 1  ;;  %p295_p7 = scmp.lt.s32.totalorder %s2935_s20, 3 }
   0xc   : > { %p3035_p4 = por %p4309_p1, %p48_p0  ;;  %p3040_p6 = por %p288_p3, %p48_p0 }
   0xd   : > { %p3045_p8 = pnand %p2234_p5, %p295_p7  ;;  %s2937_s26 = smov [#allocation5]  }
   0xe   : > { %s4319_s23 = scalar_select %p3035_p4, 1, 0 }
   0xf   : > { %s4320_s24 = scalar_select %p3040_p6, 1, 0 }
  0x10   : > { %s316_s27 = sshll.u32 %s2937_s26, 4  ;;  %p2512_p9 = pneg %p3045_p8  ;;  %s3049_s27 = int_to_ptr.vmem [resolvable:$true] %s316_s27 }
  0x11   : > { %4321 = sst [smem:[#allocation13_spill]] %s4320_s24  ;;  %s2938_s29 = smov [#allocation7]  }
  0x12   : > { %p3056_p11 = pnand %p2512_p9, %p4309_p1  ;;  %s341_s30 = sshll.u32 %s2938_s29, 4  ;;  %s3060_s30 = int_to_ptr.vmem [resolvable:$true] %s341_s30 }
  0x13   : > { %s2779_s14 = scalar_lea.hbm %s4301_s4, 1024 }
  0x14   : > { %p2780_p12 = scmp.ne.s32.totalorder %s4301_s4, %s2779_s14  ;;  %p2781_p13 = pneg %p3056_p11 }
  0x15   : > { %p2786_p5 = scmp.lt.u32.totalorder %s2779_s14, %s4301_s4 }
  0x16   : > { %p2782_p0 = pnand %p2781_p13, %p2780_p12 }
  0x18   : > { %p2783_p3 = pneg %p2782_p0 }
  0x1a   : > { %p2788_p7 = pnand %p2786_p5, %p2783_p3 }
  0x1c   : > { %2791 = shalt.err (!%p2788_p7)
}
  0x1d   : > { %s2792_s29 = scalar_lea.vmem %s3049_s27, 1024  ;;  %p2800_p2 = scmp.lt.s32.totalorder %s3049_s27, %s3049_s27 }
  0x1e   : > { %p2793_p9 = scmp.ne.s32.totalorder %s3049_s27, %s2792_s29  ;;  %p2801_p12 = scmp.lt.s32.totalorder %s2792_s29, %s2792_s29 }
  0x20   : > { %p2795_p10 = pnand %p2793_p9, %p2781_p13  ;;  %p2802_p0 = por %p2801_p12, %p2800_p2 }
  0x22   : > { %p2796_p1 = pneg %p2795_p10 }
  0x24   : > { %p2803_p6 = pnand %p2802_p0, %p2796_p1 }
  0x26   : > { %2806 = shalt.err (!%p2803_p6)
}
  0x27   : > { %s4313_s12 = smov 64   ;;  %s4314_s13 = smov 4  }
  0x28   : > { %2515 = dma.hbm_to_vmem [thread:$0]  (!%p3056_p11), %s4301_s4, 1024, %s3049_s27, [#allocation6], %s4313_s12, %s4313_s12, %s4314_s13  }
  0x29   : > { %s2807_s26 = scalar_lea.hbm %s4306_s9, 1024 }
  0x2a   : > { %p2808_p1 = scmp.ne.s32.totalorder %s4306_s9, %s2807_s26  ;;  %p2814_p10 = scmp.lt.u32.totalorder %s2807_s26, %s4306_s9 }
  0x2c   : > { %p2810_p2 = pnand %p2808_p1, %p2781_p13 }
  0x2e   : > { %p2811_p6 = pneg %p2810_p2 }
  0x30   : > { %p2816_p3 = pnand %p2814_p10, %p2811_p6 }
  0x32   : > { %2819 = shalt.err (!%p2816_p3)
}
  0x33   : > { %s2820_s27 = scalar_lea.vmem %s3060_s30, 1024  ;;  %p2828_p12 = scmp.lt.s32.totalorder %s3060_s30, %s3060_s30 }
  0x34   : > { %p2821_p5 = scmp.ne.s32.totalorder %s3060_s30, %s2820_s27  ;;  %p2829_p0 = scmp.lt.s32.totalorder %s2820_s27, %s2820_s27 }
  0x36   : > { %p2823_p7 = pnand %p2821_p5, %p2781_p13  ;;  %p2830_p1 = por %p2829_p0, %p2828_p12 }
  0x38   : > { %p2824_p9 = pneg %p2823_p7 }
  0x3a   : > { %p2831_p2 = pnand %p2830_p1, %p2824_p9 }
  0x3c   : > { %2834 = shalt.err (!%p2831_p2)
}
  0x3d   : > { %2518 = dma.hbm_to_vmem [thread:$0]  (!%p3056_p11), %s4306_s9, 1024, %s3060_s30, [#allocation6], %s4313_s12, %s4313_s12, %s4314_s13  }
  0x3e   : > { %s3121_s24 = sadd.s32 1, %s2935_s20   ;;  %s35_s28 = sadd.s32 1, %s2931_s19 }
  0x3f   : > { %s32_s14 = ssub.s32 %s2935_s20, %s3121_s24  ;;  %p42_p13 = scmp.ne.s32.totalorder %s2931_s19, %s2927_s18 }
  0x40   : > { %p33_p6 = scmp.eq.s32.totalorder %s32_s14, 0  ;;  %p43_p10 = scmp.eq.s32.totalorder %s2935_s20, 0 }
  0x41   : > { %p4324_p3 = scmp.eq.s32.totalorder %s3026_s21, 1  ;;  %p2529_p7 = scmp.lt.s32.totalorder %s2935_s20, 2 }
  0x42   : > { %s3137_s16 = scalar_select %p33_p6, %s2931_s19, %s35_s28  }
  0x43   : > { %p3131_p5 = por %p4324_p3, %p42_p13  ;;  %p44_p9 = por %p43_p10, %p42_p13 }
  0x44   : > { %s358_s22 = sand.u32 1, %s2931_s19   ;;  %s2275_s30 = sshll.u32 %s2935_s20, 11 }
  0x45   : > { %s4325_s15 = scalar_select %p3131_p5, 1, 0 }
  0x46   : > { %s2238_s26 = sshll.u32 %s358_s22, 7  ;;  %s3144_s11 = scalar_lea.hbm %s4297_s0, %s2275_s30 }
  0x47   : > { %s362_s17 = scalar_lea.vmem [#allocation2], %s2238_s26  ;;  %p3148_p11 = pnand %p2529_p7, %p44_p9 }
  0x48   : > { %s369_s14 = sshll.u32 %s362_s17, 4  ;;  %s3152_s12 = scalar_lea.sflag [#allocation3], %s358_s22  ;;  %s3146_s14 = int_to_ptr.vmem [resolvable:$true] %s369_s14 }
  0x49   : > { %s2835_s13 = scalar_lea.hbm %s3144_s11, 2048  ;;  %p2837_p0 = pneg %p3148_p11 }
  0x4a   : > { %p2836_p12 = scmp.ne.s32.totalorder %s3144_s11, %s2835_s13  ;;  %s2840_s29 = scalar_lea.hbm %s4297_s0, 4096 }
  0x4b   : > { %p2841_p13 = scmp.lt.u32.totalorder %s3144_s11, %s4297_s0  ;;  %p2842_p6 = scmp.lt.u32.totalorder %s2840_s29, %s2835_s13 }
  0x4c   : > { %p2838_p1 = pnand %p2837_p0, %p2836_p12  ;;  %p2844_p3 = scmp.lt.u32.totalorder %s2835_s13, %s3144_s11 }
  0x4d   : > { %p2843_p10 = por %p2842_p6, %p2841_p13 }
  0x4e   : > { %p2839_p2 = pneg %p2838_p1 }
  0x4f   : > { %p2845_p7 = por %p2844_p3, %p2843_p10 }
  0x51   : > { %p2846_p9 = pnand %p2845_p7, %p2839_p2 }
  0x53   : > { %2849 = shalt.err (!%p2846_p9)
}
  0x54   : > { %s2850_s22 = scalar_lea.vmem %s3146_s14, 2048  ;;  %s2941_s26 = smov [#allocation2]  }
  0x55   : > { %p2851_p12 = scmp.ne.s32.totalorder %s3146_s14, %s2850_s22  ;;  %s2855_s30 = sshll.u32 %s2941_s26, 4  ;;  %s2856_s30 = int_to_ptr.vmem [resolvable:$false] %s2855_s30 }
  0x56   : > { %s2857_s27 = scalar_lea.vmem %s2856_s30, 4096  ;;  %p2858_p4 = scmp.lt.s32.totalorder %s3146_s14, %s2856_s30 }
  0x57   : > { %p2853_p1 = pnand %p2851_p12, %p2837_p0  ;;  %p2859_p13 = scmp.lt.s32.totalorder %s2857_s27, %s2850_s22 }
  0x59   : > { %p2854_p5 = pneg %p2853_p1  ;;  %p2860_p6 = por %p2859_p13, %p2858_p4 }
  0x5b   : > { %p2861_p10 = pnand %p2860_p6, %p2854_p5 }
  0x5d   : > { %2864 = shalt.err (!%p2861_p10)
}
  0x5e   : > { %s4327_s13 = smov 4   ;;  %s4328_s29 = smov 64  }
  0x5f   : > { %2522 = dma.hbm_to_vmem [thread:$0]  (!%p3148_p11), %s3144_s11, 2048, %s3146_s14, %s3152_s12, %s4328_s29, %s4328_s29, %s4327_s13  }
  0x60   : > { %381 = sbr.rel (%p3045_p8) target bundleno = 1291 (0x50b), region = 64  ;;  %s3186_s17 = sand.u32 (!%p3045_p8), 1, %s2927_s18  }
  0x61   : > { %s2242_s22 = sshll.u32 (!%p3045_p8), %s3186_s17, 7  ;;  %s384_s26 = scalar_lea.sflag (!%p3045_p8), [#allocation3], %s3186_s17 }
  0x62   : > { %s3190_s30 = scalar_lea.vmem (!%p3045_p8), [#allocation2], %s2242_s22  ;;  %p4329_p4 = scmp.ne.s32.totalorder (!%p3045_p8), %s4319_s23, 0 }
  0x67   : > { %2910 = dma.done.wait (%p4329_p4), %s384_s26, 2048  }
  0x68   : > { %2912 = vsyncadd (%p4329_p4), %s384_s26, 4294965248  ;;  %p4330_p5 = scmp.eq.s32.totalorder %s3026_s21, 0 }
  0x6a   : > { %2914 = dma.done.wait (%p4330_p5), [#allocation6], 2048   ;;  %p4331_p8 = pmov %p4330_p5 }
  0x6b   : > { %v3201_v0 = vld [vmem:[%s3190_s30] sm:$0xff]   ;;  %v3204_v1 = vld [vmem:[%s3190_s30 + $0x8] sm:$0xff]   ;;  %v3215_v6 = vld [vmem:[%s3190_s30 + $0x10] sm:$0xff]   ;;  %s2245_s12 = sshll.u32 %s3186_s17, 8  ;;  %s2276_s27 = sshll.u32 %s3026_s21, 12 }
  0x6c   : > { %2916 = vsyncadd (%p4331_p8), [#allocation6], 4294965248  ;;  %v2279_v2 = vunpack.c.l.bf16 %v3201_v0  ;;  %v2283_v3 = vunpack.c.l.bf16 %v3204_v1  ;;  %v2280_v4 = vunpack.c.h.bf16 %v3201_v0  ;;  %v2284_v5 = vunpack.c.h.bf16 %v3204_v1  ;;  %v3218_v7 = vld [vmem:[%s3190_s30 + $0x18] sm:$0xff]   ;;  %v3227_v10 = vld [vmem:[%s3190_s30 + $0x20] sm:$0xff]   ;;  %s4182_s28 = scalar_lea.vmem [#allocation8], %s2245_s12  ;;  %s4332_s26 = sld [smem:[#allocation14_spill]] }
  0x6d   : > { %v2287_v8 = vunpack.c.l.bf16 %v3215_v6  ;;  %v2288_v9 = vunpack.c.h.bf16 %v3215_v6  ;;  %v2291_v11 = vunpack.c.l.bf16 %v3218_v7  ;;  %v2292_v12 = vunpack.c.h.bf16 %v3218_v7  ;;  %v3242_v15 = vld [vmem:[%s3190_s30 + $0x28] sm:$0xff]   ;;  %v3251_v18 = vld [vmem:[%s3190_s30 + $0x30] sm:$0xff]   ;;  %v3260_v21 = vld [vmem:[%s3190_s30 + $0x38] sm:$0xff]   ;;  %s2141_s13 = sshll.u32 %s4182_s28, 4  ;;  %s2128_s21 = scalar_lea.sflag [#allocation4], %s3186_s17  ;;  %s4249_s13 = int_to_ptr.vmem [resolvable:$true] %s2141_s13 }
  0x6e   : > { %501 = vadd.xlane.f32.xlu0 %v2279_v2  ;;  %505 = vadd.xlane.f32.xlu1 %v2283_v3  ;;  %v2295_v13 = vunpack.c.l.bf16 %v3227_v10  ;;  %v2296_v14 = vunpack.c.h.bf16 %v3227_v10  ;;  %v2299_v16 = vunpack.c.l.bf16 %v3242_v15  ;;  %v2300_v17 = vunpack.c.h.bf16 %v3242_v15  ;;  %v3269_v24 = vld [vmem:[%s3190_s30 + $0x40] sm:$0xff]   ;;  %v3278_v27 = vld [vmem:[%s3190_s30 + $0x48] sm:$0xff]   ;;  %v3287_v30 = vld [vmem:[%s3190_s30 + $0x50] sm:$0xff]   ;;  %s2865_s23 = scalar_lea.vmem %s4249_s13, 4096  ;;  %p4333_p0 = scmp.ne.s32.totalorder %s4325_s15, 0 }
  0x6f   : > { %v2303_v19 = vunpack.c.l.bf16 %v3251_v18  ;;  %v2304_v20 = vunpack.c.h.bf16 %v3251_v18  ;;  %v2307_v22 = vunpack.c.l.bf16 %v3260_v21  ;;  %v2308_v23 = vunpack.c.h.bf16 %v3260_v21  ;;  %v3296_v33 = vld [vmem:[%s3190_s30 + $0x58] sm:$0xff]   ;;  %v3305_v36 = vld [vmem:[%s3190_s30 + $0x60] sm:$0xff]   ;;  %v3314_v39 = vld [vmem:[%s3190_s30 + $0x68] sm:$0xff]   ;;  %p2866_p11 = scmp.ne.s32.totalorder %s4249_s13, %s2865_s23  ;;  %s2942_s25 = smov [#allocation8]  }
  0x70   : > { %v2311_v25 = vunpack.c.l.bf16 %v3269_v24  ;;  %v2312_v26 = vunpack.c.h.bf16 %v3269_v24  ;;  %v2315_v28 = vunpack.c.l.bf16 %v3278_v27  ;;  %v2316_v29 = vunpack.c.h.bf16 %v3278_v27  ;;  %v3323_v42 = vld [vmem:[%s3190_s30 + $0x70] sm:$0xff]   ;;  %v3332_v45 = vld [vmem:[%s3190_s30 + $0x78] sm:$0xff]   ;;  %v2571_v48 = vld [vmem:[#allocation5] sm:$0xff]   ;;  %s2869_s12 = sshll.u32 %s2942_s25, 4  ;;  %s2870_s12 = int_to_ptr.vmem [resolvable:$false] %s2869_s12 }
  0x71   : > { %v2319_v31 = vunpack.c.l.bf16 %v3287_v30  ;;  %v2320_v32 = vunpack.c.h.bf16 %v3287_v30  ;;  %v2323_v34 = vunpack.c.l.bf16 %v3296_v33  ;;  %v2324_v35 = vunpack.c.h.bf16 %v3296_v33  ;;  %2404 = vmatprep.subr.bf16.mxu0 %v2571_v48  ;;  %v3347_v53 = vld [vmem:[%s4298_s1] ss:$0 sm:$0xff]  ;;  %v2573_v18 = vld [vmem:[#allocation5 + $0x10] sm:$0xff]   ;;  %p2867_p2 = pnand %p2866_p11, %p4333_p0  ;;  %s2871_s11 = scalar_lea.vmem %s2870_s12, 8192 }
  0x72   : > { %503 = vadd.xlane.f32.xlu0 %v2280_v4  ;;  %507 = vadd.xlane.f32.xlu1 %v2284_v5  ;;  %v2327_v37 = vunpack.c.l.bf16 %v3305_v36  ;;  %v2328_v38 = vunpack.c.h.bf16 %v3305_v36  ;;  %v2331_v40 = vunpack.c.l.bf16 %v3314_v39  ;;  %v2332_v41 = vunpack.c.h.bf16 %v3314_v39  ;;  %s4247_s30 = scalar_lea.hbm %s4332_s26, %s2276_s27  ;;  %p2872_p7 = scmp.lt.s32.totalorder %s4249_s13, %s2870_s12 }
  0x73   : > { %v2335_v43 = vunpack.c.l.bf16 %v3323_v42  ;;  %v2336_v44 = vunpack.c.h.bf16 %v3323_v42  ;;  %v2339_v46 = vunpack.c.l.bf16 %v3332_v45  ;;  %v2340_v47 = vunpack.c.h.bf16 %v3332_v45  ;;  %2405 = vmatpush3.bf16.msra.mxu0 %v2571_v48  ;;  %p2868_p3 = pneg %p2867_p2  ;;  %p2873_p9 = scmp.lt.s32.totalorder %s2871_s11, %s2865_s23 }
  0x75   : > { %p2874_p12 = por %p2873_p9, %p2872_p7 }
  0x76   : > { %509 = vadd.xlane.f32.xlu0 %v2287_v8  ;;  %511 = vadd.xlane.f32.xlu1 %v2288_v9 }
  0x77   : > { %p2875_p1 = pnand %p2874_p12, %p2868_p3 }
  0x7a   : > { %513 = vadd.xlane.f32.xlu0 %v2291_v11  ;;  %515 = vadd.xlane.f32.xlu1 %v2292_v12 }
  0x7e   : > { %517 = vadd.xlane.f32.xlu0 %v2295_v13  ;;  %519 = vadd.xlane.f32.xlu1 %v2296_v14 }
  0x82   : > { %521 = vadd.xlane.f32.xlu0 %v2299_v16  ;;  %523 = vadd.xlane.f32.xlu1 %v2300_v17 }
  0x86   : > { %525 = vadd.xlane.f32.xlu0 %v2303_v19  ;;  %527 = vadd.xlane.f32.xlu1 %v2304_v20 }
  0x8a   : > { %529 = vadd.xlane.f32.xlu0 %v2307_v22  ;;  %531 = vadd.xlane.f32.xlu1 %v2308_v23 }
  0x8e   : > { %533 = vadd.xlane.f32.xlu0 %v2311_v25  ;;  %535 = vadd.xlane.f32.xlu1 %v2312_v26 }
  0x92   : > { %537 = vadd.xlane.f32.xlu0 %v2315_v28  ;;  %539 = vadd.xlane.f32.xlu1 %v2316_v29 }
  0x96   : > { %541 = vadd.xlane.f32.xlu0 %v2319_v31  ;;  %543 = vadd.xlane.f32.xlu1 %v2320_v32 }
  0x9a   : > { %545 = vadd.xlane.f32.xlu0 %v2323_v34  ;;  %547 = vadd.xlane.f32.xlu1 %v2324_v35 }
  0x9e   : > { %549 = vadd.xlane.f32.xlu0 %v2327_v37  ;;  %551 = vadd.xlane.f32.xlu1 %v2328_v38 }
  0xa2   : > { %553 = vadd.xlane.f32.xlu0 %v2331_v40  ;;  %555 = vadd.xlane.f32.xlu1 %v2332_v41 }
  0xa6   : > { %557 = vadd.xlane.f32.xlu0 %v2335_v43  ;;  %559 = vadd.xlane.f32.xlu1 %v2336_v44 }
  0xaa   : > { %561 = vadd.xlane.f32.xlu0 %v2339_v46  ;;  %563 = vadd.xlane.f32.xlu1 %v2340_v47 }
  0xfb   : > { %v502_v49 = vpop.xlane.xlu0 %501  ;;  %v506_v50 = vpop.xlane.xlu1 %505 }
  0xfc   : > { %v565_v51 = vmul.f32 0.03125, %v502_v49  ;;  %v567_v52 = vmul.f32 0.03125, %v506_v50 }
  0xfe   : > { %v597_v54 = vsub.f32 %v2279_v2, %v565_v51  ;;  %v599_v55 = vsub.f32 %v2283_v3, %v567_v52 }
  0xff   : > { %v504_v56 = vpop.xlane.xlu0 %503  ;;  %v508_v57 = vpop.xlane.xlu1 %507 }
 0x100   : > { %v566_v58 = vmul.f32 0.03125, %v504_v56  ;;  %v568_v59 = vmul.f32 0.03125, %v508_v57  ;;  %v3354_v60 = vmul.f32 %v3347_v53, %v597_v54  ;;  %v3357_v61 = vmul.f32 %v3347_v53, %v599_v55 }
 0x102   : > { %v598_v62 = vsub.f32 %v2280_v4, %v566_v58  ;;  %v600_v63 = vsub.f32 %v2284_v5, %v568_v59  ;;  %v668_v2 = vmul.f32 %v3354_v60, %v3354_v60  ;;  %v670_v49 = vmul.f32 %v3357_v61, %v3357_v61 }
 0x103   : > { %v510_v3 = vpop.xlane.xlu0 %509  ;;  %v512_v48 = vpop.xlane.xlu1 %511 }
 0x104   : > { %v569_v50 = vmul.f32 0.03125, %v510_v3  ;;  %700 = vadd.xlane.f32.xlu0 %v668_v2  ;;  %v570_v51 = vmul.f32 0.03125, %v512_v48  ;;  %v3368_v52 = vmul.f32 %v3347_v53, %v598_v62  ;;  %v3371_v0 = vmul.f32 %v3347_v53, %v600_v63 }
 0x106   : > { %v601_v1 = vsub.f32 %v2287_v8, %v569_v50  ;;  %v602_v4 = vsub.f32 %v2288_v9, %v570_v51  ;;  %v669_v5 = vmul.f32 %v3368_v52, %v3368_v52  ;;  %v671_v56 = vmul.f32 %v3371_v0, %v3371_v0 }
 0x107   : > { %v514_v54 = vpop.xlane.xlu0 %513  ;;  %v516_v55 = vpop.xlane.xlu1 %515 }
 0x108   : > { %v571_v57 = vmul.f32 0.03125, %v514_v54  ;;  %704 = vadd.xlane.f32.xlu0 %v670_v49  ;;  %702 = vadd.xlane.f32.xlu1 %v669_v5  ;;  %v572_v58 = vmul.f32 0.03125, %v516_v55  ;;  %v3382_v59 = vmul.f32 %v3347_v53, %v601_v1  ;;  %v3385_v8 = vmul.f32 %v3347_v53, %v602_v4 }
 0x10a   : > { %v603_v6 = vsub.f32 %v2291_v11, %v571_v57  ;;  %v604_v9 = vsub.f32 %v2292_v12, %v572_v58  ;;  %v672_v62 = vmul.f32 %v3382_v59, %v3382_v59  ;;  %v673_v3 = vmul.f32 %v3385_v8, %v3385_v8 }
 0x10b   : > { %v518_v63 = vpop.xlane.xlu0 %517  ;;  %v520_v2 = vpop.xlane.xlu1 %519 }
 0x10c   : > { %v573_v48 = vmul.f32 0.03125, %v518_v63  ;;  %706 = vadd.xlane.f32.xlu1 %v671_v56  ;;  %708 = vadd.xlane.f32.xlu0 %v672_v62  ;;  %v574_v49 = vmul.f32 0.03125, %v520_v2  ;;  %v3396_v50 = vmul.f32 %v3347_v53, %v603_v6  ;;  %v3399_v11 = vmul.f32 %v3347_v53, %v604_v9  ;;  %v2572_v62 = vld [vmem:[#allocation5 + $0x8] sm:$0xff]  }
 0x10d   : > { %2406 = vmatprep.subr.bf16.mxu0 %v2572_v62 }
 0x10e   : > { %v605_v7 = vsub.f32 %v2295_v13, %v573_v48  ;;  %v606_v12 = vsub.f32 %v2296_v14, %v574_v49  ;;  %v674_v51 = vmul.f32 %v3396_v50, %v3396_v50  ;;  %v675_v5 = vmul.f32 %v3399_v11, %v3399_v11  ;;  %2407 = vmatpush3.bf16.msra.mxu0 %v2572_v62 }
 0x10f   : > { %v522_v1 = vpop.xlane.xlu0 %521  ;;  %v524_v4 = vpop.xlane.xlu1 %523  ;;  %2408 = vmatprep.subr.bf16.mxu0 %v2573_v18 }
 0x110   : > { %v575_v54 = vmul.f32 0.03125, %v522_v1  ;;  %710 = vadd.xlane.f32.xlu1 %v673_v3  ;;  %712 = vadd.xlane.f32.xlu0 %v674_v51  ;;  %v576_v55 = vmul.f32 0.03125, %v524_v4  ;;  %v3410_v56 = vmul.f32 %v3347_v53, %v605_v7  ;;  %v3413_v13 = vmul.f32 %v3347_v53, %v606_v12 }
 0x112   : > { %v607_v10 = vsub.f32 %v2299_v16, %v575_v54  ;;  %v608_v14 = vsub.f32 %v2300_v17, %v576_v55  ;;  %v676_v57 = vmul.f32 %v3410_v56, %v3410_v56  ;;  %v677_v9 = vmul.f32 %v3413_v13, %v3413_v13  ;;  %2409 = vmatpush3.bf16.msra.mxu0 %v2573_v18 }
 0x113   : > { %v526_v58 = vpop.xlane.xlu0 %525  ;;  %v528_v6 = vpop.xlane.xlu1 %527 }
 0x114   : > { %v577_v63 = vmul.f32 0.03125, %v526_v58  ;;  %714 = vadd.xlane.f32.xlu1 %v675_v5  ;;  %716 = vadd.xlane.f32.xlu0 %v676_v57  ;;  %v578_v2 = vmul.f32 0.03125, %v528_v6  ;;  %v3424_v3 = vmul.f32 %v3347_v53, %v607_v10  ;;  %v3427_v16 = vmul.f32 %v3347_v53, %v608_v14 }
 0x116   : > { %v609_v15 = vsub.f32 %v2303_v19, %v577_v63  ;;  %v610_v17 = vsub.f32 %v2304_v20, %v578_v2  ;;  %v678_v48 = vmul.f32 %v3424_v3, %v3424_v3  ;;  %v679_v12 = vmul.f32 %v3427_v16, %v3427_v16 }
 0x117   : > { %v530_v49 = vpop.xlane.xlu0 %529  ;;  %v532_v7 = vpop.xlane.xlu1 %531 }
 0x118   : > { %v579_v51 = vmul.f32 0.03125, %v530_v49  ;;  %718 = vadd.xlane.f32.xlu1 %v677_v9  ;;  %720 = vadd.xlane.f32.xlu0 %v678_v48  ;;  %v580_v1 = vmul.f32 0.03125, %v532_v7  ;;  %v3438_v4 = vmul.f32 %v3347_v53, %v609_v15  ;;  %v3441_v19 = vmul.f32 %v3347_v53, %v610_v17 }
 0x11a   : > { %v611_v20 = vsub.f32 %v2307_v22, %v579_v51  ;;  %v612_v5 = vsub.f32 %v2308_v23, %v580_v1  ;;  %v680_v54 = vmul.f32 %v3438_v4, %v3438_v4  ;;  %v681_v14 = vmul.f32 %v3441_v19, %v3441_v19  ;;  %v2574_v22 = vld [vmem:[#allocation5 + $0x18] sm:$0xff]  }
 0x11b   : > { %v534_v55 = vpop.xlane.xlu0 %533  ;;  %v536_v10 = vpop.xlane.xlu1 %535  ;;  %2410 = vmatprep.subr.bf16.mxu0 %v2574_v22 }
 0x11c   : > { %v581_v57 = vmul.f32 0.03125, %v534_v55  ;;  %722 = vadd.xlane.f32.xlu1 %v679_v12  ;;  %724 = vadd.xlane.f32.xlu0 %v680_v54  ;;  %v582_v58 = vmul.f32 0.03125, %v536_v10  ;;  %v3452_v6 = vmul.f32 %v3347_v53, %v611_v20  ;;  %v3455_v21 = vmul.f32 %v3347_v53, %v612_v5 }
 0x11d   : > { %2411 = vmatpush3.bf16.msra.mxu0 %v2574_v22 }
 0x11e   : > { %v613_v23 = vsub.f32 %v2311_v25, %v581_v57  ;;  %v614_v9 = vsub.f32 %v2312_v26, %v582_v58  ;;  %v682_v62 = vmul.f32 %v3452_v6, %v3452_v6  ;;  %v683_v15 = vmul.f32 %v3455_v21, %v3455_v21  ;;  %v2575_v25 = vld [vmem:[#allocation5 + $0x20] sm:$0xff]  }
 0x11f   : > { %v538_v63 = vpop.xlane.xlu0 %537  ;;  %v540_v2 = vpop.xlane.xlu1 %539  ;;  %2412 = vmatprep.subr.bf16.mxu0 %v2575_v25 }
 0x120   : > { %v583_v17 = vmul.f32 0.03125, %v538_v63  ;;  %726 = vadd.xlane.f32.xlu1 %v681_v14  ;;  %728 = vadd.xlane.f32.xlu0 %v682_v62  ;;  %v584_v48 = vmul.f32 0.03125, %v540_v2  ;;  %v3466_v49 = vmul.f32 %v3347_v53, %v613_v23  ;;  %v3469_v24 = vmul.f32 %v3347_v53, %v614_v9 }
 0x121   : > { %2413 = vmatpush3.bf16.msra.mxu0 %v2575_v25 }
 0x122   : > { %v615_v26 = vsub.f32 %v2315_v28, %v583_v17  ;;  %v616_v7 = vsub.f32 %v2316_v29, %v584_v48  ;;  %v684_v12 = vmul.f32 %v3466_v49, %v3466_v49  ;;  %v685_v18 = vmul.f32 %v3469_v24, %v3469_v24  ;;  %v2576_v28 = vld [vmem:[#allocation5 + $0x28] sm:$0xff]  }
 0x123   : > { %v542_v51 = vpop.xlane.xlu0 %541  ;;  %v544_v1 = vpop.xlane.xlu1 %543  ;;  %2414 = vmatprep.subr.bf16.mxu0 %v2576_v28 }
 0x124   : > { %v585_v20 = vmul.f32 0.03125, %v542_v51  ;;  %730 = vadd.xlane.f32.xlu1 %v683_v15  ;;  %732 = vadd.xlane.f32.xlu0 %v684_v12  ;;  %v586_v5 = vmul.f32 0.03125, %v544_v1  ;;  %v3480_v54 = vmul.f32 %v3347_v53, %v615_v26  ;;  %v3483_v27 = vmul.f32 %v3347_v53, %v616_v7 }
 0x125   : > { %2415 = vmatpush3.bf16.msra.mxu0 %v2576_v28 }
 0x126   : > { %v617_v29 = vsub.f32 %v2319_v31, %v585_v20  ;;  %v618_v55 = vsub.f32 %v2320_v32, %v586_v5  ;;  %v686_v10 = vmul.f32 %v3480_v54, %v3480_v54  ;;  %v687_v58 = vmul.f32 %v3483_v27, %v3483_v27  ;;  %v2577_v31 = vld [vmem:[#allocation5 + $0x30] sm:$0xff]  }
 0x127   : > { %v546_v14 = vpop.xlane.xlu0 %545  ;;  %v548_v57 = vpop.xlane.xlu1 %547  ;;  %2416 = vmatprep.subr.bf16.mxu0 %v2577_v31 }
 0x128   : > { %v587_v22 = vmul.f32 0.03125, %v546_v14  ;;  %734 = vadd.xlane.f32.xlu1 %v685_v18  ;;  %736 = vadd.xlane.f32.xlu0 %v686_v10  ;;  %v588_v23 = vmul.f32 0.03125, %v548_v57  ;;  %v3494_v9 = vmul.f32 %v3347_v53, %v617_v29  ;;  %v3497_v30 = vmul.f32 %v3347_v53, %v618_v55 }
 0x129   : > { %2417 = vmatpush3.bf16.msra.mxu0 %v2577_v31 }
 0x12a   : > { %v619_v32 = vsub.f32 %v2323_v34, %v587_v22  ;;  %v620_v62 = vsub.f32 %v2324_v35, %v588_v23  ;;  %v688_v63 = vmul.f32 %v3494_v9, %v3494_v9  ;;  %v689_v17 = vmul.f32 %v3497_v30, %v3497_v30  ;;  %v2578_v34 = vld [vmem:[#allocation5 + $0x38] sm:$0xff]  }
 0x12b   : > { %v550_v2 = vpop.xlane.xlu0 %549  ;;  %v552_v15 = vpop.xlane.xlu1 %551  ;;  %2418 = vmatprep.subr.bf16.mxu0 %v2578_v34 }
 0x12c   : > { %v589_v48 = vmul.f32 0.03125, %v550_v2  ;;  %738 = vadd.xlane.f32.xlu1 %v687_v58  ;;  %740 = vadd.xlane.f32.xlu0 %v688_v63  ;;  %v590_v25 = vmul.f32 0.03125, %v552_v15  ;;  %v3508_v26 = vmul.f32 %v3347_v53, %v619_v32  ;;  %v3511_v33 = vmul.f32 %v3347_v53, %v620_v62 }
 0x12d   : > { %2419 = vmatpush3.bf16.msra.mxu0 %v2578_v34 }
 0x12e   : > { %v621_v35 = vsub.f32 %v2327_v37, %v589_v48  ;;  %v622_v7 = vsub.f32 %v2328_v38, %v590_v25  ;;  %v690_v12 = vmul.f32 %v3508_v26, %v3508_v26  ;;  %v691_v18 = vmul.f32 %v3511_v33, %v3511_v33 }
 0x12f   : > { %v554_v51 = vpop.xlane.xlu0 %553  ;;  %v556_v1 = vpop.xlane.xlu1 %555 }
 0x130   : > { %v591_v20 = vmul.f32 0.03125, %v554_v51  ;;  %742 = vadd.xlane.f32.xlu1 %v689_v17  ;;  %744 = vadd.xlane.f32.xlu0 %v690_v12  ;;  %v592_v5 = vmul.f32 0.03125, %v556_v1  ;;  %v3522_v28 = vmul.f32 %v3347_v53, %v621_v35  ;;  %v3525_v36 = vmul.f32 %v3347_v53, %v622_v7 }
 0x132   : > { %v623_v37 = vsub.f32 %v2331_v40, %v591_v20  ;;  %v624_v38 = vsub.f32 %v2332_v41, %v592_v5  ;;  %v692_v29 = vmul.f32 %v3522_v28, %v3522_v28  ;;  %v693_v14 = vmul.f32 %v3525_v36, %v3525_v36 }
 0x133   : > { %v558_v55 = vpop.xlane.xlu0 %557  ;;  %v560_v10 = vpop.xlane.xlu1 %559 }
 0x134   : > { %v593_v57 = vmul.f32 0.03125, %v558_v55  ;;  %746 = vadd.xlane.f32.xlu1 %v691_v18  ;;  %748 = vadd.xlane.f32.xlu0 %v692_v29  ;;  %v594_v58 = vmul.f32 0.03125, %v560_v10  ;;  %v3536_v22 = vmul.f32 %v3347_v53, %v623_v37  ;;  %v3539_v40 = vmul.f32 %v3347_v53, %v624_v38 }
 0x136   : > { %v625_v39 = vsub.f32 %v2335_v43, %v593_v57  ;;  %v626_v41 = vsub.f32 %v2336_v44, %v594_v58  ;;  %v694_v23 = vmul.f32 %v3536_v22, %v3536_v22  ;;  %v695_v62 = vmul.f32 %v3539_v40, %v3539_v40 }
 0x137   : > { %v562_v31 = vpop.xlane.xlu0 %561  ;;  %v564_v32 = vpop.xlane.xlu1 %563 }
 0x138   : > { %v595_v63 = vmul.f32 0.03125, %v562_v31  ;;  %750 = vadd.xlane.f32.xlu1 %v693_v14  ;;  %752 = vadd.xlane.f32.xlu0 %v694_v23  ;;  %v596_v2 = vmul.f32 0.03125, %v564_v32  ;;  %v3550_v15 = vmul.f32 %v3347_v53, %v625_v39  ;;  %v3553_v43 = vmul.f32 %v3347_v53, %v626_v41 }
 0x13a   : > { %v627_v42 = vsub.f32 %v2339_v46, %v595_v63  ;;  %v628_v44 = vsub.f32 %v2340_v47, %v596_v2  ;;  %v696_v17 = vmul.f32 %v3550_v15, %v3550_v15  ;;  %v697_v48 = vmul.f32 %v3553_v43, %v3553_v43 }
 0x13c   : > { %754 = vadd.xlane.f32.xlu1 %v695_v62  ;;  %756 = vadd.xlane.f32.xlu0 %v696_v17  ;;  %v3564_v25 = vmul.f32 %v3347_v53, %v627_v42  ;;  %v3567_v34 = vmul.f32 %v3347_v53, %v628_v44  ;;  %v3577_v44 = vld [vmem:[%s4299_s2] ss:$0 sm:$0xff] }
 0x13e   : > { %v698_v46 = vmul.f32 %v3564_v25, %v3564_v25  ;;  %v699_v45 = vmul.f32 %v3567_v34, %v3567_v34 }
 0x140   : > { %758 = vadd.xlane.f32.xlu1 %v697_v48  ;;  %760 = vadd.xlane.f32.xlu0 %v698_v46 }
 0x144   : > { %762 = vadd.xlane.f32.xlu1 %v699_v45 }
 0x191   : > { %v701_v47 = vpop.xlane.xlu0 %700 }
 0x192   : > { %v764_v35 = vmul.f32 0.03125, %v701_v47 }
 0x194   : > { %v796_v7 = vadd.f32 1e-05, %v764_v35 }
 0x195   : > { %v703_v12 = vpop.xlane.xlu1 %702  ;;  %v705_v51 = vpop.xlane.xlu0 %704 }
 0x196   : > { %2587 = vrsqrt.f32 %v796_v7  ;;  %v765_v1 = vmul.f32 0.03125, %v703_v12  ;;  %v766_v18 = vmul.f32 0.03125, %v705_v51 }
 0x198   : > { %v797_v20 = vadd.f32 1e-05, %v765_v1  ;;  %v798_v53 = vadd.f32 1e-05, %v766_v18  ;;  %v3584_v1 = vld [vmem:[%s4300_s3] ss:$0 sm:$0xff] }
 0x199   : > { %v707_v5 = vpop.xlane.xlu1 %706  ;;  %v709_v37 = vpop.xlane.xlu0 %708 }
 0x19a   : > { %2589 = vrsqrt.f32 %v797_v20  ;;  %v767_v38 = vmul.f32 0.03125, %v707_v5  ;;  %v768_v29 = vmul.f32 0.03125, %v709_v37 }
 0x19b   : > { %2591 = vrsqrt.f32 %v798_v53 }
 0x19c   : > { %v799_v55 = vadd.f32 1e-05, %v767_v38  ;;  %v800_v10 = vadd.f32 1e-05, %v768_v29 }
 0x19d   : > { %v711_v14 = vpop.xlane.xlu1 %710  ;;  %v713_v57 = vpop.xlane.xlu0 %712 }
 0x19e   : > { %2593 = vrsqrt.f32 %v799_v55  ;;  %v769_v58 = vmul.f32 0.03125, %v711_v14  ;;  %v770_v39 = vmul.f32 0.03125, %v713_v57 }
 0x19f   : > { %2595 = vrsqrt.f32 %v800_v10 }
 0x1a0   : > { %v2588_v41 = vpop.eup %2587  ;;  %v801_v23 = vadd.f32 1e-05, %v769_v58  ;;  %v802_v31 = vadd.f32 1e-05, %v770_v39 }
 0x1a1   : > { %v715_v32 = vpop.xlane.xlu1 %714  ;;  %v717_v62 = vpop.xlane.xlu0 %716  ;;  %v860_v63 = vmul.f32 %v2588_v41, %v3354_v60 }
 0x1a2   : > { %2597 = vrsqrt.f32 %v801_v23  ;;  %v771_v2 = vmul.f32 0.03125, %v715_v32  ;;  %v772_v42 = vmul.f32 0.03125, %v717_v62 }
 0x1a3   : > { %2599 = vrsqrt.f32 %v802_v31  ;;  %v899_v12 = vmul.f32 %v3577_v44, %v860_v63 }
 0x1a4   : > { %v2590_v17 = vpop.eup %2589  ;;  %v803_v48 = vadd.f32 1e-05, %v771_v2  ;;  %v804_v46 = vadd.f32 1e-05, %v772_v42 }
 0x1a5   : > { %v2592_v45 = vpop.eup %2591  ;;  %v719_v47 = vpop.xlane.xlu1 %718  ;;  %v861_v7 = vmul.f32 %v2590_v17, %v3368_v52  ;;  %v938_v55 = vadd.f32 %v3584_v1, %v899_v12 }
 0x1a6   : > { %v721_v35 = vpop.xlane.xlu0 %720  ;;  %2601 = vrsqrt.f32 %v803_v48  ;;  %v773_v60 = vmul.f32 0.03125, %v719_v47  ;;  %v862_v18 = vmul.f32 %v2592_v45, %v3357_v61 }
 0x1a7   : > { %v774_v51 = vmul.f32 0.03125, %v721_v35  ;;  %2603 = vrsqrt.f32 %v804_v46  ;;  %v900_v20 = vmul.f32 %v3577_v44, %v861_v7 }
 0x1a8   : > { %v2594_v53 = vpop.eup %2593  ;;  %v805_v5 = vadd.f32 1e-05, %v773_v60  ;;  %v901_v57 = vmul.f32 %v3577_v44, %v862_v18 }
 0x1a9   : > { %v806_v37 = vadd.f32 1e-05, %v774_v51  ;;  %v2596_v38 = vpop.eup %2595  ;;  %v723_v52 = vpop.xlane.xlu1 %722  ;;  %v939_v10 = vadd.f32 %v3584_v1, %v900_v20  ;;  %v863_v14 = vmul.f32 %v2594_v53, %v3371_v0 }
 0x1aa   : > { %v725_v29 = vpop.xlane.xlu0 %724  ;;  %2605 = vrsqrt.f32 %v805_v5  ;;  %v775_v58 = vmul.f32 0.03125, %v723_v52  ;;  %v864_v23 = vmul.f32 %v2596_v38, %v3382_v59  ;;  %v940_v0 = vadd.f32 %v3584_v1, %v901_v57 }
 0x1ab   : > { %v776_v61 = vmul.f32 0.03125, %v725_v29  ;;  %2607 = vrsqrt.f32 %v806_v37  ;;  %v970_v39 = vpack.c.bf16 %v939_v10, %v938_v55  ;;  %v902_v41 = vmul.f32 %v3577_v44, %v863_v14 }
 0x1ac   : > { %v2598_v31 = vpop.eup %2597  ;;  %v807_v32 = vadd.f32 1e-05, %v775_v58  ;;  %v903_v46 = vmul.f32 %v3577_v44, %v864_v23 }
 0x1ad   : > { %v808_v62 = vadd.f32 1e-05, %v776_v61  ;;  %v2600_v63 = vpop.eup %2599  ;;  %v727_v2 = vpop.xlane.xlu1 %726  ;;  %2420 = vmatprep.mubr.bf16.mxu0 %v970_v39  ;;  %v941_v17 = vadd.f32 %v3584_v1, %v902_v41  ;;  %v865_v48 = vmul.f32 %v2598_v31, %v3385_v8 }
 0x1ae   : > { %v729_v42 = vpop.xlane.xlu0 %728  ;;  %2609 = vrsqrt.f32 %v807_v32  ;;  %v777_v45 = vmul.f32 0.03125, %v727_v2  ;;  %v866_v59 = vmul.f32 %v2600_v63, %v3396_v50  ;;  %v942_v8 = vadd.f32 %v3584_v1, %v903_v46 }
 0x1af   : > { %v778_v47 = vmul.f32 0.03125, %v729_v42  ;;  %2611 = vrsqrt.f32 %v808_v62  ;;  %v971_v35 = vpack.c.bf16 %v941_v17, %v940_v0  ;;  %v904_v7 = vmul.f32 %v3577_v44, %v865_v48 }
 0x1b0   : > { %v2602_v12 = vpop.eup %2601  ;;  %v809_v60 = vadd.f32 1e-05, %v777_v45  ;;  %v905_v38 = vmul.f32 %v3577_v44, %v866_v59 }
 0x1b1   : > { %v810_v51 = vadd.f32 1e-05, %v778_v47  ;;  %v2604_v18 = vpop.eup %2603  ;;  %v731_v20 = vpop.xlane.xlu1 %730  ;;  %2421 = vmatmul.mubr.bf16.vlgmr.msra.gmra.mrb[0].mxu0 %v971_v35  ;;  %v943_v5 = vadd.f32 %v3584_v1, %v904_v7  ;;  %v867_v37 = vmul.f32 %v2602_v12, %v3399_v11 }
 0x1b2   : > { %v733_v53 = vpop.xlane.xlu0 %732  ;;  %2613 = vrsqrt.f32 %v809_v60  ;;  %v779_v50 = vmul.f32 0.03125, %v731_v20  ;;  %v868_v10 = vmul.f32 %v2604_v18, %v3410_v56  ;;  %v944_v11 = vadd.f32 %v3584_v1, %v905_v38 }
 0x1b3   : > { %v780_v52 = vmul.f32 0.03125, %v733_v53  ;;  %2615 = vrsqrt.f32 %v810_v51  ;;  %v972_v29 = vpack.c.bf16 %v943_v5, %v942_v8  ;;  %v906_v55 = vmul.f32 %v3577_v44, %v867_v37 }
 0x1b4   : > { %v2606_v14 = vpop.eup %2605  ;;  %v811_v57 = vadd.f32 1e-05, %v779_v50  ;;  %v907_v32 = vmul.f32 %v3577_v44, %v868_v10 }
 0x1b5   : > { %v812_v58 = vadd.f32 1e-05, %v780_v52  ;;  %v2608_v61 = vpop.eup %2607  ;;  %v735_v39 = vpop.xlane.xlu1 %734  ;;  %2424 = vmatprep.mubr.bf16.mxu0 %v972_v29  ;;  %v945_v23 = vadd.f32 %v3584_v1, %v906_v55  ;;  %v869_v31 = vmul.f32 %v2606_v14, %v3413_v13 }
 0x1b6   : > { %v737_v41 = vpop.xlane.xlu0 %736  ;;  %2617 = vrsqrt.f32 %v811_v57  ;;  %v781_v62 = vmul.f32 0.03125, %v735_v39  ;;  %v870_v56 = vmul.f32 %v2608_v61, %v3424_v3  ;;  %v946_v13 = vadd.f32 %v3584_v1, %v907_v32 }
 0x1b7   : > { %v782_v63 = vmul.f32 0.03125, %v737_v41  ;;  %2619 = vrsqrt.f32 %v812_v58  ;;  %v973_v2 = vpack.c.bf16 %v945_v23, %v944_v11  ;;  %v908_v42 = vmul.f32 %v3577_v44, %v869_v31 }
 0x1b8   : > { %v2610_v0 = vpop.eup %2609  ;;  %v813_v17 = vadd.f32 1e-05, %v781_v62  ;;  %v909_v7 = vmul.f32 %v3577_v44, %v870_v56 }
 0x1b9   : > { %v814_v48 = vadd.f32 1e-05, %v782_v63  ;;  %v2612_v46 = vpop.eup %2611  ;;  %v739_v45 = vpop.xlane.xlu1 %738  ;;  %2425 = vmatmul.mubr.bf16.gmra.mrb[4].mxu0 %v973_v2  ;;  %v947_v59 = vadd.f32 %v3584_v1, %v908_v42  ;;  %v871_v35 = vmul.f32 %v2610_v0, %v3427_v16 }
 0x1ba   : > { %v741_v47 = vpop.xlane.xlu0 %740  ;;  %2621 = vrsqrt.f32 %v813_v17  ;;  %v783_v3 = vmul.f32 0.03125, %v739_v45  ;;  %v872_v18 = vmul.f32 %v2612_v46, %v3438_v4  ;;  %v948_v16 = vadd.f32 %v3584_v1, %v909_v7 }
 0x1bb   : > { %v784_v12 = vmul.f32 0.03125, %v741_v47  ;;  %2623 = vrsqrt.f32 %v814_v48  ;;  %v974_v60 = vpack.c.bf16 %v947_v59, %v946_v13  ;;  %v910_v51 = vmul.f32 %v3577_v44, %v871_v35 }
 0x1bc   : > { %v2614_v20 = vpop.eup %2613  ;;  %v815_v53 = vadd.f32 1e-05, %v783_v3  ;;  %v911_v29 = vmul.f32 %v3577_v44, %v872_v18 }
 0x1bd   : > { %v816_v8 = vadd.f32 1e-05, %v784_v12  ;;  %v2616_v5 = vpop.eup %2615  ;;  %v743_v37 = vpop.xlane.xlu1 %742  ;;  %2428 = vmatprep.mubr.bf16.mxu0 %v974_v60  ;;  %v949_v50 = vadd.f32 %v3584_v1, %v910_v51  ;;  %v873_v52 = vmul.f32 %v2614_v20, %v3441_v19 }
 0x1be   : > { %v745_v38 = vpop.xlane.xlu0 %744  ;;  %2625 = vrsqrt.f32 %v815_v53  ;;  %v785_v55 = vmul.f32 0.03125, %v743_v37  ;;  %v874_v4 = vmul.f32 %v2616_v5, %v3452_v6  ;;  %v950_v19 = vadd.f32 %v3584_v1, %v911_v29 }
 0x1bf   : > { %v786_v10 = vmul.f32 0.03125, %v745_v38  ;;  %2627 = vrsqrt.f32 %v816_v8  ;;  %v975_v14 = vpack.c.bf16 %v949_v50, %v948_v16  ;;  %v912_v57 = vmul.f32 %v3577_v44, %v873_v52 }
 0x1c0   : > { %v2618_v58 = vpop.eup %2617  ;;  %v817_v61 = vadd.f32 1e-05, %v785_v55  ;;  %v913_v62 = vmul.f32 %v3577_v44, %v874_v4 }
 0x1c1   : > { %v818_v39 = vadd.f32 1e-05, %v786_v10  ;;  %v2620_v41 = vpop.eup %2619  ;;  %v747_v11 = vpop.xlane.xlu1 %746  ;;  %2429 = vmatmul.mubr.bf16.gmra.mrb[8].mxu0 %v975_v14  ;;  %v951_v31 = vadd.f32 %v3584_v1, %v912_v57  ;;  %v875_v32 = vmul.f32 %v2618_v58, %v3455_v21 }
 0x1c2   : > { %v749_v23 = vpop.xlane.xlu0 %748  ;;  %2629 = vrsqrt.f32 %v817_v61  ;;  %v787_v6 = vmul.f32 0.03125, %v747_v11  ;;  %v876_v42 = vmul.f32 %v2620_v41, %v3466_v49  ;;  %v952_v21 = vadd.f32 %v3584_v1, %v913_v62 }
 0x1c3   : > { %v788_v63 = vmul.f32 0.03125, %v749_v23  ;;  %2631 = vrsqrt.f32 %v818_v39  ;;  %v976_v56 = vpack.c.bf16 %v951_v31, %v950_v19  ;;  %v914_v2 = vmul.f32 %v3577_v44, %v875_v32 }
 0x1c4   : > { %v2622_v0 = vpop.eup %2621  ;;  %v819_v17 = vadd.f32 1e-05, %v787_v6  ;;  %v915_v35 = vmul.f32 %v3577_v44, %v876_v42 }
 0x1c5   : > { %v820_v48 = vadd.f32 1e-05, %v788_v63  ;;  %v2624_v46 = vpop.eup %2623  ;;  %v751_v45 = vpop.xlane.xlu1 %750  ;;  %2432 = vmatprep.mubr.bf16.mxu0 %v976_v56  ;;  %v953_v13 = vadd.f32 %v3584_v1, %v914_v2  ;;  %v877_v59 = vmul.f32 %v2622_v0, %v3469_v24 }
 0x1c6   : > { %v753_v47 = vpop.xlane.xlu0 %752  ;;  %2633 = vrsqrt.f32 %v819_v17  ;;  %v789_v7 = vmul.f32 0.03125, %v751_v45  ;;  %v878_v49 = vmul.f32 %v2624_v46, %v3480_v54  ;;  %v954_v24 = vadd.f32 %v3584_v1, %v915_v35 }
 0x1c7   : > { %v790_v3 = vmul.f32 0.03125, %v753_v47  ;;  %2635 = vrsqrt.f32 %v820_v48  ;;  %v977_v12 = vpack.c.bf16 %v953_v13, %v952_v21  ;;  %v916_v60 = vmul.f32 %v3577_v44, %v877_v59 }
 0x1c8   : > { %v2626_v51 = vpop.eup %2625  ;;  %v821_v18 = vadd.f32 1e-05, %v789_v7  ;;  %v917_v16 = vmul.f32 %v3577_v44, %v878_v49 }
 0x1c9   : > { %v822_v20 = vadd.f32 1e-05, %v790_v3  ;;  %v2628_v53 = vpop.eup %2627  ;;  %v755_v8 = vpop.xlane.xlu1 %754  ;;  %2433 = vmatmul.mubr.bf16.gmra.mrb[12].mxu0 %v977_v12  ;;  %v955_v37 = vadd.f32 %v3584_v1, %v916_v60  ;;  %v879_v38 = vmul.f32 %v2626_v51, %v3483_v27 }
 0x1ca   : > { %v757_v5 = vpop.xlane.xlu0 %756  ;;  %2637 = vrsqrt.f32 %v821_v18  ;;  %v791_v54 = vmul.f32 0.03125, %v755_v8  ;;  %v880_v55 = vmul.f32 %v2628_v53, %v3494_v9  ;;  %v956_v27 = vadd.f32 %v3584_v1, %v917_v16 }
 0x1cb   : > { %v792_v50 = vmul.f32 0.03125, %v757_v5  ;;  %2639 = vrsqrt.f32 %v822_v20  ;;  %v978_v52 = vpack.c.bf16 %v955_v37, %v954_v24  ;;  %v918_v29 = vmul.f32 %v3577_v44, %v879_v38 }
 0x1cc   : > { %v2630_v10 = vpop.eup %2629  ;;  %v823_v4 = vadd.f32 1e-05, %v791_v54  ;;  %v919_v11 = vmul.f32 %v3577_v44, %v880_v55 }
 0x1cd   : > { %v824_v14 = vadd.f32 1e-05, %v792_v50  ;;  %v2632_v57 = vpop.eup %2631  ;;  %v759_v58 = vpop.xlane.xlu1 %758  ;;  %2436 = vmatprep.mubr.bf16.mxu0 %v978_v52  ;;  %v957_v39 = vadd.f32 %v3584_v1, %v918_v29  ;;  %v881_v41 = vmul.f32 %v2630_v10, %v3497_v30 }
 0x1ce   : > { %v761_v61 = vpop.xlane.xlu0 %760  ;;  %2641 = vrsqrt.f32 %v823_v4  ;;  %v793_v23 = vmul.f32 0.03125, %v759_v58  ;;  %v882_v9 = vmul.f32 %v2632_v57, %v3508_v26  ;;  %v958_v42 = vadd.f32 %v3584_v1, %v919_v11 }
 0x1cf   : > { %v794_v19 = vmul.f32 0.03125, %v761_v61  ;;  %2643 = vrsqrt.f32 %v824_v14  ;;  %v979_v31 = vpack.c.bf16 %v957_v39, %v956_v27  ;;  %v920_v32 = vmul.f32 %v3577_v44, %v881_v41  ;;  %v3682_v61 = vld [vmem:[%s4302_s5] ss:$0 sm:$0xff] }
 0x1d0   : > { %v2634_v62 = vpop.eup %2633  ;;  %v825_v6 = vadd.f32 1e-05, %v793_v23  ;;  %v921_v17 = vmul.f32 %v3577_v44, %v882_v9 }
 0x1d1   : > { %v826_v63 = vadd.f32 1e-05, %v794_v19  ;;  %v2636_v56 = vpop.eup %2635  ;;  %v763_v2 = vpop.xlane.xlu1 %762  ;;  %2437 = vmatmul.mubr.bf16.gmra.mrb[16].mxu0 %v979_v31  ;;  %v959_v30 = vadd.f32 %v3584_v1, %v920_v32  ;;  %v883_v0 = vmul.f32 %v2634_v62, %v3511_v33 }
 0x1d2   : > { %2645 = vrsqrt.f32 %v825_v6  ;;  %v795_v26 = vmul.f32 0.03125, %v763_v2  ;;  %v884_v48 = vmul.f32 %v2636_v56, %v3522_v28  ;;  %v960_v59 = vadd.f32 %v3584_v1, %v921_v17 }
 0x1d3   : > { %2647 = vrsqrt.f32 %v826_v63  ;;  %v980_v46 = vpack.c.bf16 %v959_v30, %v958_v42  ;;  %v922_v45 = vmul.f32 %v3577_v44, %v883_v0 }
 0x1d4   : > { %v2638_v47 = vpop.eup %2637  ;;  %v827_v21 = vadd.f32 1e-05, %v795_v26  ;;  %v923_v7 = vmul.f32 %v3577_v44, %v884_v48 }
 0x1d5   : > { %v2640_v13 = vpop.eup %2639  ;;  %2440 = vmatprep.mubr.bf16.mxu0 %v980_v46  ;;  %v961_v35 = vadd.f32 %v3584_v1, %v922_v45  ;;  %v885_v33 = vmul.f32 %v2638_v47, %v3525_v36 }
 0x1d6   : > { %2649 = vrsqrt.f32 %v827_v21  ;;  %v886_v3 = vmul.f32 %v2640_v13, %v3536_v22  ;;  %v962_v51 = vadd.f32 %v3584_v1, %v923_v7 }
 0x1d7   : > { %v981_v28 = vpack.c.bf16 %v961_v35, %v960_v59  ;;  %v924_v49 = vmul.f32 %v3577_v44, %v885_v33 }
 0x1d8   : > { %v2642_v12 = vpop.eup %2641  ;;  %v925_v53 = vmul.f32 %v3577_v44, %v886_v3 }
 0x1d9   : > { %v2644_v60 = vpop.eup %2643  ;;  %2441 = vmatmul.mubr.bf16.gmra.mrb[20].mxu0 %v981_v28  ;;  %v963_v18 = vadd.f32 %v3584_v1, %v924_v49  ;;  %v887_v20 = vmul.f32 %v2642_v12, %v3539_v40 }
 0x1da   : > { %v888_v36 = vmul.f32 %v2644_v60, %v3550_v15  ;;  %v964_v37 = vadd.f32 %v3584_v1, %v925_v53 }
 0x1db   : > { %v982_v8 = vpack.c.bf16 %v963_v18, %v962_v51  ;;  %v926_v5 = vmul.f32 %v3577_v44, %v887_v20 }
 0x1dc   : > { %v2646_v22 = vpop.eup %2645  ;;  %v927_v54 = vmul.f32 %v3577_v44, %v888_v36 }
 0x1dd   : > { %v2648_v24 = vpop.eup %2647  ;;  %2444 = vmatprep.mubr.bf16.mxu0 %v982_v8  ;;  %v965_v38 = vadd.f32 %v3584_v1, %v926_v5  ;;  %v889_v16 = vmul.f32 %v2646_v22, %v3553_v43 }
 0x1de   : > { %v890_v40 = vmul.f32 %v2648_v24, %v3564_v25  ;;  %v966_v29 = vadd.f32 %v3584_v1, %v927_v54 }
 0x1df   : > { %v983_v50 = vpack.c.bf16 %v965_v38, %v964_v37  ;;  %v928_v52 = vmul.f32 %v3577_v44, %v889_v16 }
 0x1e0   : > { %v2650_v15 = vpop.eup %2649  ;;  %v929_v4 = vmul.f32 %v3577_v44, %v890_v40 }
 0x1e1   : > { %2445 = vmatmul.mubr.bf16.gmra.mrb[24].mxu0 %v983_v50  ;;  %v967_v55 = vadd.f32 %v3584_v1, %v928_v52  ;;  %v891_v10 = vmul.f32 %v2650_v15, %v3567_v34 }
 0x1e2   : > { %v968_v57 = vadd.f32 %v3584_v1, %v929_v4 }
 0x1e3   : > { %v984_v14 = vpack.c.bf16 %v967_v55, %v966_v29  ;;  %v930_v43 = vmul.f32 %v3577_v44, %v891_v10 }
 0x1e5   : > { %2448 = vmatprep.mubr.bf16.mxu0 %v984_v14  ;;  %v969_v25 = vadd.f32 %v3584_v1, %v930_v43 }
 0x1e7   : > { %v985_v58 = vpack.c.bf16 %v969_v25, %v968_v57 }
 0x1e9   : > { %2449 = vmatmul.mubr.bf16.gmra.mrb[28].mxu0 %v985_v58 }
 0x284   : > { %v2422_v27 = vpop.f32.mrb[0].mxu0 }
 0x285   : > { %v1091_v39 = vpop.f32.mrb[1].mxu0  ;;  %v3692_v1 = vadd.f32 %v2422_v27, %v3682_v61 }
 0x286   : > { %v3685_v34 = vadd.f32 %v3682_v61, %v1091_v39  ;;  %v2423_v41 = vpop.f32.mrb[2].mxu0 }
 0x287   : > { %v1094_v11 = vpop.f32.mrb[3].mxu0  ;;  %v3696_v23 = vadd.f32 %v2423_v41, %v3682_v61 }
 0x288   : > { %v3688_v44 = vadd.f32 %v3682_v61, %v1094_v11  ;;  %1218 = vadd.xlane.f32.xlu0 %v3685_v34 }
 0x28a   : > { %1220 = vadd.xlane.f32.xlu1 %v3688_v44 }
 0x28c   : > { %1222 = vadd.xlane.f32.xlu0 %v3692_v1  ;;  %v2426_v19 = vpop.f32.mrb[4].mxu0 }
 0x28d   : > { %v1107_v9 = vpop.f32.mrb[5].mxu0  ;;  %v3708_v63 = vadd.f32 %v2426_v19, %v3682_v61  ;;  %v3815_v19 = vld [vmem:[%s4303_s6] ss:$0 sm:$0xff] }
 0x28e   : > { %v3700_v31 = vadd.f32 %v3682_v61, %v1107_v9  ;;  %1224 = vadd.xlane.f32.xlu1 %v3696_v23  ;;  %v2427_v32 = vpop.f32.mrb[6].mxu0 }
 0x28f   : > { %v1110_v62 = vpop.f32.mrb[7].mxu0  ;;  %v3712_v56 = vadd.f32 %v2427_v32, %v3682_v61 }
 0x290   : > { %v3704_v6 = vadd.f32 %v3682_v61, %v1110_v62  ;;  %1226 = vadd.xlane.f32.xlu0 %v3700_v31 }
 0x292   : > { %1228 = vadd.xlane.f32.xlu1 %v3704_v6 }
 0x294   : > { %1230 = vadd.xlane.f32.xlu0 %v3708_v63  ;;  %v2430_v2 = vpop.f32.mrb[8].mxu0 }
 0x295   : > { %v1123_v42 = vpop.f32.mrb[9].mxu0  ;;  %v3724_v48 = vadd.f32 %v2430_v2, %v3682_v61 }
 0x296   : > { %v3716_v30 = vadd.f32 %v3682_v61, %v1123_v42  ;;  %1232 = vadd.xlane.f32.xlu1 %v3712_v56  ;;  %v2431_v0 = vpop.f32.mrb[10].mxu0 }
 0x297   : > { %v1126_v17 = vpop.f32.mrb[11].mxu0  ;;  %v3728_v46 = vadd.f32 %v2431_v0, %v3682_v61 }
 0x298   : > { %v3720_v26 = vadd.f32 %v3682_v61, %v1126_v17  ;;  %1234 = vadd.xlane.f32.xlu0 %v3716_v30 }
 0x29a   : > { %1236 = vadd.xlane.f32.xlu1 %v3720_v26 }
 0x29c   : > { %1238 = vadd.xlane.f32.xlu0 %v3724_v48  ;;  %v2434_v45 = vpop.f32.mrb[12].mxu0 }
 0x29d   : > { %v1139_v47 = vpop.f32.mrb[13].mxu0  ;;  %v3740_v33 = vadd.f32 %v2434_v45, %v3682_v61 }
 0x29e   : > { %v3732_v21 = vadd.f32 %v3682_v61, %v1139_v47  ;;  %1240 = vadd.xlane.f32.xlu1 %v3728_v46  ;;  %v2435_v13 = vpop.f32.mrb[14].mxu0 }
 0x29f   : > { %v1142_v59 = vpop.f32.mrb[15].mxu0  ;;  %v3744_v7 = vadd.f32 %v2435_v13, %v3682_v61 }
 0x2a0   : > { %v3736_v35 = vadd.f32 %v3682_v61, %v1142_v59  ;;  %1242 = vadd.xlane.f32.xlu0 %v3732_v21 }
 0x2a2   : > { %1244 = vadd.xlane.f32.xlu1 %v3736_v35 }
 0x2a4   : > { %1246 = vadd.xlane.f32.xlu0 %v3740_v33  ;;  %v2438_v3 = vpop.f32.mrb[16].mxu0 }
 0x2a5   : > { %v1155_v28 = vpop.f32.mrb[17].mxu0  ;;  %v3756_v18 = vadd.f32 %v2438_v3, %v3682_v61 }
 0x2a6   : > { %v3748_v49 = vadd.f32 %v3682_v61, %v1155_v28  ;;  %1248 = vadd.xlane.f32.xlu1 %v3744_v7  ;;  %v2439_v12 = vpop.f32.mrb[18].mxu0 }
 0x2a7   : > { %v1158_v60 = vpop.f32.mrb[19].mxu0  ;;  %v3760_v20 = vadd.f32 %v2439_v12, %v3682_v61 }
 0x2a8   : > { %v3752_v51 = vadd.f32 %v3682_v61, %v1158_v60  ;;  %1250 = vadd.xlane.f32.xlu0 %v3748_v49 }
 0x2aa   : > { %1252 = vadd.xlane.f32.xlu1 %v3752_v51 }
 0x2ac   : > { %1254 = vadd.xlane.f32.xlu0 %v3756_v18  ;;  %v2442_v53 = vpop.f32.mrb[20].mxu0 }
 0x2ad   : > { %v1171_v36 = vpop.f32.mrb[21].mxu0  ;;  %v3772_v37 = vadd.f32 %v2442_v53, %v3682_v61 }
 0x2ae   : > { %v3764_v8 = vadd.f32 %v3682_v61, %v1171_v36  ;;  %1256 = vadd.xlane.f32.xlu1 %v3760_v20  ;;  %v2443_v5 = vpop.f32.mrb[22].mxu0 }
 0x2af   : > { %v1174_v22 = vpop.f32.mrb[23].mxu0  ;;  %v3776_v38 = vadd.f32 %v2443_v5, %v3682_v61 }
 0x2b0   : > { %v3768_v24 = vadd.f32 %v3682_v61, %v1174_v22  ;;  %1258 = vadd.xlane.f32.xlu0 %v3764_v8 }
 0x2b2   : > { %1260 = vadd.xlane.f32.xlu1 %v3768_v24 }
 0x2b4   : > { %1262 = vadd.xlane.f32.xlu0 %v3772_v37  ;;  %v2446_v16 = vpop.f32.mrb[24].mxu0 }
 0x2b5   : > { %v1187_v54 = vpop.f32.mrb[25].mxu0  ;;  %v3788_v29 = vadd.f32 %v2446_v16, %v3682_v61 }
 0x2b6   : > { %v3780_v40 = vadd.f32 %v3682_v61, %v1187_v54  ;;  %1264 = vadd.xlane.f32.xlu1 %v3776_v38  ;;  %v2447_v50 = vpop.f32.mrb[26].mxu0 }
 0x2b7   : > { %v1190_v52 = vpop.f32.mrb[27].mxu0  ;;  %v3792_v55 = vadd.f32 %v2447_v50, %v3682_v61 }
 0x2b8   : > { %v3784_v15 = vadd.f32 %v3682_v61, %v1190_v52  ;;  %1266 = vadd.xlane.f32.xlu0 %v3780_v40 }
 0x2ba   : > { %1268 = vadd.xlane.f32.xlu1 %v3784_v15 }
 0x2bc   : > { %1270 = vadd.xlane.f32.xlu0 %v3788_v29  ;;  %v2450_v10 = vpop.f32.mrb[28].mxu0 }
 0x2bd   : > { %v1203_v4 = vpop.f32.mrb[29].mxu0  ;;  %v3804_v58 = vadd.f32 %v2450_v10, %v3682_v61 }
 0x2be   : > { %v3796_v14 = vadd.f32 %v3682_v61, %v1203_v4  ;;  %1272 = vadd.xlane.f32.xlu1 %v3792_v55  ;;  %v2451_v43 = vpop.f32.mrb[30].mxu0 }
 0x2bf   : > { %v1206_v57 = vpop.f32.mrb[31].mxu0  ;;  %v3808_v27 = vadd.f32 %v2451_v43, %v3682_v61 }
 0x2c0   : > { %v3800_v25 = vadd.f32 %v3682_v61, %v1206_v57  ;;  %1274 = vadd.xlane.f32.xlu0 %v3796_v14 }
 0x2c2   : > { %1276 = vadd.xlane.f32.xlu1 %v3800_v25 }
 0x2c4   : > { %1278 = vadd.xlane.f32.xlu0 %v3804_v58 }
 0x2c6   : > { %1280 = vadd.xlane.f32.xlu1 %v3808_v27 }
 0x315   : > { %v1219_v39 = vpop.xlane.xlu0 %1218 }
 0x316   : > { %v1282_v41 = vmul.f32 0.015625, %v1219_v39 }
 0x317   : > { %v1221_v11 = vpop.xlane.xlu1 %1220 }
 0x318   : > { %v1314_v9 = vsub.f32 %v3685_v34, %v1282_v41  ;;  %v1283_v32 = vmul.f32 0.015625, %v1221_v11 }
 0x319   : > { %v1223_v62 = vpop.xlane.xlu0 %1222 }
 0x31a   : > { %v1315_v2 = vsub.f32 %v3688_v44, %v1283_v32  ;;  %v1284_v61 = vmul.f32 0.015625, %v1223_v62  ;;  %v3820_v42 = vmul.f32 %v3815_v19, %v1314_v9 }
 0x31b   : > { %v1225_v0 = vpop.xlane.xlu1 %1224 }
 0x31c   : > { %v1316_v17 = vsub.f32 %v3692_v1, %v1284_v61  ;;  %v1285_v45 = vmul.f32 0.015625, %v1225_v0  ;;  %v1385_v47 = vmul.f32 %v3820_v42, %v3820_v42  ;;  %v3826_v13 = vmul.f32 %v3815_v19, %v1315_v2 }
 0x31d   : > { %v1227_v59 = vpop.xlane.xlu0 %1226 }
 0x31e   : > { %v3829_v34 = vmul.f32 %v3815_v19, %v1316_v17  ;;  %v1317_v44 = vsub.f32 %v3696_v23, %v1285_v45  ;;  %v1286_v3 = vmul.f32 0.015625, %v1227_v59  ;;  %1417 = vadd.xlane.f32.xlu0 %v1385_v47  ;;  %v1386_v28 = vmul.f32 %v3826_v13, %v3826_v13 }
 0x31f   : > { %v1229_v12 = vpop.xlane.xlu1 %1228 }
 0x320   : > { %v3835_v1 = vmul.f32 %v3815_v19, %v1317_v44  ;;  %v1318_v60 = vsub.f32 %v3700_v31, %v1286_v3  ;;  %v1287_v53 = vmul.f32 0.015625, %v1229_v12  ;;  %1419 = vadd.xlane.f32.xlu1 %v1386_v28  ;;  %v1387_v36 = vmul.f32 %v3829_v34, %v3829_v34 }
 0x321   : > { %v1231_v5 = vpop.xlane.xlu0 %1230 }
 0x322   : > { %v3841_v22 = vmul.f32 %v3815_v19, %v1318_v60  ;;  %v1319_v23 = vsub.f32 %v3704_v6, %v1287_v53  ;;  %v1288_v16 = vmul.f32 0.015625, %v1231_v5  ;;  %1421 = vadd.xlane.f32.xlu0 %v1387_v36  ;;  %v1388_v54 = vmul.f32 %v3835_v1, %v3835_v1 }
 0x323   : > { %v1233_v50 = vpop.xlane.xlu1 %1232 }
 0x324   : > { %v3847_v52 = vmul.f32 %v3815_v19, %v1319_v23  ;;  %v1320_v31 = vsub.f32 %v3708_v63, %v1288_v16  ;;  %v1289_v10 = vmul.f32 0.015625, %v1233_v50  ;;  %1423 = vadd.xlane.f32.xlu1 %v1388_v54  ;;  %v1389_v4 = vmul.f32 %v3841_v22, %v3841_v22 }
 0x325   : > { %v1235_v43 = vpop.xlane.xlu0 %1234 }
 0x326   : > { %v3853_v57 = vmul.f32 %v3815_v19, %v1320_v31  ;;  %v1321_v6 = vsub.f32 %v3712_v56, %v1289_v10  ;;  %v1290_v39 = vmul.f32 0.015625, %v1235_v43  ;;  %1425 = vadd.xlane.f32.xlu0 %v1389_v4  ;;  %v1390_v41 = vmul.f32 %v3847_v52, %v3847_v52 }
 0x327   : > { %v1237_v11 = vpop.xlane.xlu1 %1236 }
 0x328   : > { %v3859_v9 = vmul.f32 %v3815_v19, %v1321_v6  ;;  %v1322_v63 = vsub.f32 %v3716_v30, %v1290_v39  ;;  %v1291_v32 = vmul.f32 0.015625, %v1237_v11  ;;  %1427 = vadd.xlane.f32.xlu1 %v1390_v41  ;;  %v1391_v62 = vmul.f32 %v3853_v57, %v3853_v57 }
 0x329   : > { %v1239_v2 = vpop.xlane.xlu0 %1238 }
 0x32a   : > { %v3865_v61 = vmul.f32 %v3815_v19, %v1322_v63  ;;  %v1323_v56 = vsub.f32 %v3720_v26, %v1291_v32  ;;  %v1292_v0 = vmul.f32 0.015625, %v1239_v2  ;;  %1429 = vadd.xlane.f32.xlu0 %v1391_v62  ;;  %v1392_v17 = vmul.f32 %v3859_v9, %v3859_v9 }
 0x32b   : > { %v1241_v45 = vpop.xlane.xlu1 %1240 }
 0x32c   : > { %v3871_v47 = vmul.f32 %v3815_v19, %v1323_v56  ;;  %v1324_v30 = vsub.f32 %v3724_v48, %v1292_v0  ;;  %v1293_v59 = vmul.f32 0.015625, %v1241_v45  ;;  %1431 = vadd.xlane.f32.xlu1 %v1392_v17  ;;  %v1393_v44 = vmul.f32 %v3865_v61, %v3865_v61 }
 0x32d   : > { %v1243_v3 = vpop.xlane.xlu0 %1242 }
 0x32e   : > { %v3877_v28 = vmul.f32 %v3815_v19, %v1324_v30  ;;  %v1325_v26 = vsub.f32 %v3728_v46, %v1293_v59  ;;  %v1294_v12 = vmul.f32 0.015625, %v1243_v3  ;;  %1433 = vadd.xlane.f32.xlu0 %v1393_v44  ;;  %v1394_v60 = vmul.f32 %v3871_v47, %v3871_v47  ;;  %v2579_v59 = vld [vmem:[#allocation7] sm:$0xff]  }
 0x32f   : > { %v1245_v53 = vpop.xlane.xlu1 %1244  ;;  %2452 = vmatprep.subr.bf16.mxu1 %v2579_v59 }
 0x330   : > { %v3883_v36 = vmul.f32 %v3815_v19, %v1325_v26  ;;  %v1326_v48 = vsub.f32 %v3732_v21, %v1294_v12  ;;  %v1295_v5 = vmul.f32 0.015625, %v1245_v53  ;;  %1435 = vadd.xlane.f32.xlu1 %v1394_v60  ;;  %v1395_v23 = vmul.f32 %v3877_v28, %v3877_v28  ;;  %2453 = vmatpush3.bf16.msra.mxu1 %v2579_v59 }
 0x331   : > { %v1247_v16 = vpop.xlane.xlu0 %1246 }
 0x332   : > { %v3889_v54 = vmul.f32 %v3815_v19, %v1326_v48  ;;  %v1327_v46 = vsub.f32 %v3736_v35, %v1295_v5  ;;  %v1296_v50 = vmul.f32 0.015625, %v1247_v16  ;;  %1437 = vadd.xlane.f32.xlu0 %v1395_v23  ;;  %v1396_v31 = vmul.f32 %v3883_v36, %v3883_v36  ;;  %v2580_v23 = vld [vmem:[#allocation7 + $0x8] sm:$0xff]  }
 0x333   : > { %v1249_v10 = vpop.xlane.xlu1 %1248  ;;  %2454 = vmatprep.subr.bf16.mxu1 %v2580_v23 }
 0x334   : > { %v3895_v4 = vmul.f32 %v3815_v19, %v1327_v46  ;;  %v1328_v21 = vsub.f32 %v3740_v33, %v1296_v50  ;;  %v1297_v43 = vmul.f32 0.015625, %v1249_v10  ;;  %1439 = vadd.xlane.f32.xlu1 %v1396_v31  ;;  %v1397_v6 = vmul.f32 %v3889_v54, %v3889_v54  ;;  %2455 = vmatpush3.bf16.msra.mxu1 %v2580_v23 }
 0x335   : > { %v1251_v39 = vpop.xlane.xlu0 %1250 }
 0x336   : > { %v3901_v41 = vmul.f32 %v3815_v19, %v1328_v21  ;;  %v1329_v35 = vsub.f32 %v3744_v7, %v1297_v43  ;;  %v1298_v11 = vmul.f32 0.015625, %v1251_v39  ;;  %1441 = vadd.xlane.f32.xlu0 %v1397_v6  ;;  %v1398_v63 = vmul.f32 %v3895_v4, %v3895_v4  ;;  %v2581_v39 = vld [vmem:[#allocation7 + $0x10] sm:$0xff]  }
 0x337   : > { %v1253_v32 = vpop.xlane.xlu1 %1252  ;;  %2456 = vmatprep.subr.bf16.mxu1 %v2581_v39 }
 0x338   : > { %v3907_v62 = vmul.f32 %v3815_v19, %v1329_v35  ;;  %v1330_v33 = vsub.f32 %v3748_v49, %v1298_v11  ;;  %v1299_v2 = vmul.f32 0.015625, %v1253_v32  ;;  %1443 = vadd.xlane.f32.xlu1 %v1398_v63  ;;  %v1399_v56 = vmul.f32 %v3901_v41, %v3901_v41  ;;  %2457 = vmatpush3.bf16.msra.mxu1 %v2581_v39 }
 0x339   : > { %v1255_v0 = vpop.xlane.xlu0 %1254 }
 0x33a   : > { %v3913_v17 = vmul.f32 %v3815_v19, %v1330_v33  ;;  %v1331_v7 = vsub.f32 %v3752_v51, %v1299_v2  ;;  %v1300_v45 = vmul.f32 0.015625, %v1255_v0  ;;  %1445 = vadd.xlane.f32.xlu0 %v1399_v56  ;;  %v1400_v30 = vmul.f32 %v3907_v62, %v3907_v62 }
 0x33b   : > { %v1257_v44 = vpop.xlane.xlu1 %1256 }
 0x33c   : > { %v3919_v49 = vmul.f32 %v3815_v19, %v1331_v7  ;;  %v1332_v3 = vsub.f32 %v3756_v18, %v1300_v45  ;;  %v1301_v26 = vmul.f32 0.015625, %v1257_v44  ;;  %1447 = vadd.xlane.f32.xlu1 %v1400_v30  ;;  %v1401_v12 = vmul.f32 %v3913_v17, %v3913_v17  ;;  %v2582_v7 = vld [vmem:[#allocation7 + $0x18] sm:$0xff]  }
 0x33d   : > { %v1259_v60 = vpop.xlane.xlu0 %1258  ;;  %2458 = vmatprep.subr.bf16.mxu1 %v2582_v7 }
 0x33e   : > { %v3925_v51 = vmul.f32 %v3815_v19, %v1332_v3  ;;  %v1333_v53 = vsub.f32 %v3760_v20, %v1301_v26  ;;  %v1302_v48 = vmul.f32 0.015625, %v1259_v60  ;;  %1449 = vadd.xlane.f32.xlu0 %v1401_v12  ;;  %v1402_v5 = vmul.f32 %v3919_v49, %v3919_v49  ;;  %2459 = vmatpush3.bf16.msra.mxu1 %v2582_v7 }
 0x33f   : > { %v1261_v18 = vpop.xlane.xlu1 %1260 }
 0x340   : > { %v3931_v16 = vmul.f32 %v3815_v19, %v1333_v53  ;;  %v1334_v46 = vsub.f32 %v3764_v8, %v1302_v48  ;;  %v1303_v50 = vmul.f32 0.015625, %v1261_v18  ;;  %1451 = vadd.xlane.f32.xlu1 %v1402_v5  ;;  %v1403_v31 = vmul.f32 %v3925_v51, %v3925_v51  ;;  %v2583_v53 = vld [vmem:[#allocation7 + $0x20] sm:$0xff]  }
 0x341   : > { %v1263_v10 = vpop.xlane.xlu0 %1262  ;;  %2460 = vmatprep.subr.bf16.mxu1 %v2583_v53 }
 0x342   : > { %v3937_v20 = vmul.f32 %v3815_v19, %v1334_v46  ;;  %v1335_v21 = vsub.f32 %v3768_v24, %v1303_v50  ;;  %v1304_v43 = vmul.f32 0.015625, %v1263_v10  ;;  %1453 = vadd.xlane.f32.xlu0 %v1403_v31  ;;  %v1404_v6 = vmul.f32 %v3931_v16, %v3931_v16  ;;  %2461 = vmatpush3.bf16.msra.mxu1 %v2583_v53 }
 0x343   : > { %v1265_v8 = vpop.xlane.xlu1 %1264 }
 0x344   : > { %v3943_v35 = vmul.f32 %v3815_v19, %v1335_v21  ;;  %v1336_v11 = vsub.f32 %v3772_v37, %v1304_v43  ;;  %v1305_v63 = vmul.f32 0.015625, %v1265_v8  ;;  %1455 = vadd.xlane.f32.xlu1 %v1404_v6  ;;  %v1405_v32 = vmul.f32 %v3937_v20, %v3937_v20  ;;  %v2584_v21 = vld [vmem:[#allocation7 + $0x28] sm:$0xff]  }
 0x345   : > { %v1267_v33 = vpop.xlane.xlu0 %1266  ;;  %2462 = vmatprep.subr.bf16.mxu1 %v2584_v21 }
 0x346   : > { %v3949_v24 = vmul.f32 %v3815_v19, %v1336_v11  ;;  %v1337_v2 = vsub.f32 %v3776_v38, %v1305_v63  ;;  %v1306_v56 = vmul.f32 0.015625, %v1267_v33  ;;  %1457 = vadd.xlane.f32.xlu0 %v1405_v32  ;;  %v1406_v0 = vmul.f32 %v3943_v35, %v3943_v35  ;;  %2463 = vmatpush3.bf16.msra.mxu1 %v2584_v21 }
 0x347   : > { %v1269_v37 = vpop.xlane.xlu1 %1268 }
 0x348   : > { %v3955_v45 = vmul.f32 %v3815_v19, %v1337_v2  ;;  %v1338_v30 = vsub.f32 %v3780_v40, %v1306_v56  ;;  %v1307_v59 = vmul.f32 0.015625, %v1269_v37  ;;  %1459 = vadd.xlane.f32.xlu1 %v1406_v0  ;;  %v1407_v44 = vmul.f32 %v3949_v24, %v3949_v24  ;;  %v2585_v2 = vld [vmem:[#allocation7 + $0x30] sm:$0xff]  }
 0x349   : > { %v1271_v3 = vpop.xlane.xlu0 %1270  ;;  %2464 = vmatprep.subr.bf16.mxu1 %v2585_v2 }
 0x34a   : > { %v3961_v38 = vmul.f32 %v3815_v19, %v1338_v30  ;;  %v1339_v26 = vsub.f32 %v3784_v15, %v1307_v59  ;;  %v1308_v12 = vmul.f32 0.015625, %v1271_v3  ;;  %1461 = vadd.xlane.f32.xlu0 %v1407_v44  ;;  %v1408_v60 = vmul.f32 %v3955_v45, %v3955_v45  ;;  %2465 = vmatpush3.bf16.msra.mxu1 %v2585_v2  ;;  %v2586_v44 = vld [vmem:[#allocation7 + $0x38] sm:$0xff]  }
 0x34b   : > { %v1273_v40 = vpop.xlane.xlu1 %1272  ;;  %2466 = vmatprep.subr.bf16.mxu1 %v2586_v44 }
 0x34c   : > { %v3967_v48 = vmul.f32 %v3815_v19, %v1339_v26  ;;  %v1340_v5 = vsub.f32 %v3788_v29, %v1308_v12  ;;  %v1309_v23 = vmul.f32 0.015625, %v1273_v40  ;;  %1463 = vadd.xlane.f32.xlu1 %v1408_v60  ;;  %v1409_v18 = vmul.f32 %v3961_v38, %v3961_v38 }
 0x34d   : > { %v1275_v46 = vpop.xlane.xlu0 %1274 }
 0x34e   : > { %v3973_v15 = vmul.f32 %v3815_v19, %v1340_v5  ;;  %v1341_v50 = vsub.f32 %v3792_v55, %v1309_v23  ;;  %v1310_v31 = vmul.f32 0.015625, %v1275_v46  ;;  %1465 = vadd.xlane.f32.xlu0 %v1409_v18  ;;  %v1410_v10 = vmul.f32 %v3967_v48, %v3967_v48  ;;  %2467 = vmatpush3.bf16.msra.mxu1 %v2586_v44 }
 0x34f   : > { %v1277_v29 = vpop.xlane.xlu1 %1276 }
 0x350   : > { %v3979_v43 = vmul.f32 %v3815_v19, %v1341_v50  ;;  %v1342_v6 = vsub.f32 %v3796_v14, %v1310_v31  ;;  %v1311_v39 = vmul.f32 0.015625, %v1277_v29  ;;  %1467 = vadd.xlane.f32.xlu1 %v1410_v10  ;;  %v1411_v8 = vmul.f32 %v3973_v15, %v3973_v15 }
 0x351   : > { %v1279_v11 = vpop.xlane.xlu0 %1278 }
 0x352   : > { %v3985_v55 = vmul.f32 %v3815_v19, %v1342_v6  ;;  %v1343_v63 = vsub.f32 %v3800_v25, %v1311_v39  ;;  %v1312_v32 = vmul.f32 0.015625, %v1279_v11  ;;  %1469 = vadd.xlane.f32.xlu0 %v1411_v8  ;;  %v1412_v33 = vmul.f32 %v3979_v43, %v3979_v43 }
 0x353   : > { %v1281_v14 = vpop.xlane.xlu1 %1280 }
 0x354   : > { %v3991_v56 = vmul.f32 %v3815_v19, %v1343_v63  ;;  %v1344_v0 = vsub.f32 %v3804_v58, %v1312_v32  ;;  %v1313_v7 = vmul.f32 0.015625, %v1281_v14  ;;  %1471 = vadd.xlane.f32.xlu1 %v1412_v33  ;;  %v1413_v37 = vmul.f32 %v3985_v55, %v3985_v55 }
 0x356   : > { %v3997_v25 = vmul.f32 %v3815_v19, %v1344_v0  ;;  %v1345_v30 = vsub.f32 %v3808_v27, %v1313_v7  ;;  %1473 = vadd.xlane.f32.xlu0 %v1413_v37  ;;  %v1414_v59 = vmul.f32 %v3991_v56, %v3991_v56  ;;  %v4012_v0 = vld [vmem:[%s4304_s7] ss:$0 sm:$0xff] }
 0x358   : > { %v4003_v3 = vmul.f32 %v3815_v19, %v1345_v30  ;;  %1475 = vadd.xlane.f32.xlu1 %v1414_v59  ;;  %v1415_v58 = vmul.f32 %v3997_v25, %v3997_v25 }
 0x35a   : > { %1477 = vadd.xlane.f32.xlu0 %v1415_v58  ;;  %v1416_v26 = vmul.f32 %v4003_v3, %v4003_v3  ;;  %v4018_v58 = vld [vmem:[%s4305_s8] ss:$0 sm:$0xff] }
 0x35c   : > { %1479 = vadd.xlane.f32.xlu1 %v1416_v26 }
 0x3ab   : > { %v1418_v27 = vpop.xlane.xlu0 %1417 }
 0x3ac   : > { %v1481_v12 = vmul.f32 0.015625, %v1418_v27 }
 0x3ad   : > { %v1420_v60 = vpop.xlane.xlu1 %1419 }
 0x3ae   : > { %v1513_v53 = vadd.f32 1e-05, %v1481_v12  ;;  %v1482_v40 = vmul.f32 0.015625, %v1420_v60 }
 0x3af   : > { %v1422_v5 = vpop.xlane.xlu0 %1421 }
 0x3b0   : > { %2651 = vrsqrt.f32 %v1513_v53  ;;  %v1514_v19 = vadd.f32 1e-05, %v1482_v40  ;;  %v1483_v23 = vmul.f32 0.015625, %v1422_v5 }
 0x3b1   : > { %v1424_v18 = vpop.xlane.xlu1 %1423 }
 0x3b2   : > { %2653 = vrsqrt.f32 %v1514_v19  ;;  %v1515_v46 = vadd.f32 1e-05, %v1483_v23  ;;  %v1484_v50 = vmul.f32 0.015625, %v1424_v18 }
 0x3b3   : > { %v1426_v31 = vpop.xlane.xlu0 %1425 }
 0x3b4   : > { %2655 = vrsqrt.f32 %v1515_v46  ;;  %v1516_v10 = vadd.f32 1e-05, %v1484_v50  ;;  %v1485_v21 = vmul.f32 0.015625, %v1426_v31 }
 0x3b5   : > { %v1428_v29 = vpop.xlane.xlu1 %1427 }
 0x3b6   : > { %2657 = vrsqrt.f32 %v1516_v10  ;;  %v1517_v6 = vadd.f32 1e-05, %v1485_v21  ;;  %v1486_v39 = vmul.f32 0.015625, %v1428_v29 }
 0x3b7   : > { %v1430_v8 = vpop.xlane.xlu0 %1429 }
 0x3b8   : > { %2659 = vrsqrt.f32 %v1517_v6  ;;  %v1518_v11 = vadd.f32 1e-05, %v1486_v39  ;;  %v1487_v63 = vmul.f32 0.015625, %v1430_v8 }
 0x3b9   : > { %v1432_v32 = vpop.xlane.xlu1 %1431 }
 0x3ba   : > { %v2652_v33 = vpop.eup %2651  ;;  %2661 = vrsqrt.f32 %v1518_v11  ;;  %v1519_v2 = vadd.f32 1e-05, %v1487_v63  ;;  %v1488_v14 = vmul.f32 0.015625, %v1432_v32 }
 0x3bb   : > { %v1434_v7 = vpop.xlane.xlu0 %1433  ;;  %v1577_v37 = vmul.f32 %v2652_v33, %v3820_v42 }
 0x3bc   : > { %v2654_v30 = vpop.eup %2653  ;;  %2663 = vrsqrt.f32 %v1519_v2  ;;  %v1520_v59 = vadd.f32 1e-05, %v1488_v14  ;;  %v1489_v44 = vmul.f32 0.015625, %v1434_v7 }
 0x3bd   : > { %v1436_v26 = vpop.xlane.xlu1 %1435  ;;  %v1578_v27 = vmul.f32 %v2654_v30, %v3826_v13  ;;  %v1616_v12 = vmul.f32 %v4012_v0, %v1577_v37 }
 0x3be   : > { %v2656_v60 = vpop.eup %2655  ;;  %2665 = vrsqrt.f32 %v1520_v59  ;;  %v1521_v53 = vadd.f32 1e-05, %v1489_v44  ;;  %v1490_v40 = vmul.f32 0.015625, %v1436_v26 }
 0x3bf   : > { %v1579_v42 = vmul.f32 %v2656_v60, %v3829_v34  ;;  %v1438_v5 = vpop.xlane.xlu0 %1437  ;;  %v1617_v19 = vmul.f32 %v4012_v0, %v1578_v27  ;;  %v1655_v23 = vadd.f32 %v4018_v58, %v1616_v12 }
 0x3c0   : > { %v2658_v18 = vpop.eup %2657  ;;  %v1522_v46 = vadd.f32 1e-05, %v1490_v40  ;;  %v1491_v50 = vmul.f32 0.015625, %v1438_v5  ;;  %2667 = vrsqrt.f32 %v1521_v53 }
 0x3c1   : > { %v1580_v31 = vmul.f32 %v2658_v18, %v3835_v1  ;;  %v1440_v10 = vpop.xlane.xlu1 %1439  ;;  %v4027_v13 = vadd.f32 %v4018_v58, %v1617_v19  ;;  %v1719_v21 = vmul.f32 0.70710677, %v1655_v23  ;;  %v1618_v34 = vmul.f32 %v4012_v0, %v1579_v42 }
 0x3c2   : > { %v2660_v29 = vpop.eup %2659  ;;  %v1523_v6 = vadd.f32 1e-05, %v1491_v50  ;;  %v1492_v39 = vmul.f32 0.015625, %v1440_v10 }
 0x3c3   : > { %v1581_v8 = vmul.f32 %v2660_v29, %v3841_v22  ;;  %v1442_v11 = vpop.xlane.xlu0 %1441  ;;  %v1720_v63 = vmul.f32 0.70710677, %v4027_v13  ;;  %2669 = verf.f32 %v1719_v21  ;;  %v1619_v2 = vmul.f32 %v4012_v0, %v1580_v31 }
 0x3c4   : > { %v2662_v32 = vpop.eup %2661  ;;  %2671 = vrsqrt.f32 %v1522_v46  ;;  %v1524_v1 = vadd.f32 1e-05, %v1492_v39  ;;  %v1493_v33 = vmul.f32 0.015625, %v1442_v11  ;;  %v1657_v37 = vadd.f32 %v4018_v58, %v1618_v34 }
 0x3c5   : > { %v1582_v14 = vmul.f32 %v2662_v32, %v3847_v52  ;;  %v1444_v7 = vpop.xlane.xlu1 %1443  ;;  %2673 = verf.f32 %v1720_v63  ;;  %v1620_v30 = vmul.f32 %v4012_v0, %v1581_v8  ;;  %v1658_v26 = vadd.f32 %v4018_v58, %v1619_v2 }
 0x3c6   : > { %v2664_v59 = vpop.eup %2663  ;;  %2675 = vrsqrt.f32 %v1523_v6  ;;  %v1525_v22 = vadd.f32 1e-05, %v1493_v33  ;;  %v1494_v44 = vmul.f32 0.015625, %v1444_v7  ;;  %v1721_v12 = vmul.f32 0.70710677, %v1657_v37 }
 0x3c7   : > { %2677 = vrsqrt.f32 %v1524_v1  ;;  %v1446_v27 = vpop.xlane.xlu0 %1445  ;;  %v1621_v60 = vmul.f32 %v4012_v0, %v1582_v14  ;;  %v1583_v42 = vmul.f32 %v2664_v59, %v3853_v57  ;;  %v1722_v19 = vmul.f32 0.70710677, %v1658_v26 }
 0x3c8   : > { %v2666_v53 = vpop.eup %2665  ;;  %2679 = vrsqrt.f32 %v1525_v22  ;;  %v1526_v52 = vadd.f32 1e-05, %v1494_v44  ;;  %v1495_v40 = vmul.f32 0.015625, %v1446_v27  ;;  %v1659_v18 = vadd.f32 %v4018_v58, %v1620_v30 }
 0x3c9   : > { %v1448_v5 = vpop.xlane.xlu1 %1447  ;;  %2681 = verf.f32 %v1721_v12  ;;  %v1660_v31 = vadd.f32 %v4018_v58, %v1621_v60  ;;  %v1584_v10 = vmul.f32 %v2666_v53, %v3859_v9  ;;  %v1687_v11 = vmul.f32 0.5, %v1655_v23 }
 0x3ca   : > { %2683 = vrsqrt.f32 %v1526_v52  ;;  %v1527_v46 = vadd.f32 1e-05, %v1495_v40  ;;  %v1496_v50 = vmul.f32 0.015625, %v1448_v5  ;;  %v1723_v29 = vmul.f32 0.70710677, %v1659_v18  ;;  %v2668_v6 = vpop.eup %2667 }
 0x3cb   : > { %v1450_v21 = vpop.xlane.xlu0 %1449  ;;  %2685 = verf.f32 %v1722_v19  ;;  %v1724_v63 = vmul.f32 0.70710677, %v1660_v31  ;;  %v1622_v32 = vmul.f32 %v4012_v0, %v1583_v42  ;;  %v1688_v30 = vmul.f32 0.5, %v4027_v13 }
 0x3cc   : > { %2687 = vrsqrt.f32 %v1527_v46  ;;  %v1528_v39 = vadd.f32 1e-05, %v1496_v50  ;;  %v1497_v34 = vmul.f32 0.015625, %v1450_v21  ;;  %v1623_v59 = vmul.f32 %v4012_v0, %v1584_v10 }
 0x3cd   : > { %v2670_v57 = vpop.eup %2669  ;;  %v1452_v8 = vpop.xlane.xlu1 %1451  ;;  %2689 = verf.f32 %v1723_v29  ;;  %v1661_v22 = vadd.f32 %v4018_v58, %v1622_v32  ;;  %v1689_v60 = vmul.f32 0.5, %v1657_v37  ;;  %v1585_v52 = vmul.f32 %v2668_v6, %v3865_v61 }
 0x3ce   : > { %v2672_v1 = vpop.eup %2671  ;;  %2691 = vrsqrt.f32 %v1528_v39  ;;  %v1529_v33 = vadd.f32 1e-05, %v1497_v34  ;;  %v1498_v2 = vmul.f32 0.015625, %v1452_v8  ;;  %v1783_v14 = vadd.f32 1.0, %v2670_v57 }
 0x3cf   : > { %v2674_v9 = vpop.eup %2673  ;;  %v1454_v7 = vpop.xlane.xlu0 %1453  ;;  %2693 = verf.f32 %v1724_v63  ;;  %v1690_v42 = vmul.f32 0.5, %v1658_v26  ;;  %v1662_v5 = vadd.f32 %v4018_v58, %v1623_v59  ;;  %v1586_v29 = vmul.f32 %v2672_v1, %v3871_v47 }
 0x3d0   : > { %v2676_v44 = vpop.eup %2675  ;;  %v1530_v23 = vadd.f32 1e-05, %v1498_v2  ;;  %v1499_v27 = vmul.f32 0.015625, %v1454_v7  ;;  %v1784_v12 = vadd.f32 1.0, %v2674_v9  ;;  %2695 = vrsqrt.f32 %v1529_v33 }
 0x3d1   : > { %v2678_v53 = vpop.eup %2677  ;;  %v1456_v40 = vpop.xlane.xlu1 %1455  ;;  %v1815_v50 = vmul.f32 %v1783_v14, %v1687_v11  ;;  %v1691_v34 = vmul.f32 0.5, %v1659_v18  ;;  %v1725_v57 = vmul.f32 0.70710677, %v1661_v22  ;;  %v1726_v37 = vmul.f32 0.70710677, %v1662_v5 }
 0x3d2   : > { %v2680_v19 = vpop.eup %2679  ;;  %v1531_v13 = vadd.f32 1e-05, %v1499_v27  ;;  %v1500_v46 = vmul.f32 0.015625, %v1456_v40  ;;  %v1816_v10 = vmul.f32 %v1784_v12, %v1688_v30  ;;  %2697 = vrsqrt.f32 %v1530_v23 }
 0x3d3   : > { %v2682_v21 = vpop.eup %2681  ;;  %v1458_v39 = vpop.xlane.xlu0 %1457  ;;  %v1692_v63 = vmul.f32 0.5, %v1660_v31  ;;  %v1587_v32 = vmul.f32 %v2676_v44, %v3877_v28  ;;  %2699 = verf.f32 %v1725_v57  ;;  %v1624_v11 = vmul.f32 %v4012_v0, %v1585_v52 }
 0x3d4   : > { %v2684_v8 = vpop.eup %2683  ;;  %v1501_v61 = vmul.f32 0.015625, %v1458_v39  ;;  %v1847_v6 = vpack.c.bf16 %v1816_v10, %v1815_v50  ;;  %v1785_v2 = vadd.f32 1.0, %v2682_v21  ;;  %2701 = vrsqrt.f32 %v1531_v13 }
 0x3d5   : > { %v2686_v26 = vpop.eup %2685  ;;  %v1460_v33 = vpop.xlane.xlu1 %1459  ;;  %v1532_v47 = vadd.f32 1e-05, %v1500_v46  ;;  %v1588_v7 = vmul.f32 %v2678_v53, %v3883_v36  ;;  %2703 = verf.f32 %v1726_v37  ;;  %v1625_v31 = vmul.f32 %v4012_v0, %v1586_v29 }
 0x3d6   : > { %v2688_v14 = vpop.eup %2687  ;;  %v1502_v1 = vmul.f32 0.015625, %v1460_v33  ;;  %2468 = vmatprep.mubr.bf16.mxu1 %v1847_v6  ;;  %v1786_v18 = vadd.f32 1.0, %v2686_v26  ;;  %v1533_v30 = vadd.f32 1e-05, %v1501_v61  ;;  %v1817_v23 = vmul.f32 %v1785_v2, %v1689_v60 }
 0x3d7   : > { %v2690_v9 = vpop.eup %2689  ;;  %v1462_v59 = vpop.xlane.xlu0 %1461  ;;  %v1693_v12 = vmul.f32 0.5, %v1661_v22  ;;  %v4054_v40 = vmul.f32 %v2680_v19, %v3889_v54  ;;  %v1663_v50 = vadd.f32 %v4018_v58, %v1624_v11  ;;  %v1664_v36 = vadd.f32 %v4018_v58, %v1625_v31 }
 0x3d8   : > { %v2692_v28 = vpop.eup %2691  ;;  %v1503_v44 = vmul.f32 0.015625, %v1462_v59  ;;  %v1818_v27 = vmul.f32 %v1786_v18, %v1690_v42  ;;  %v1787_v46 = vadd.f32 1.0, %v2690_v9  ;;  %2705 = vrsqrt.f32 %v1532_v47 }
 0x3d9   : > { %v2694_v52 = vpop.eup %2693  ;;  %v1464_v13 = vpop.xlane.xlu1 %1463  ;;  %v1534_v53 = vadd.f32 1e-05, %v1502_v1  ;;  %v4059_v39 = vmul.f32 %v2684_v8, %v3895_v4  ;;  %2707 = vrsqrt.f32 %v1533_v30  ;;  %v1694_v42 = vmul.f32 0.5, %v1662_v5 }
 0x3da   : > { %v1504_v10 = vmul.f32 0.015625, %v1464_v13  ;;  %v1848_v21 = vpack.c.bf16 %v1818_v27, %v1817_v23  ;;  %v2696_v29 = vpop.eup %2695  ;;  %v1788_v60 = vadd.f32 1.0, %v2694_v52  ;;  %v4062_v54 = vmul.f32 %v2688_v14, %v3901_v41 }
 0x3db   : > { %v1466_v22 = vpop.xlane.xlu0 %1465  ;;  %v4065_v19 = vmul.f32 %v2692_v28, %v3907_v62  ;;  %v1535_v57 = vadd.f32 1e-05, %v1503_v44  ;;  %v1819_v6 = vmul.f32 %v1787_v46, %v1691_v34  ;;  %v1727_v33 = vmul.f32 0.70710677, %v1663_v50 }
 0x3dc   : > { %2469 = vmatmul.mubr.bf16.vlgmr.msra.gmra.mrb[0].mxu1 %v1848_v21  ;;  %v1505_v37 = vmul.f32 0.015625, %v1466_v22  ;;  %v1820_v26 = vmul.f32 %v1788_v60, %v1692_v63  ;;  %v1728_v2 = vmul.f32 0.70710677, %v1664_v36  ;;  %v2698_v4 = vpop.eup %2697  ;;  %2709 = vrsqrt.f32 %v1534_v53 }
 0x3dd   : > { %v1468_v61 = vpop.xlane.xlu1 %1467  ;;  %v1536_v8 = vadd.f32 1e-05, %v1504_v10  ;;  %v1626_v5 = vmul.f32 %v4012_v0, %v1587_v32  ;;  %v2700_v47 = vpop.eup %2699  ;;  %v4069_v41 = vmul.f32 %v2696_v29, %v3913_v17  ;;  %2711 = verf.f32 %v1727_v33 }
 0x3de   : > { %v1506_v11 = vmul.f32 0.015625, %v1468_v61  ;;  %v1849_v62 = vpack.c.bf16 %v1820_v26, %v1819_v6  ;;  %v1627_v1 = vmul.f32 %v4012_v0, %v1588_v7  ;;  %v2702_v18 = vpop.eup %2701  ;;  %2713 = vrsqrt.f32 %v1535_v57 }
 0x3df   : > { %v1470_v14 = vpop.xlane.xlu0 %1469  ;;  %v1537_v34 = vadd.f32 1e-05, %v1505_v37  ;;  %v1789_v9 = vadd.f32 1.0, %v2700_v47  ;;  %v2704_v30 = vpop.eup %2703  ;;  %2715 = verf.f32 %v1728_v2  ;;  %v1665_v32 = vadd.f32 %v4018_v58, %v1626_v5 }
 0x3e0   : > { %v1507_v63 = vmul.f32 0.015625, %v1470_v14  ;;  %v1538_v59 = vadd.f32 1e-05, %v1506_v11  ;;  %2472 = vmatprep.mubr.bf16.mxu1 %v1849_v62  ;;  %v1666_v17 = vadd.f32 %v4018_v58, %v1627_v1  ;;  %2717 = vrsqrt.f32 %v1536_v8 }
 0x3e1   : > { %v1472_v31 = vpop.xlane.xlu1 %1471  ;;  %v1790_v23 = vadd.f32 1.0, %v2704_v30  ;;  %v1594_v7 = vmul.f32 %v2698_v4, %v3919_v49  ;;  %v4076_v27 = vmul.f32 %v2702_v18, %v3925_v51  ;;  %v1695_v13 = vmul.f32 0.5, %v1663_v50 }
 0x3e2   : > { %v1539_v28 = vadd.f32 1e-05, %v1507_v63  ;;  %v1508_v44 = vmul.f32 0.015625, %v1472_v31  ;;  %v1696_v46 = vmul.f32 0.5, %v1664_v36  ;;  %v2706_v53 = vpop.eup %2705  ;;  %2719 = vrsqrt.f32 %v1537_v34 }
 0x3e3   : > { %v1474_v52 = vpop.xlane.xlu0 %1473  ;;  %v1821_v10 = vmul.f32 %v1789_v9, %v1693_v12  ;;  %v1822_v21 = vmul.f32 %v1790_v23, %v1694_v42  ;;  %v2708_v22 = vpop.eup %2707  ;;  %2721 = vrsqrt.f32 %v1538_v59  ;;  %v1729_v57 = vmul.f32 0.70710677, %v1665_v32 }
 0x3e4   : > { %v1509_v29 = vmul.f32 0.015625, %v1474_v52  ;;  %v1730_v37 = vmul.f32 0.70710677, %v1666_v17  ;;  %v1628_v61 = vmul.f32 %v4012_v0, %v4054_v40  ;;  %2723 = vrsqrt.f32 %v1539_v28 }
 0x3e5   : > { %v1476_v60 = vpop.xlane.xlu1 %1475  ;;  %v1540_v49 = vadd.f32 1e-05, %v1508_v44  ;;  %v1850_v51 = vpack.c.bf16 %v1822_v21, %v1821_v10  ;;  %2725 = verf.f32 %v1729_v57  ;;  %v1629_v12 = vmul.f32 %v4012_v0, %v4059_v39 }
 0x3e6   : > { %v1510_v6 = vmul.f32 0.015625, %v1476_v60  ;;  %v1541_v26 = vadd.f32 1e-05, %v1509_v29  ;;  %v1667_v36 = vadd.f32 %v4018_v58, %v1628_v61  ;;  %v2710_v42 = vpop.eup %2709  ;;  %v4084_v33 = vmul.f32 %v2706_v53, %v3931_v16 }
 0x3e7   : > { %v1478_v50 = vpop.xlane.xlu0 %1477  ;;  %v4087_v2 = vmul.f32 %v2708_v22, %v3937_v20  ;;  %2473 = vmatmul.mubr.bf16.gmra.mrb[4].mxu1 %v1850_v51  ;;  %v2712_v8 = vpop.eup %2711  ;;  %v4089_v5 = vmul.f32 0.5, %v1665_v32  ;;  %2727 = verf.f32 %v1730_v37  ;;  %v1668_v47 = vadd.f32 %v4018_v58, %v1629_v12 }
 0x3e8   : > { %v1542_v40 = vadd.f32 1e-05, %v1510_v6  ;;  %v1511_v4 = vmul.f32 0.015625, %v1478_v50  ;;  %v1630_v39 = vmul.f32 %v4012_v0, %v4062_v54  ;;  %v2714_v62 = vpop.eup %2713  ;;  %2729 = vrsqrt.f32 %v1540_v49 }
 0x3e9   : > { %v1480_v11 = vpop.xlane.xlu1 %1479  ;;  %v1791_v16 = vadd.f32 1.0, %v2712_v8  ;;  %v2716_v20 = vpop.eup %2715  ;;  %2731 = vrsqrt.f32 %v1541_v26  ;;  %v1698_v18 = vmul.f32 0.5, %v1666_v17  ;;  %v1731_v34 = vmul.f32 0.70710677, %v1667_v36 }
 0x3ea   : > { %v1543_v14 = vadd.f32 1e-05, %v1511_v4  ;;  %v1512_v1 = vmul.f32 0.015625, %v1480_v11  ;;  %v1732_v63 = vmul.f32 0.70710677, %v1668_v47  ;;  %v2718_v9 = vpop.eup %2717  ;;  %v1598_v30 = vmul.f32 %v2710_v42, %v3943_v35 }
 0x3eb   : > { %2733 = vrsqrt.f32 %v1542_v40  ;;  %v1792_v59 = vadd.f32 1.0, %v2716_v20  ;;  %v1823_v31 = vmul.f32 %v1791_v16, %v1695_v13  ;;  %v1631_v54 = vmul.f32 %v4012_v0, %v4065_v19 }
 0x3ec   : > { %v1544_v32 = vadd.f32 1e-05, %v1512_v1  ;;  %2735 = verf.f32 %v1731_v34  ;;  %v1669_v28 = vadd.f32 %v4018_v58, %v1630_v39  ;;  %v2720_v44 = vpop.eup %2719  ;;  %v1632_v17 = vmul.f32 %v4012_v0, %v4069_v41 }
 0x3ed   : > { %v1824_v23 = vmul.f32 %v1792_v59, %v1696_v46  ;;  %2737 = vrsqrt.f32 %v1543_v14  ;;  %v1633_v52 = vmul.f32 %v4012_v0, %v1594_v7  ;;  %v2722_v53 = vpop.eup %2721  ;;  %v1599_v35 = vmul.f32 %v2714_v62, %v3949_v24 }
 0x3ee   : > { %v1600_v13 = vmul.f32 %v2718_v9, %v3955_v45  ;;  %2739 = verf.f32 %v1732_v63  ;;  %v1670_v10 = vadd.f32 %v4018_v58, %v1631_v54  ;;  %v2724_v21 = vpop.eup %2723  ;;  %v1733_v29 = vmul.f32 0.70710677, %v1669_v28 }
 0x3ef   : > { %v1851_v19 = vpack.c.bf16 %v1824_v23, %v1823_v31  ;;  %v1671_v22 = vadd.f32 %v4018_v58, %v1632_v17  ;;  %v1672_v46 = vadd.f32 %v4018_v58, %v1633_v52  ;;  %v2726_v60 = vpop.eup %2725  ;;  %2741 = vrsqrt.f32 %v1544_v32 }
 0x3f0   : > { %v1699_v41 = vmul.f32 0.5, %v1667_v36  ;;  %v1734_v57 = vmul.f32 0.70710677, %v1670_v10  ;;  %v1634_v7 = vmul.f32 %v4012_v0, %v4076_v27  ;;  %v1601_v24 = vmul.f32 %v2720_v44, %v3961_v38 }
 0x3f1   : > { %2476 = vmatprep.mubr.bf16.mxu1 %v1851_v19  ;;  %v1793_v45 = vadd.f32 1.0, %v2726_v60  ;;  %v1700_v37 = vmul.f32 0.5, %v1668_v47  ;;  %2743 = verf.f32 %v1733_v29  ;;  %v2728_v61 = vpop.eup %2727  ;;  %v1602_v49 = vmul.f32 %v2722_v53, %v3967_v48 }
 0x3f2   : > { %2745 = verf.f32 %v1734_v57  ;;  %v1735_v51 = vmul.f32 0.70710677, %v1671_v22  ;;  %v1736_v6 = vmul.f32 0.70710677, %v1672_v46  ;;  %v2730_v26 = vpop.eup %2729  ;;  %v1603_v50 = vmul.f32 %v2724_v21, %v3973_v15 }
 0x3f3   : > { %v1794_v12 = vadd.f32 1.0, %v2728_v61  ;;  %v1635_v36 = vmul.f32 %v4012_v0, %v4084_v33  ;;  %v1673_v27 = vadd.f32 %v4018_v58, %v1634_v7  ;;  %v2732_v38 = vpop.eup %2731  ;;  %v1701_v42 = vmul.f32 0.5, %v1669_v28 }
 0x3f4   : > { %2747 = verf.f32 %v1735_v51  ;;  %v1636_v40 = vmul.f32 %v4012_v0, %v4087_v2  ;;  %v1637_v48 = vmul.f32 %v4012_v0, %v1598_v30  ;;  %v1825_v8 = vmul.f32 %v1793_v45, %v4089_v5 }
 0x3f5   : > { %v2734_v4 = vpop.eup %2733  ;;  %v1826_v11 = vmul.f32 %v1794_v12, %v1698_v18  ;;  %2749 = verf.f32 %v1736_v6  ;;  %v1674_v15 = vadd.f32 %v4018_v58, %v1635_v36  ;;  %v1604_v33 = vmul.f32 %v2730_v26, %v3979_v43 }
 0x3f6   : > { %v2736_v47 = vpop.eup %2735  ;;  %v1737_v39 = vmul.f32 0.70710677, %v1673_v27  ;;  %v4121_v62 = vadd.f32 %v4018_v58, %v1636_v40  ;;  %v4124_v16 = vadd.f32 %v4018_v58, %v1637_v48  ;;  %v1702_v20 = vmul.f32 0.5, %v1670_v10 }
 0x3f7   : > { %v2738_v2 = vpop.eup %2737  ;;  %v1852_v14 = vpack.c.bf16 %v1826_v11, %v1825_v8  ;;  %v1795_v1 = vadd.f32 1.0, %v2736_v47  ;;  %v1738_v34 = vmul.f32 0.70710677, %v1674_v15  ;;  %v1605_v18 = vmul.f32 %v2732_v38, %v3985_v55 }
 0x3f8   : > { %v2740_v5 = vpop.eup %2739  ;;  %v1703_v63 = vmul.f32 0.5, %v1671_v22  ;;  %v1704_v9 = vmul.f32 0.5, %v1672_v46  ;;  %2751 = verf.f32 %v1737_v39  ;;  %v1606_v43 = vmul.f32 %v2734_v4, %v3991_v56 }
 0x3f9   : > { %2477 = vmatmul.mubr.bf16.gmra.mrb[8].mxu1 %v1852_v14  ;;  %v1796_v30 = vadd.f32 1.0, %v2740_v5  ;;  %2753 = verf.f32 %v1738_v34  ;;  %v1739_v59 = vmul.f32 0.70710677, %v4121_v62  ;;  %v2742_v31 = vpop.eup %2741  ;;  %v1740_v32 = vmul.f32 0.70710677, %v4124_v16 }
 0x3fa   : > { %v1638_v54 = vmul.f32 %v4012_v0, %v1599_v35  ;;  %v1639_v28 = vmul.f32 %v4012_v0, %v1600_v13  ;;  %v1640_v44 = vmul.f32 %v4012_v0, %v1601_v24  ;;  %v1827_v23 = vmul.f32 %v1795_v1, %v1699_v41 }
 0x3fb   : > { %v2744_v55 = vpop.eup %2743  ;;  %v1828_v17 = vmul.f32 %v1796_v30, %v1700_v37  ;;  %2755 = verf.f32 %v1739_v59  ;;  %v1641_v56 = vmul.f32 %v4012_v0, %v1602_v49  ;;  %v1607_v46 = vmul.f32 %v2738_v2, %v3997_v25 }
 0x3fc   : > { %v2746_v52 = vpop.eup %2745  ;;  %v1797_v53 = vadd.f32 1.0, %v2744_v55  ;;  %2757 = verf.f32 %v1740_v32  ;;  %v4135_v10 = vadd.f32 %v4018_v58, %v1638_v54  ;;  %v4138_v21 = vadd.f32 %v4018_v58, %v1639_v28 }
 0x3fd   : > { %v1853_v35 = vpack.c.bf16 %v1828_v17, %v1827_v23  ;;  %v1798_v19 = vadd.f32 1.0, %v2746_v52  ;;  %v4141_v13 = vadd.f32 %v4018_v58, %v1640_v44  ;;  %v4144_v29 = vadd.f32 %v4018_v58, %v1641_v56 }
 0x3fe   : > { %v2748_v22 = vpop.eup %2747  ;;  %v1705_v60 = vmul.f32 0.5, %v1673_v27  ;;  %v1741_v41 = vmul.f32 0.70710677, %v4135_v10  ;;  %v1642_v57 = vmul.f32 %v4012_v0, %v1603_v50  ;;  %v1829_v24 = vmul.f32 %v1797_v53, %v1701_v42 }
 0x3ff   : > { %v2750_v7 = vpop.eup %2749  ;;  %2480 = vmatprep.mubr.bf16.mxu1 %v1853_v35  ;;  %v1830_v45 = vmul.f32 %v1798_v19, %v1702_v20  ;;  %v1799_v37 = vadd.f32 1.0, %v2748_v22  ;;  %v1742_v61 = vmul.f32 0.70710677, %v4138_v21  ;;  %v1706_v51 = vmul.f32 0.5, %v1674_v15 }
 0x400   : > { %v1800_v49 = vadd.f32 1.0, %v2750_v7  ;;  %2759 = verf.f32 %v1741_v41  ;;  %v1743_v6 = vmul.f32 0.70710677, %v4141_v13  ;;  %v1744_v25 = vmul.f32 0.70710677, %v4144_v29 }
 0x401   : > { %v1854_v26 = vpack.c.bf16 %v1830_v45, %v1829_v24  ;;  %v1831_v12 = vmul.f32 %v1799_v37, %v1703_v63  ;;  %2761 = verf.f32 %v1742_v61  ;;  %v1643_v50 = vmul.f32 %v4012_v0, %v1604_v33 }
 0x402   : > { %v2752_v36 = vpop.eup %2751  ;;  %v1832_v27 = vmul.f32 %v1800_v49, %v1704_v9  ;;  %2763 = verf.f32 %v1743_v6  ;;  %v4154_v38 = vadd.f32 %v4018_v58, %v1642_v57  ;;  %v1644_v48 = vmul.f32 %v4012_v0, %v1605_v18 }
 0x403   : > { %v2754_v42 = vpop.eup %2753  ;;  %2481 = vmatmul.mubr.bf16.gmra.mrb[12].mxu1 %v1854_v26  ;;  %v1801_v40 = vadd.f32 1.0, %v2752_v36  ;;  %2765 = verf.f32 %v1744_v25  ;;  %v1645_v4 = vmul.f32 %v4012_v0, %v1606_v43  ;;  %v1608_v8 = vmul.f32 %v2742_v31, %v4003_v3 }
 0x404   : > { %v1855_v11 = vpack.c.bf16 %v1832_v27, %v1831_v12  ;;  %v1802_v15 = vadd.f32 1.0, %v2754_v42  ;;  %v1682_v47 = vadd.f32 %v4018_v58, %v1643_v50  ;;  %v1707_v33 = vmul.f32 0.5, %v4121_v62 }
 0x405   : > { %v2756_v39 = vpop.eup %2755  ;;  %v1745_v2 = vmul.f32 0.70710677, %v4154_v38  ;;  %v1683_v14 = vadd.f32 %v4018_v58, %v1644_v48  ;;  %v1684_v1 = vadd.f32 %v4018_v58, %v1645_v4  ;;  %v1833_v34 = vmul.f32 %v1801_v40, %v1705_v60 }
 0x406   : > { %v2758_v20 = vpop.eup %2757  ;;  %2484 = vmatprep.mubr.bf16.mxu1 %v1855_v11  ;;  %v1834_v5 = vmul.f32 %v1802_v15, %v1706_v51  ;;  %v1803_v18 = vadd.f32 1.0, %v2756_v39  ;;  %v1746_v63 = vmul.f32 0.70710677, %v1682_v47  ;;  %v1708_v3 = vmul.f32 0.5, %v4124_v16 }
 0x407   : > { %v1804_v9 = vadd.f32 1.0, %v2758_v20  ;;  %2767 = verf.f32 %v1745_v2  ;;  %v1747_v62 = vmul.f32 0.70710677, %v1683_v14  ;;  %v1748_v31 = vmul.f32 0.70710677, %v1684_v1 }
 0x408   : > { %v1856_v43 = vpack.c.bf16 %v1834_v5, %v1833_v34  ;;  %v1835_v30 = vmul.f32 %v1803_v18, %v1707_v33  ;;  %2769 = verf.f32 %v1746_v63  ;;  %v1646_v32 = vmul.f32 %v4012_v0, %v1607_v46 }
 0x409   : > { %v1836_v59 = vmul.f32 %v1804_v9, %v1708_v3  ;;  %v1647_v54 = vmul.f32 %v4012_v0, %v1608_v8  ;;  %2771 = verf.f32 %v1747_v62  ;;  %v1709_v56 = vmul.f32 0.5, %v4135_v10 }
 0x40a   : > { %v2760_v28 = vpop.eup %2759  ;;  %2773 = verf.f32 %v1748_v31  ;;  %v1685_v16 = vadd.f32 %v4018_v58, %v1646_v32  ;;  %v1710_v52 = vmul.f32 0.5, %v4138_v21  ;;  %v1711_v0 = vmul.f32 0.5, %v4141_v13 }
 0x40b   : > { %v2762_v44 = vpop.eup %2761  ;;  %2485 = vmatmul.mubr.bf16.gmra.mrb[16].mxu1 %v1856_v43  ;;  %v1857_v55 = vpack.c.bf16 %v1836_v59, %v1835_v30  ;;  %v1805_v23 = vadd.f32 1.0, %v2760_v28  ;;  %v1686_v35 = vadd.f32 %v4018_v58, %v1647_v54  ;;  %v1712_v22 = vmul.f32 0.5, %v4144_v29 }
 0x40c   : > { %v2764_v17 = vpop.eup %2763  ;;  %v1806_v53 = vadd.f32 1.0, %v2762_v44  ;;  %v1749_v60 = vmul.f32 0.70710677, %v1685_v16  ;;  %v1713_v13 = vmul.f32 0.5, %v4154_v38  ;;  %v1714_v51 = vmul.f32 0.5, %v1682_v47 }
 0x40d   : > { %v2766_v19 = vpop.eup %2765  ;;  %2488 = vmatprep.mubr.bf16.mxu1 %v1857_v55  ;;  %v1807_v46 = vadd.f32 1.0, %v2764_v17  ;;  %v1837_v41 = vmul.f32 %v1805_v23, %v1709_v56  ;;  %v1750_v24 = vmul.f32 0.70710677, %v1686_v35  ;;  %v1715_v27 = vmul.f32 0.5, %v1683_v14  ;;  %v4178_v14 = vld [vmem:[%s4307_s10] ss:$0 sm:$0xff] }
 0x40e   : > { %v1838_v57 = vmul.f32 %v1806_v53, %v1710_v52  ;;  %v1808_v7 = vadd.f32 1.0, %v2766_v19  ;;  %2775 = verf.f32 %v1749_v60  ;;  %v1716_v50 = vmul.f32 0.5, %v1684_v1 }
 0x40f   : > { %v1839_v10 = vmul.f32 %v1807_v46, %v1711_v0  ;;  %2777 = verf.f32 %v1750_v24  ;;  %v1717_v38 = vmul.f32 0.5, %v1685_v16  ;;  %v1718_v47 = vmul.f32 0.5, %v1686_v35 }
 0x410   : > { %v1858_v45 = vpack.c.bf16 %v1838_v57, %v1837_v41  ;;  %v1840_v37 = vmul.f32 %v1808_v7, %v1712_v22 }
 0x411   : > { %v2768_v21 = vpop.eup %2767 }
 0x412   : > { %v2770_v61 = vpop.eup %2769  ;;  %v1859_v58 = vpack.c.bf16 %v1840_v37, %v1839_v10  ;;  %v1809_v49 = vadd.f32 1.0, %v2768_v21 }
 0x413   : > { %2489 = vmatmul.mubr.bf16.gmra.mrb[20].mxu1 %v1858_v45  ;;  %v1810_v29 = vadd.f32 1.0, %v2770_v61  ;;  %v2772_v6 = vpop.eup %2771 }
 0x414   : > { %2492 = vmatprep.mubr.bf16.mxu1 %v1859_v58  ;;  %v2774_v26 = vpop.eup %2773  ;;  %v1841_v12 = vmul.f32 %v1809_v49, %v1713_v13  ;;  %v1811_v36 = vadd.f32 1.0, %v2772_v6 }
 0x415   : > { %v1842_v25 = vmul.f32 %v1810_v29, %v1714_v51  ;;  %v1812_v42 = vadd.f32 1.0, %v2774_v26 }
 0x416   : > { %v1843_v48 = vmul.f32 %v1811_v36, %v1715_v27 }
 0x417   : > { %v1860_v40 = vpack.c.bf16 %v1842_v25, %v1841_v12  ;;  %v1844_v4 = vmul.f32 %v1812_v42, %v1716_v50 }
 0x418   : > { %v2776_v8 = vpop.eup %2775 }
 0x419   : > { %v2778_v11 = vpop.eup %2777  ;;  %v1861_v15 = vpack.c.bf16 %v1844_v4, %v1843_v48  ;;  %v1813_v39 = vadd.f32 1.0, %v2776_v8 }
 0x41a   : > { %v1814_v33 = vadd.f32 1.0, %v2778_v11 }
 0x41b   : > { %2493 = vmatmul.mubr.bf16.gmra.mrb[24].mxu1 %v1860_v40  ;;  %v1845_v2 = vmul.f32 %v1813_v39, %v1717_v38 }
 0x41c   : > { %2496 = vmatprep.mubr.bf16.mxu1 %v1861_v15  ;;  %v1846_v20 = vmul.f32 %v1814_v33, %v1718_v47 }
 0x41e   : > { %v1862_v34 = vpack.c.bf16 %v1846_v20, %v1845_v2 }
 0x423   : > { %2497 = vmatmul.mubr.bf16.gmra.mrb[28].mxu1 %v1862_v34 }
 0x4af   : > { %v2470_v1 = vpop.f32.mrb[0].mxu1 }
 0x4b0   : > { %v1977_v5 = vadd.f32 %v2470_v1, %v4178_v14  ;;  %v1968_v18 = vpop.f32.mrb[1].mxu1 }
 0x4b1   : > { %v1969_v63 = vadd.f32 %v4178_v14, %v1968_v18  ;;  %v2471_v3 = vpop.f32.mrb[2].mxu1 }
 0x4b2   : > { %2097 = vst [vmem:[%s4182_s28 + $0x10] sm:$0xff] %v1977_v5  ;;  %v1980_v9 = vadd.f32 %v2471_v3, %v4178_v14  ;;  %v1971_v43 = vpop.f32.mrb[3].mxu1 }
 0x4b3   : > { %2095 = vst [vmem:[%s4182_s28] sm:$0xff] %v1969_v63  ;;  %v1972_v30 = vadd.f32 %v4178_v14, %v1971_v43 }
 0x4b4   : > { %2098 = vst [vmem:[%s4182_s28 + $0x18] sm:$0xff] %v1980_v9 }
 0x4b5   : > { %2096 = vst [vmem:[%s4182_s28 + $0x8] sm:$0xff] %v1972_v30 }
 0x4ba   : > { %v2474_v62 = vpop.f32.mrb[4].mxu1 }
 0x4bb   : > { %v1993_v59 = vadd.f32 %v2474_v62, %v4178_v14  ;;  %v1984_v31 = vpop.f32.mrb[5].mxu1 }
 0x4bc   : > { %v1985_v32 = vadd.f32 %v4178_v14, %v1984_v31  ;;  %v2475_v54 = vpop.f32.mrb[6].mxu1 }
 0x4bd   : > { %2101 = vst [vmem:[%s4182_s28 + $0x30] sm:$0xff] %v1993_v59  ;;  %v1996_v28 = vadd.f32 %v2475_v54, %v4178_v14  ;;  %v1987_v44 = vpop.f32.mrb[7].mxu1 }
 0x4be   : > { %2099 = vst [vmem:[%s4182_s28 + $0x20] sm:$0xff] %v1985_v32  ;;  %v1988_v55 = vadd.f32 %v4178_v14, %v1987_v44 }
 0x4bf   : > { %2102 = vst [vmem:[%s4182_s28 + $0x38] sm:$0xff] %v1996_v28 }
 0x4c0   : > { %2100 = vst [vmem:[%s4182_s28 + $0x28] sm:$0xff] %v1988_v55 }
 0x4cc   : > { %v2478_v23 = vpop.f32.mrb[8].mxu1 }
 0x4cd   : > { %v2009_v16 = vadd.f32 %v2478_v23, %v4178_v14  ;;  %v2000_v17 = vpop.f32.mrb[9].mxu1 }
 0x4ce   : > { %v2001_v56 = vadd.f32 %v4178_v14, %v2000_v17  ;;  %v2479_v52 = vpop.f32.mrb[10].mxu1 }
 0x4cf   : > { %2105 = vst [vmem:[%s4182_s28 + $0x50] sm:$0xff] %v2009_v16  ;;  %v2012_v53 = vadd.f32 %v2479_v52, %v4178_v14  ;;  %v2003_v35 = vpop.f32.mrb[11].mxu1 }
 0x4d0   : > { %2103 = vst [vmem:[%s4182_s28 + $0x40] sm:$0xff] %v2001_v56  ;;  %v2004_v19 = vadd.f32 %v4178_v14, %v2003_v35 }
 0x4d1   : > { %2106 = vst [vmem:[%s4182_s28 + $0x58] sm:$0xff] %v2012_v53 }
 0x4d2   : > { %2104 = vst [vmem:[%s4182_s28 + $0x48] sm:$0xff] %v2004_v19 }
 0x4d6   : > { %v2482_v0 = vpop.f32.mrb[12].mxu1 }
 0x4d7   : > { %v2025_v22 = vadd.f32 %v2482_v0, %v4178_v14  ;;  %v2016_v46 = vpop.f32.mrb[13].mxu1 }
 0x4d8   : > { %v2017_v60 = vadd.f32 %v4178_v14, %v2016_v46  ;;  %v2483_v41 = vpop.f32.mrb[14].mxu1 }
 0x4d9   : > { %2109 = vst [vmem:[%s4182_s28 + $0x70] sm:$0xff] %v2025_v22  ;;  %v2028_v57 = vadd.f32 %v2483_v41, %v4178_v14  ;;  %v2019_v7 = vpop.f32.mrb[15].mxu1 }
 0x4da   : > { %2107 = vst [vmem:[%s4182_s28 + $0x60] sm:$0xff] %v2017_v60  ;;  %v2020_v24 = vadd.f32 %v4178_v14, %v2019_v7 }
 0x4db   : > { %2110 = vst [vmem:[%s4182_s28 + $0x78] sm:$0xff] %v2028_v57 }
 0x4dc   : > { %2108 = vst [vmem:[%s4182_s28 + $0x68] sm:$0xff] %v2020_v24 }
 0x4de   : > { %v2486_v45 = vpop.f32.mrb[16].mxu1 }
 0x4df   : > { %v2041_v10 = vadd.f32 %v2486_v45, %v4178_v14  ;;  %v2032_v37 = vpop.f32.mrb[17].mxu1 }
 0x4e0   : > { %v2033_v21 = vadd.f32 %v4178_v14, %v2032_v37  ;;  %v2487_v61 = vpop.f32.mrb[18].mxu1 }
 0x4e1   : > { %2113 = vst [vmem:[%s4182_s28 + $0x90] sm:$0xff] %v2041_v10  ;;  %v2044_v58 = vadd.f32 %v2487_v61, %v4178_v14  ;;  %v2035_v49 = vpop.f32.mrb[19].mxu1 }
 0x4e2   : > { %2111 = vst [vmem:[%s4182_s28 + $0x80] sm:$0xff] %v2033_v21  ;;  %v2036_v13 = vadd.f32 %v4178_v14, %v2035_v49 }
 0x4e3   : > { %2114 = vst [vmem:[%s4182_s28 + $0x98] sm:$0xff] %v2044_v58 }
 0x4e4   : > { %2112 = vst [vmem:[%s4182_s28 + $0x88] sm:$0xff] %v2036_v13 }
 0x4e6   : > { %v2490_v51 = vpop.f32.mrb[20].mxu1 }
 0x4e7   : > { %v2057_v29 = vadd.f32 %v2490_v51, %v4178_v14  ;;  %v2048_v6 = vpop.f32.mrb[21].mxu1 }
 0x4e8   : > { %v2049_v26 = vadd.f32 %v4178_v14, %v2048_v6  ;;  %v2491_v12 = vpop.f32.mrb[22].mxu1 }
 0x4e9   : > { %2117 = vst [vmem:[%s4182_s28 + $0xb0] sm:$0xff] %v2057_v29  ;;  %v2060_v25 = vadd.f32 %v2491_v12, %v4178_v14  ;;  %v2051_v36 = vpop.f32.mrb[23].mxu1 }
 0x4ea   : > { %2115 = vst [vmem:[%s4182_s28 + $0xa0] sm:$0xff] %v2049_v26  ;;  %v2052_v27 = vadd.f32 %v4178_v14, %v2051_v36 }
 0x4eb   : > { %2118 = vst [vmem:[%s4182_s28 + $0xb8] sm:$0xff] %v2060_v25 }
 0x4ec   : > { %2116 = vst [vmem:[%s4182_s28 + $0xa8] sm:$0xff] %v2052_v27 }
 0x4ee   : > { %v2494_v50 = vpop.f32.mrb[24].mxu1 }
 0x4ef   : > { %v2073_v42 = vadd.f32 %v2494_v50, %v4178_v14  ;;  %v2064_v40 = vpop.f32.mrb[25].mxu1 }
 0x4f0   : > { %v2065_v48 = vadd.f32 %v4178_v14, %v2064_v40  ;;  %v2495_v4 = vpop.f32.mrb[26].mxu1 }
 0x4f1   : > { %2121 = vst [vmem:[%s4182_s28 + $0xd0] sm:$0xff] %v2073_v42  ;;  %v2076_v8 = vadd.f32 %v2495_v4, %v4178_v14  ;;  %v2067_v11 = vpop.f32.mrb[27].mxu1 }
 0x4f2   : > { %2119 = vst [vmem:[%s4182_s28 + $0xc0] sm:$0xff] %v2065_v48  ;;  %v2068_v15 = vadd.f32 %v4178_v14, %v2067_v11 }
 0x4f3   : > { %2122 = vst [vmem:[%s4182_s28 + $0xd8] sm:$0xff] %v2076_v8 }
 0x4f4   : > { %2120 = vst [vmem:[%s4182_s28 + $0xc8] sm:$0xff] %v2068_v15 }
 0x4f6   : > { %v2498_v39 = vpop.f32.mrb[28].mxu1 }
 0x4f7   : > { %v2089_v38 = vadd.f32 %v2498_v39, %v4178_v14  ;;  %v2080_v47 = vpop.f32.mrb[29].mxu1 }
 0x4f8   : > { %v2081_v33 = vadd.f32 %v4178_v14, %v2080_v47  ;;  %v2499_v2 = vpop.f32.mrb[30].mxu1 }
 0x4f9   : > { %2125 = vst [vmem:[%s4182_s28 + $0xf0] sm:$0xff] %v2089_v38  ;;  %v2092_v20 = vadd.f32 %v2499_v2, %v4178_v14  ;;  %v2083_v34 = vpop.f32.mrb[31].mxu1 }
 0x4fa   : > { %2123 = vst [vmem:[%s4182_s28 + $0xe0] sm:$0xff] %v2081_v33  ;;  %v2084_v1 = vadd.f32 %v4178_v14, %v2083_v34 }
 0x4fb   : > { %2126 = vst [vmem:[%s4182_s28 + $0xf8] sm:$0xff] %v2092_v20 }
 0x4fc   : > { %2124 = vst [vmem:[%s4182_s28 + $0xe8] sm:$0xff] %v2084_v1 }
 0x4fd   : > { %2878 = shalt.err (!%p2875_p1)
}
 0x4fe   : > { %s2879_s14 = scalar_lea.hbm %s4247_s30, 4096  ;;  %s2883_s29 = scalar_lea.hbm %s4332_s26, 8192 }
 0x4ff   : > { %p2880_p13 = scmp.ne.s32.totalorder %s4247_s30, %s2879_s14  ;;  %p2884_p4 = scmp.lt.u32.totalorder %s4247_s30, %s4332_s26 }
 0x500   : > { %p2885_p5 = scmp.lt.u32.totalorder %s2883_s29, %s2879_s14  ;;  %p2887_p11 = scmp.lt.u32.totalorder %s2879_s14, %s4247_s30 }
 0x501   : > { %p2881_p6 = pnand %p2880_p13, %p4333_p0 }
 0x502   : > { %p2886_p8 = por %p2885_p5, %p2884_p4 }
 0x503   : > { %p2882_p10 = pneg %p2881_p6 }
 0x504   : > { %p2888_p2 = por %p2887_p11, %p2886_p8 }
 0x506   : > { %p2889_p3 = pnand %p2888_p2, %p2882_p10 }
 0x508   : > { %2892 = shalt.err (!%p2889_p3)
}
 0x509   : > { %s2943_s23 = smov 128   ;;  %s2944_s12 = smov 8  }
 0x50a   : > { %2510 = dma.vmem_to_hbm [thread:$0]  (%p4333_p0), %s4249_s13, 4096, %s4247_s30, %s2128_s21, %s2943_s23, %s2943_s23, %s2944_s12  }
 0x50b PF: > { %s4334_s11 = sld [smem:[#allocation12_spill]]  ;;  %s4335_s28 = sld [smem:[#allocation13_spill]] }
 0x50c   : > { %p4337_p9 = scmp.ge.s32.totalorder %s2935_s20, 2 }
 0x511   : > { %s2156_s27 = sand.u32 1, %s4334_s11   ;;  %p4336_p7 = scmp.ne.s32.totalorder %s4335_s28, 0 }
 0x512   : > { %s2157_s14 = scalar_lea.sflag [#allocation4], %s2156_s27 }
 0x513   : > { %p2524_p12 = pnand %p4337_p9, %p4336_p7 }
 0x515   : > { %2918 = dma.done.wait (!%p2524_p12), %s2157_s14, 4096  }
 0x516   : > { %2920 = vsyncadd (!%p2524_p12), %s2157_s14, 4294963200  ;;  %p25_p1 = scmp.ge.s32.totalorder %s3121_s24, 4   ;;  %s4338_s17 = smov %s2927_s18 }
 0x517   : > { %s4339_s18 = smov %s2931_s19  ;;  %s4340_s19 = smov %s3137_s16 }
 0x518   : > { %s4341_s20 = smov %s3121_s24  ;;  %27 = sbr.rel (!%p25_p1) target bundleno = 8 (0x8), region = 117 }
 0x51f   :  { %2162 = vsyncpa [#allocation3], 1 }
 0x520   :  { %2164 = vsyncpa [#allocation3 + $0x1], 1 }
 0x521   :  { %2165 = vsyncpa [#allocation6], 1 }
 0x522   :  { %2166 = vsyncpa [#allocation4], 1 }
 0x523   :  { %2168 = vsyncpa [#allocation4 + $0x1], 1 }

// kernel: tpu_custom_call.1
= control target key start
LH: loop header
LB: loop body
LE: loop exit
PB: predicated region body
PF: predicated region fallthrough
CT: control target
= control target key end

     0   :  { %s4297_s0 = inlined_call_operand.hbm [shape: bf16[512,128], index: 0, kind: input, shape index: {}]   ;;  %s4298_s1 = inlined_call_operand.vmem [shape: f32[1,128], index: 1, kind: input, shape index: {}]   ;;  %s4299_s2 = inlined_call_operand.vmem [shape: f32[1,128], index: 2, kind: input, shape index: {}]   ;;  %s4300_s3 = inlined_call_operand.vmem [shape: f32[1,128], index: 3, kind: input, shape index: {}]   ;;  %s4301_s4 = inlined_call_operand.hbm [shape: bf16[128,128], index: 4, kind: input, shape index: {}]   ;;  %s4302_s5 = inlined_call_operand.vmem [shape: f32[1,128], index: 5, kind: input, shape index: {}]   ;;  %s4303_s6 = inlined_call_operand.vmem [shape: f32[1,128], index: 6, kind: input, shape index: {}]   ;;  %s4304_s7 = inlined_call_operand.vmem [shape: f32[1,128], index: 7, kind: input, shape index: {}]   ;;  %s4305_s8 = inlined_call_operand.vmem [shape: f32[1,128], index: 8, kind: input, shape index: {}]   ;;  %s4306_s9 = inlined_call_operand.hbm [shape: bf16[128,128], index: 9, kind: input, shape index: {}]   ;;  %s4307_s10 = inlined_call_operand.vmem [shape: f32[1,128], index: 10, kind: input, shape index: {}]   ;;  %s4308_s11 = inlined_call_operand.hbm [shape: f32[512,128], index: 11, kind: output, shape index: {}]  }
   0x1   :  { %4317 = sst [smem:[#allocation14_spill]] %s4308_s11 }
   0x2   :  { %16 = vsyncpa [#allocation3], 0 }
   0x3   :  { %18 = vsyncpa [#allocation3 + $0x1], 0 }
   0x4   :  { %19 = vsyncpa [#allocation6], 0 }
   0x5   :  { %20 = vsyncpa [#allocation4], 0 }
   0x6   :  { %22 = vsyncpa [#allocation4 + $0x1], 0  ;;  %s3005_s17 = smov 0   ;;  %s3007_s18 = smov 0  }
   0x7   :  { %s3009_s19 = smov 0   ;;  %s3011_s20 = smov 0  }
   0x8 LB: > { %4318 = sst [smem:[#allocation12_spill]] %s2923_s17  ;;  %s3026_s21 = sadd.s32 4294967295, %s2935_s20   ;;  %s2935_s20 = sphi %s3011_s20, %s4341_s20   ;;  %s2931_s19 = sphi %s3009_s19, %s4340_s19   ;;  %s2927_s18 = sphi %s3007_s18, %s4339_s18   ;;  %s2923_s17 = sphi %s3005_s17, %s4338_s17  }
   0x9   : > { %s2233_s22 = sadd.s32 4294967294, %s2935_s20   ;;  %p48_p0 = scmp.ne.s32.totalorder %s2927_s18, %s2923_s17 }
   0xa   : > { %p4309_p1 = scmp.eq.s32.totalorder %s3026_s21, 0  ;;  %p288_p3 = scmp.eq.s32.totalorder %s2233_s22, 1 }
   0xb   : > { %p2234_p5 = scmp.ge.s32.totalorder %s2935_s20, 1  ;;  %p295_p7 = scmp.lt.s32.totalorder %s2935_s20, 3 }
   0xc   : > { %p3035_p4 = por %p4309_p1, %p48_p0  ;;  %p3040_p6 = por %p288_p3, %p48_p0 }
   0xd   : > { %p3045_p8 = pnand %p2234_p5, %p295_p7  ;;  %s2937_s26 = smov [#allocation5]  }
   0xe   : > { %s4319_s23 = scalar_select %p3035_p4, 1, 0 }
   0xf   : > { %s4320_s24 = scalar_select %p3040_p6, 1, 0 }
  0x10   : > { %s316_s27 = sshll.u32 %s2937_s26, 4  ;;  %p2512_p9 = pneg %p3045_p8  ;;  %s3049_s27 = int_to_ptr.vmem [resolvable:$true] %s316_s27 }
  0x11   : > { %4321 = sst [smem:[#allocation13_spill]] %s4320_s24  ;;  %s2938_s29 = smov [#allocation7]  }
  0x12   : > { %p3056_p11 = pnand %p2512_p9, %p4309_p1  ;;  %s341_s30 = sshll.u32 %s2938_s29, 4  ;;  %s3060_s30 = int_to_ptr.vmem [resolvable:$true] %s341_s30 }
  0x13   : > { %s2779_s14 = scalar_lea.hbm %s4301_s4, 1024 }
  0x14   : > { %p2780_p12 = scmp.ne.s32.totalorder %s4301_s4, %s2779_s14  ;;  %p2781_p13 = pneg %p3056_p11 }
  0x15   : > { %p2786_p5 = scmp.lt.u32.totalorder %s2779_s14, %s4301_s4 }
  0x16   : > { %p2782_p0 = pnand %p2781_p13, %p2780_p12 }
  0x18   : > { %p2783_p3 = pneg %p2782_p0 }
  0x1a   : > { %p2788_p7 = pnand %p2786_p5, %p2783_p3 }
  0x1c   : > { %2791 = shalt.err (!%p2788_p7)
}
  0x1d   : > { %s2792_s29 = scalar_lea.vmem %s3049_s27, 1024  ;;  %p2800_p2 = scmp.lt.s32.totalorder %s3049_s27, %s3049_s27 }
  0x1e   : > { %p2793_p9 = scmp.ne.s32.totalorder %s3049_s27, %s2792_s29  ;;  %p2801_p12 = scmp.lt.s32.totalorder %s2792_s29, %s2792_s29 }
  0x20   : > { %p2795_p10 = pnand %p2793_p9, %p2781_p13  ;;  %p2802_p0 = por %p2801_p12, %p2800_p2 }
  0x22   : > { %p2796_p1 = pneg %p2795_p10 }
  0x24   : > { %p2803_p6 = pnand %p2802_p0, %p2796_p1 }
  0x26   : > { %2806 = shalt.err (!%p2803_p6)
}
  0x27   : > { %s4313_s12 = smov 64   ;;  %s4314_s13 = smov 4  }
  0x28   : > { %2515 = dma.hbm_to_vmem [thread:$0]  (!%p3056_p11), %s4301_s4, 1024, %s3049_s27, [#allocation6], %s4313_s12, %s4313_s12, %s4314_s13  }
  0x29   : > { %s2807_s26 = scalar_lea.hbm %s4306_s9, 1024 }
  0x2a   : > { %p2808_p1 = scmp.ne.s32.totalorder %s4306_s9, %s2807_s26  ;;  %p2814_p10 = scmp.lt.u32.totalorder %s2807_s26, %s4306_s9 }
  0x2c   : > { %p2810_p2 = pnand %p2808_p1, %p2781_p13 }
  0x2e   : > { %p2811_p6 = pneg %p2810_p2 }
  0x30   : > { %p2816_p3 = pnand %p2814_p10, %p2811_p6 }
  0x32   : > { %2819 = shalt.err (!%p2816_p3)
}
  0x33   : > { %s2820_s27 = scalar_lea.vmem %s3060_s30, 1024  ;;  %p2828_p12 = scmp.lt.s32.totalorder %s3060_s30, %s3060_s30 }
  0x34   : > { %p2821_p5 = scmp.ne.s32.totalorder %s3060_s30, %s2820_s27  ;;  %p2829_p0 = scmp.lt.s32.totalorder %s2820_s27, %s2820_s27 }
  0x36   : > { %p2823_p7 = pnand %p2821_p5, %p2781_p13  ;;  %p2830_p1 = por %p2829_p0, %p2828_p12 }
  0x38   : > { %p2824_p9 = pneg %p2823_p7 }
  0x3a   : > { %p2831_p2 = pnand %p2830_p1, %p2824_p9 }
  0x3c   : > { %2834 = shalt.err (!%p2831_p2)
}
  0x3d   : > { %2518 = dma.hbm_to_vmem [thread:$0]  (!%p3056_p11), %s4306_s9, 1024, %s3060_s30, [#allocation6], %s4313_s12, %s4313_s12, %s4314_s13  }
  0x3e   : > { %s3121_s24 = sadd.s32 1, %s2935_s20   ;;  %s35_s28 = sadd.s32 1, %s2931_s19 }
  0x3f   : > { %s32_s14 = ssub.s32 %s2935_s20, %s3121_s24  ;;  %p42_p13 = scmp.ne.s32.totalorder %s2931_s19, %s2927_s18 }
  0x40   : > { %p33_p6 = scmp.eq.s32.totalorder %s32_s14, 0  ;;  %p43_p10 = scmp.eq.s32.totalorder %s2935_s20, 0 }
  0x41   : > { %p4324_p3 = scmp.eq.s32.totalorder %s3026_s21, 1  ;;  %p2529_p7 = scmp.lt.s32.totalorder %s2935_s20, 2 }
  0x42   : > { %s3137_s16 = scalar_select %p33_p6, %s2931_s19, %s35_s28  }
  0x43   : > { %p3131_p5 = por %p4324_p3, %p42_p13  ;;  %p44_p9 = por %p43_p10, %p42_p13 }
  0x44   : > { %s358_s22 = sand.u32 1, %s2931_s19   ;;  %s2275_s30 = sshll.u32 %s2935_s20, 11 }
  0x45   : > { %s4325_s15 = scalar_select %p3131_p5, 1, 0 }
  0x46   : > { %s2238_s26 = sshll.u32 %s358_s22, 7  ;;  %s3144_s11 = scalar_lea.hbm %s4297_s0, %s2275_s30 }
  0x47   : > { %s362_s17 = scalar_lea.vmem [#allocation2], %s2238_s26  ;;  %p3148_p11 = pnand %p2529_p7, %p44_p9 }
  0x48   : > { %s369_s14 = sshll.u32 %s362_s17, 4  ;;  %s3152_s12 = scalar_lea.sflag [#allocation3], %s358_s22  ;;  %s3146_s14 = int_to_ptr.vmem [resolvable:$true] %s369_s14 }
  0x49   : > { %s2835_s13 = scalar_lea.hbm %s3144_s11, 2048  ;;  %p2837_p0 = pneg %p3148_p11 }
  0x4a   : > { %p2836_p12 = scmp.ne.s32.totalorder %s3144_s11, %s2835_s13  ;;  %s2840_s29 = scalar_lea.hbm %s4297_s0, 4096 }
  0x4b   : > { %p2841_p13 = scmp.lt.u32.totalorder %s3144_s11, %s4297_s0  ;;  %p2842_p6 = scmp.lt.u32.totalorder %s2840_s29, %s2835_s13 }
  0x4c   : > { %p2838_p1 = pnand %p2837_p0, %p2836_p12  ;;  %p2844_p3 = scmp.lt.u32.totalorder %s2835_s13, %s3144_s11 }
  0x4d   : > { %p2843_p10 = por %p2842_p6, %p2841_p13 }
  0x4e   : > { %p2839_p2 = pneg %p2838_p1 }
  0x4f   : > { %p2845_p7 = por %p2844_p3, %p2843_p10 }
  0x51   : > { %p2846_p9 = pnand %p2845_p7, %p2839_p2 }
  0x53   : > { %2849 = shalt.err (!%p2846_p9)
}
  0x54   : > { %s2850_s22 = scalar_lea.vmem %s3146_s14, 2048  ;;  %s2941_s26 = smov [#allocation2]  }
  0x55   : > { %p2851_p12 = scmp.ne.s32.totalorder %s3146_s14, %s2850_s22  ;;  %s2855_s30 = sshll.u32 %s2941_s26, 4  ;;  %s2856_s30 = int_to_ptr.vmem [resolvable:$false] %s2855_s30 }
  0x56   : > { %s2857_s27 = scalar_lea.vmem %s2856_s30, 4096  ;;  %p2858_p4 = scmp.lt.s32.totalorder %s3146_s14, %s2856_s30 }
  0x57   : > { %p2853_p1 = pnand %p2851_p12, %p2837_p0  ;;  %p2859_p13 = scmp.lt.s32.totalorder %s2857_s27, %s2850_s22 }
  0x59   : > { %p2854_p5 = pneg %p2853_p1  ;;  %p2860_p6 = por %p2859_p13, %p2858_p4 }
  0x5b   : > { %p2861_p10 = pnand %p2860_p6, %p2854_p5 }
  0x5d   : > { %2864 = shalt.err (!%p2861_p10)
}
  0x5e   : > { %s4327_s13 = smov 4   ;;  %s4328_s29 = smov 64  }
  0x5f   : > { %2522 = dma.hbm_to_vmem [thread:$0]  (!%p3148_p11), %s3144_s11, 2048, %s3146_s14, %s3152_s12, %s4328_s29, %s4328_s29, %s4327_s13  }
  0x60   : > { %381 = sbr.rel (%p3045_p8) target bundleno = 1291 (0x50b), region = 64  ;;  %s3186_s17 = sand.u32 (!%p3045_p8), 1, %s2927_s18  }
  0x61   : > { %s2242_s22 = sshll.u32 (!%p3045_p8), %s3186_s17, 7  ;;  %s384_s26 = scalar_lea.sflag (!%p3045_p8), [#allocation3], %s3186_s17 }
  0x62   : > { %s3190_s30 = scalar_lea.vmem (!%p3045_p8), [#allocation2], %s2242_s22  ;;  %p4329_p4 = scmp.ne.s32.totalorder (!%p3045_p8), %s4319_s23, 0 }
  0x67   : > { %2910 = dma.done.wait (%p4329_p4), %s384_s26, 2048  }
  0x68   : > { %2912 = vsyncadd (%p4329_p4), %s384_s26, 4294965248  ;;  %p4330_p5 = scmp.eq.s32.totalorder %s3026_s21, 0 }
  0x6a   : > { %2914 = dma.done.wait (%p4330_p5), [#allocation6], 2048   ;;  %p4331_p8 = pmov %p4330_p5 }
  0x6b   : > { %v3201_v0 = vld [vmem:[%s3190_s30] sm:$0xff]   ;;  %v3204_v1 = vld [vmem:[%s3190_s30 + $0x8] sm:$0xff]   ;;  %v3215_v6 = vld [vmem:[%s3190_s30 + $0x10] sm:$0xff]   ;;  %s2245_s12 = sshll.u32 %s3186_s17, 8  ;;  %s2276_s27 = sshll.u32 %s3026_s21, 12 }
  0x6c   : > { %2916 = vsyncadd (%p4331_p8), [#allocation6], 4294965248  ;;  %v2279_v2 = vunpack.c.l.bf16 %v3201_v0  ;;  %v2283_v3 = vunpack.c.l.bf16 %v3204_v1  ;;  %v2280_v4 = vunpack.c.h.bf16 %v3201_v0  ;;  %v2284_v5 = vunpack.c.h.bf16 %v3204_v1  ;;  %v3218_v7 = vld [vmem:[%s3190_s30 + $0x18] sm:$0xff]   ;;  %v3227_v10 = vld [vmem:[%s3190_s30 + $0x20] sm:$0xff]   ;;  %s4182_s28 = scalar_lea.vmem [#allocation8], %s2245_s12  ;;  %s4332_s26 = sld [smem:[#allocation14_spill]] }
  0x6d   : > { %v2287_v8 = vunpack.c.l.bf16 %v3215_v6  ;;  %v2288_v9 = vunpack.c.h.bf16 %v3215_v6  ;;  %v2291_v11 = vunpack.c.l.bf16 %v3218_v7  ;;  %v2292_v12 = vunpack.c.h.bf16 %v3218_v7  ;;  %v3242_v15 = vld [vmem:[%s3190_s30 + $0x28] sm:$0xff]   ;;  %v3251_v18 = vld [vmem:[%s3190_s30 + $0x30] sm:$0xff]   ;;  %v3260_v21 = vld [vmem:[%s3190_s30 + $0x38] sm:$0xff]   ;;  %s2141_s13 = sshll.u32 %s4182_s28, 4  ;;  %s2128_s21 = scalar_lea.sflag [#allocation4], %s3186_s17  ;;  %s4249_s13 = int_to_ptr.vmem [resolvable:$true] %s2141_s13 }
  0x6e   : > { %501 = vadd.xlane.f32.xlu0 %v2279_v2  ;;  %505 = vadd.xlane.f32.xlu1 %v2283_v3  ;;  %v2295_v13 = vunpack.c.l.bf16 %v3227_v10  ;;  %v2296_v14 = vunpack.c.h.bf16 %v3227_v10  ;;  %v2299_v16 = vunpack.c.l.bf16 %v3242_v15  ;;  %v2300_v17 = vunpack.c.h.bf16 %v3242_v15  ;;  %v3269_v24 = vld [vmem:[%s3190_s30 + $0x40] sm:$0xff]   ;;  %v3278_v27 = vld [vmem:[%s3190_s30 + $0x48] sm:$0xff]   ;;  %v3287_v30 = vld [vmem:[%s3190_s30 + $0x50] sm:$0xff]   ;;  %s2865_s23 = scalar_lea.vmem %s4249_s13, 4096  ;;  %p4333_p0 = scmp.ne.s32.totalorder %s4325_s15, 0 }
  0x6f   : > { %v2303_v19 = vunpack.c.l.bf16 %v3251_v18  ;;  %v2304_v20 = vunpack.c.h.bf16 %v3251_v18  ;;  %v2307_v22 = vunpack.c.l.bf16 %v3260_v21  ;;  %v2308_v23 = vunpack.c.h.bf16 %v3260_v21  ;;  %v3296_v33 = vld [vmem:[%s3190_s30 + $0x58] sm:$0xff]   ;;  %v3305_v36 = vld [vmem:[%s3190_s30 + $0x60] sm:$0xff]   ;;  %v3314_v39 = vld [vmem:[%s3190_s30 + $0x68] sm:$0xff]   ;;  %p2866_p11 = scmp.ne.s32.totalorder %s4249_s13, %s2865_s23  ;;  %s2942_s25 = smov [#allocation8]  }
  0x70   : > { %v2311_v25 = vunpack.c.l.bf16 %v3269_v24  ;;  %v2312_v26 = vunpack.c.h.bf16 %v3269_v24  ;;  %v2315_v28 = vunpack.c.l.bf16 %v3278_v27  ;;  %v2316_v29 = vunpack.c.h.bf16 %v3278_v27  ;;  %v3323_v42 = vld [vmem:[%s3190_s30 + $0x70] sm:$0xff]   ;;  %v3332_v45 = vld [vmem:[%s3190_s30 + $0x78] sm:$0xff]   ;;  %v2571_v48 = vld [vmem:[#allocation5] sm:$0xff]   ;;  %s2869_s12 = sshll.u32 %s2942_s25, 4  ;;  %s2870_s12 = int_to_ptr.vmem [resolvable:$false] %s2869_s12 }
  0x71   : > { %v2319_v31 = vunpack.c.l.bf16 %v3287_v30  ;;  %v2320_v32 = vunpack.c.h.bf16 %v3287_v30  ;;  %v2323_v34 = vunpack.c.l.bf16 %v3296_v33  ;;  %v2324_v35 = vunpack.c.h.bf16 %v3296_v33  ;;  %2404 = vmatprep.subr.bf16.mxu0 %v2571_v48  ;;  %v3347_v53 = vld [vmem:[%s4298_s1] ss:$0 sm:$0xff]  ;;  %v2573_v18 = vld [vmem:[#allocation5 + $0x10] sm:$0xff]   ;;  %p2867_p2 = pnand %p2866_p11, %p4333_p0  ;;  %s2871_s11 = scalar_lea.vmem %s2870_s12, 8192 }
  0x72   : > { %503 = vadd.xlane.f32.xlu0 %v2280_v4  ;;  %507 = vadd.xlane.f32.xlu1 %v2284_v5  ;;  %v2327_v37 = vunpack.c.l.bf16 %v3305_v36  ;;  %v2328_v38 = vunpack.c.h.bf16 %v3305_v36  ;;  %v2331_v40 = vunpack.c.l.bf16 %v3314_v39  ;;  %v2332_v41 = vunpack.c.h.bf16 %v3314_v39  ;;  %s4247_s30 = scalar_lea.hbm %s4332_s26, %s2276_s27  ;;  %p2872_p7 = scmp.lt.s32.totalorder %s4249_s13, %s2870_s12 }
  0x73   : > { %v2335_v43 = vunpack.c.l.bf16 %v3323_v42  ;;  %v2336_v44 = vunpack.c.h.bf16 %v3323_v42  ;;  %v2339_v46 = vunpack.c.l.bf16 %v3332_v45  ;;  %v2340_v47 = vunpack.c.h.bf16 %v3332_v45  ;;  %2405 = vmatpush3.bf16.msra.mxu0 %v2571_v48  ;;  %p2868_p3 = pneg %p2867_p2  ;;  %p2873_p9 = scmp.lt.s32.totalorder %s2871_s11, %s2865_s23 }
  0x75   : > { %p2874_p12 = por %p2873_p9, %p2872_p7 }
  0x76   : > { %509 = vadd.xlane.f32.xlu0 %v2287_v8  ;;  %511 = vadd.xlane.f32.xlu1 %v2288_v9 }
  0x77   : > { %p2875_p1 = pnand %p2874_p12, %p2868_p3 }
  0x7a   : > { %513 = vadd.xlane.f32.xlu0 %v2291_v11  ;;  %515 = vadd.xlane.f32.xlu1 %v2292_v12 }
  0x7e   : > { %517 = vadd.xlane.f32.xlu0 %v2295_v13  ;;  %519 = vadd.xlane.f32.xlu1 %v2296_v14 }
  0x82   : > { %521 = vadd.xlane.f32.xlu0 %v2299_v16  ;;  %523 = vadd.xlane.f32.xlu1 %v2300_v17 }
  0x86   : > { %525 = vadd.xlane.f32.xlu0 %v2303_v19  ;;  %527 = vadd.xlane.f32.xlu1 %v2304_v20 }
  0x8a   : > { %529 = vadd.xlane.f32.xlu0 %v2307_v22  ;;  %531 = vadd.xlane.f32.xlu1 %v2308_v23 }
  0x8e   : > { %533 = vadd.xlane.f32.xlu0 %v2311_v25  ;;  %535 = vadd.xlane.f32.xlu1 %v2312_v26 }
  0x92   : > { %537 = vadd.xlane.f32.xlu0 %v2315_v28  ;;  %539 = vadd.xlane.f32.xlu1 %v2316_v29 }
  0x96   : > { %541 = vadd.xlane.f32.xlu0 %v2319_v31  ;;  %543 = vadd.xlane.f32.xlu1 %v2320_v32 }
  0x9a   : > { %545 = vadd.xlane.f32.xlu0 %v2323_v34  ;;  %547 = vadd.xlane.f32.xlu1 %v2324_v35 }
  0x9e   : > { %549 = vadd.xlane.f32.xlu0 %v2327_v37  ;;  %551 = vadd.xlane.f32.xlu1 %v2328_v38 }
  0xa2   : > { %553 = vadd.xlane.f32.xlu0 %v2331_v40  ;;  %555 = vadd.xlane.f32.xlu1 %v2332_v41 }
  0xa6   : > { %557 = vadd.xlane.f32.xlu0 %v2335_v43  ;;  %559 = vadd.xlane.f32.xlu1 %v2336_v44 }
  0xaa   : > { %561 = vadd.xlane.f32.xlu0 %v2339_v46  ;;  %563 = vadd.xlane.f32.xlu1 %v2340_v47 }
  0xfb   : > { %v502_v49 = vpop.xlane.xlu0 %501  ;;  %v506_v50 = vpop.xlane.xlu1 %505 }
  0xfc   : > { %v565_v51 = vmul.f32 0.03125, %v502_v49  ;;  %v567_v52 = vmul.f32 0.03125, %v506_v50 }
  0xfe   : > { %v597_v54 = vsub.f32 %v2279_v2, %v565_v51  ;;  %v599_v55 = vsub.f32 %v2283_v3, %v567_v52 }
  0xff   : > { %v504_v56 = vpop.xlane.xlu0 %503  ;;  %v508_v57 = vpop.xlane.xlu1 %507 }
 0x100   : > { %v566_v58 = vmul.f32 0.03125, %v504_v56  ;;  %v568_v59 = vmul.f32 0.03125, %v508_v57  ;;  %v3354_v60 = vmul.f32 %v3347_v53, %v597_v54  ;;  %v3357_v61 = vmul.f32 %v3347_v53, %v599_v55 }
 0x102   : > { %v598_v62 = vsub.f32 %v2280_v4, %v566_v58  ;;  %v600_v63 = vsub.f32 %v2284_v5, %v568_v59  ;;  %v668_v2 = vmul.f32 %v3354_v60, %v3354_v60  ;;  %v670_v49 = vmul.f32 %v3357_v61, %v3357_v61 }
 0x103   : > { %v510_v3 = vpop.xlane.xlu0 %509  ;;  %v512_v48 = vpop.xlane.xlu1 %511 }
 0x104   : > { %v569_v50 = vmul.f32 0.03125, %v510_v3  ;;  %700 = vadd.xlane.f32.xlu0 %v668_v2  ;;  %v570_v51 = vmul.f32 0.03125, %v512_v48  ;;  %v3368_v52 = vmul.f32 %v3347_v53, %v598_v62  ;;  %v3371_v0 = vmul.f32 %v3347_v53, %v600_v63 }
 0x106   : > { %v601_v1 = vsub.f32 %v2287_v8, %v569_v50  ;;  %v602_v4 = vsub.f32 %v2288_v9, %v570_v51  ;;  %v669_v5 = vmul.f32 %v3368_v52, %v3368_v52  ;;  %v671_v56 = vmul.f32 %v3371_v0, %v3371_v0 }
 0x107   : > { %v514_v54 = vpop.xlane.xlu0 %513  ;;  %v516_v55 = vpop.xlane.xlu1 %515 }
 0x108   : > { %v571_v57 = vmul.f32 0.03125, %v514_v54  ;;  %704 = vadd.xlane.f32.xlu0 %v670_v49  ;;  %702 = vadd.xlane.f32.xlu1 %v669_v5  ;;  %v572_v58 = vmul.f32 0.03125, %v516_v55  ;;  %v3382_v59 = vmul.f32 %v3347_v53, %v601_v1  ;;  %v3385_v8 = vmul.f32 %v3347_v53, %v602_v4 }
 0x10a   : > { %v603_v6 = vsub.f32 %v2291_v11, %v571_v57  ;;  %v604_v9 = vsub.f32 %v2292_v12, %v572_v58  ;;  %v672_v62 = vmul.f32 %v3382_v59, %v3382_v59  ;;  %v673_v3 = vmul.f32 %v3385_v8, %v3385_v8 }
 0x10b   : > { %v518_v63 = vpop.xlane.xlu0 %517  ;;  %v520_v2 = vpop.xlane.xlu1 %519 }
 0x10c   : > { %v573_v48 = vmul.f32 0.03125, %v518_v63  ;;  %706 = vadd.xlane.f32.xlu1 %v671_v56  ;;  %708 = vadd.xlane.f32.xlu0 %v672_v62  ;;  %v574_v49 = vmul.f32 0.03125, %v520_v2  ;;  %v3396_v50 = vmul.f32 %v3347_v53, %v603_v6  ;;  %v3399_v11 = vmul.f32 %v3347_v53, %v604_v9  ;;  %v2572_v62 = vld [vmem:[#allocation5 + $0x8] sm:$0xff]  }
 0x10d   : > { %2406 = vmatprep.subr.bf16.mxu0 %v2572_v62 }
 0x10e   : > { %v605_v7 = vsub.f32 %v2295_v13, %v573_v48  ;;  %v606_v12 = vsub.f32 %v2296_v14, %v574_v49  ;;  %v674_v51 = vmul.f32 %v3396_v50, %v3396_v50  ;;  %v675_v5 = vmul.f32 %v3399_v11, %v3399_v11  ;;  %2407 = vmatpush3.bf16.msra.mxu0 %v2572_v62 }
 0x10f   : > { %v522_v1 = vpop.xlane.xlu0 %521  ;;  %v524_v4 = vpop.xlane.xlu1 %523  ;;  %2408 = vmatprep.subr.bf16.mxu0 %v2573_v18 }
 0x110   : > { %v575_v54 = vmul.f32 0.03125, %v522_v1  ;;  %710 = vadd.xlane.f32.xlu1 %v673_v3  ;;  %712 = vadd.xlane.f32.xlu0 %v674_v51  ;;  %v576_v55 = vmul.f32 0.03125, %v524_v4  ;;  %v3410_v56 = vmul.f32 %v3347_v53, %v605_v7  ;;  %v3413_v13 = vmul.f32 %v3347_v53, %v606_v12 }
 0x112   : > { %v607_v10 = vsub.f32 %v2299_v16, %v575_v54  ;;  %v608_v14 = vsub.f32 %v2300_v17, %v576_v55  ;;  %v676_v57 = vmul.f32 %v3410_v56, %v3410_v56  ;;  %v677_v9 = vmul.f32 %v3413_v13, %v3413_v13  ;;  %2409 = vmatpush3.bf16.msra.mxu0 %v2573_v18 }
 0x113   : > { %v526_v58 = vpop.xlane.xlu0 %525  ;;  %v528_v6 = vpop.xlane.xlu1 %527 }
 0x114   : > { %v577_v63 = vmul.f32 0.03125, %v526_v58  ;;  %714 = vadd.xlane.f32.xlu1 %v675_v5  ;;  %716 = vadd.xlane.f32.xlu0 %v676_v57  ;;  %v578_v2 = vmul.f32 0.03125, %v528_v6  ;;  %v3424_v3 = vmul.f32 %v3347_v53, %v607_v10  ;;  %v3427_v16 = vmul.f32 %v3347_v53, %v608_v14 }
 0x116   : > { %v609_v15 = vsub.f32 %v2303_v19, %v577_v63  ;;  %v610_v17 = vsub.f32 %v2304_v20, %v578_v2  ;;  %v678_v48 = vmul.f32 %v3424_v3, %v3424_v3  ;;  %v679_v12 = vmul.f32 %v3427_v16, %v3427_v16 }
 0x117   : > { %v530_v49 = vpop.xlane.xlu0 %529  ;;  %v532_v7 = vpop.xlane.xlu1 %531 }
 0x118   : > { %v579_v51 = vmul.f32 0.03125, %v530_v49  ;;  %718 = vadd.xlane.f32.xlu1 %v677_v9  ;;  %720 = vadd.xlane.f32.xlu0 %v678_v48  ;;  %v580_v1 = vmul.f32 0.03125, %v532_v7  ;;  %v3438_v4 = vmul.f32 %v3347_v53, %v609_v15  ;;  %v3441_v19 = vmul.f32 %v3347_v53, %v610_v17 }
 0x11a   : > { %v611_v20 = vsub.f32 %v2307_v22, %v579_v51  ;;  %v612_v5 = vsub.f32 %v2308_v23, %v580_v1  ;;  %v680_v54 = vmul.f32 %v3438_v4, %v3438_v4  ;;  %v681_v14 = vmul.f32 %v3441_v19, %v3441_v19  ;;  %v2574_v22 = vld [vmem:[#allocation5 + $0x18] sm:$0xff]  }
 0x11b   : > { %v534_v55 = vpop.xlane.xlu0 %533  ;;  %v536_v10 = vpop.xlane.xlu1 %535  ;;  %2410 = vmatprep.subr.bf16.mxu0 %v2574_v22 }
 0x11c   : > { %v581_v57 = vmul.f32 0.03125, %v534_v55  ;;  %722 = vadd.xlane.f32.xlu1 %v679_v12  ;;  %724 = vadd.xlane.f32.xlu0 %v680_v54  ;;  %v582_v58 = vmul.f32 0.03125, %v536_v10  ;;  %v3452_v6 = vmul.f32 %v3347_v53, %v611_v20  ;;  %v3455_v21 = vmul.f32 %v3347_v53, %v612_v5 }
 0x11d   : > { %2411 = vmatpush3.bf16.msra.mxu0 %v2574_v22 }
 0x11e   : > { %v613_v23 = vsub.f32 %v2311_v25, %v581_v57  ;;  %v614_v9 = vsub.f32 %v2312_v26, %v582_v58  ;;  %v682_v62 = vmul.f32 %v3452_v6, %v3452_v6  ;;  %v683_v15 = vmul.f32 %v3455_v21, %v3455_v21  ;;  %v2575_v25 = vld [vmem:[#allocation5 + $0x20] sm:$0xff]  }
 0x11f   : > { %v538_v63 = vpop.xlane.xlu0 %537  ;;  %v540_v2 = vpop.xlane.xlu1 %539  ;;  %2412 = vmatprep.subr.bf16.mxu0 %v2575_v25 }
 0x120   : > { %v583_v17 = vmul.f32 0.03125, %v538_v63  ;;  %726 = vadd.xlane.f32.xlu1 %v681_v14  ;;  %728 = vadd.xlane.f32.xlu0 %v682_v62  ;;  %v584_v48 = vmul.f32 0.03125, %v540_v2  ;;  %v3466_v49 = vmul.f32 %v3347_v53, %v613_v23  ;;  %v3469_v24 = vmul.f32 %v3347_v53, %v614_v9 }
 0x121   : > { %2413 = vmatpush3.bf16.msra.mxu0 %v2575_v25 }
 0x122   : > { %v615_v26 = vsub.f32 %v2315_v28, %v583_v17  ;;  %v616_v7 = vsub.f32 %v2316_v29, %v584_v48  ;;  %v684_v12 = vmul.f32 %v3466_v49, %v3466_v49  ;;  %v685_v18 = vmul.f32 %v3469_v24, %v3469_v24  ;;  %v2576_v28 = vld [vmem:[#allocation5 + $0x28] sm:$0xff]  }
 0x123   : > { %v542_v51 = vpop.xlane.xlu0 %541  ;;  %v544_v1 = vpop.xlane.xlu1 %543  ;;  %2414 = vmatprep.subr.bf16.mxu0 %v2576_v28 }
 0x124   : > { %v585_v20 = vmul.f32 0.03125, %v542_v51  ;;  %730 = vadd.xlane.f32.xlu1 %v683_v15  ;;  %732 = vadd.xlane.f32.xlu0 %v684_v12  ;;  %v586_v5 = vmul.f32 0.03125, %v544_v1  ;;  %v3480_v54 = vmul.f32 %v3347_v53, %v615_v26  ;;  %v3483_v27 = vmul.f32 %v3347_v53, %v616_v7 }
 0x125   : > { %2415 = vmatpush3.bf16.msra.mxu0 %v2576_v28 }
 0x126   : > { %v617_v29 = vsub.f32 %v2319_v31, %v585_v20  ;;  %v618_v55 = vsub.f32 %v2320_v32, %v586_v5  ;;  %v686_v10 = vmul.f32 %v3480_v54, %v3480_v54  ;;  %v687_v58 = vmul.f32 %v3483_v27, %v3483_v27  ;;  %v2577_v31 = vld [vmem:[#allocation5 + $0x30] sm:$0xff]  }
 0x127   : > { %v546_v14 = vpop.xlane.xlu0 %545  ;;  %v548_v57 = vpop.xlane.xlu1 %547  ;;  %2416 = vmatprep.subr.bf16.mxu0 %v2577_v31 }
 0x128   : > { %v587_v22 = vmul.f32 0.03125, %v546_v14  ;;  %734 = vadd.xlane.f32.xlu1 %v685_v18  ;;  %736 = vadd.xlane.f32.xlu0 %v686_v10  ;;  %v588_v23 = vmul.f32 0.03125, %v548_v57  ;;  %v3494_v9 = vmul.f32 %v3347_v53, %v617_v29  ;;  %v3497_v30 = vmul.f32 %v3347_v53, %v618_v55 }
 0x129   : > { %2417 = vmatpush3.bf16.msra.mxu0 %v2577_v31 }
 0x12a   : > { %v619_v32 = vsub.f32 %v2323_v34, %v587_v22  ;;  %v620_v62 = vsub.f32 %v2324_v35, %v588_v23  ;;  %v688_v63 = vmul.f32 %v3494_v9, %v3494_v9  ;;  %v689_v17 = vmul.f32 %v3497_v30, %v3497_v30  ;;  %v2578_v34 = vld [vmem:[#allocation5 + $0x38] sm:$0xff]  }
 0x12b   : > { %v550_v2 = vpop.xlane.xlu0 %549  ;;  %v552_v15 = vpop.xlane.xlu1 %551  ;;  %2418 = vmatprep.subr.bf16.mxu0 %v2578_v34 }
 0x12c   : > { %v589_v48 = vmul.f32 0.03125, %v550_v2  ;;  %738 = vadd.xlane.f32.xlu1 %v687_v58  ;;  %740 = vadd.xlane.f32.xlu0 %v688_v63  ;;  %v590_v25 = vmul.f32 0.03125, %v552_v15  ;;  %v3508_v26 = vmul.f32 %v3347_v53, %v619_v32  ;;  %v3511_v33 = vmul.f32 %v3347_v53, %v620_v62 }
 0x12d   : > { %2419 = vmatpush3.bf16.msra.mxu0 %v2578_v34 }
 0x12e   : > { %v621_v35 = vsub.f32 %v2327_v37, %v589_v48  ;;  %v622_v7 = vsub.f32 %v2328_v38, %v590_v25  ;;  %v690_v12 = vmul.f32 %v3508_v26, %v3508_v26  ;;  %v691_v18 = vmul.f32 %v3511_v33, %v3511_v33 }
 0x12f   : > { %v554_v51 = vpop.xlane.xlu0 %553  ;;  %v556_v1 = vpop.xlane.xlu1 %555 }
 0x130   : > { %v591_v20 = vmul.f32 0.03125, %v554_v51  ;;  %742 = vadd.xlane.f32.xlu1 %v689_v17  ;;  %744 = vadd.xlane.f32.xlu0 %v690_v12  ;;  %v592_v5 = vmul.f32 0.03125, %v556_v1  ;;  %v3522_v28 = vmul.f32 %v3347_v53, %v621_v35  ;;  %v3525_v36 = vmul.f32 %v3347_v53, %v622_v7 }
 0x132   : > { %v623_v37 = vsub.f32 %v2331_v40, %v591_v20  ;;  %v624_v38 = vsub.f32 %v2332_v41, %v592_v5  ;;  %v692_v29 = vmul.f32 %v3522_v28, %v3522_v28  ;;  %v693_v14 = vmul.f32 %v3525_v36, %v3525_v36 }
 0x133   : > { %v558_v55 = vpop.xlane.xlu0 %557  ;;  %v560_v10 = vpop.xlane.xlu1 %559 }
 0x134   : > { %v593_v57 = vmul.f32 0.03125, %v558_v55  ;;  %746 = vadd.xlane.f32.xlu1 %v691_v18  ;;  %748 = vadd.xlane.f32.xlu0 %v692_v29  ;;  %v594_v58 = vmul.f32 0.03125, %v560_v10  ;;  %v3536_v22 = vmul.f32 %v3347_v53, %v623_v37  ;;  %v3539_v40 = vmul.f32 %v3347_v53, %v624_v38 }
 0x136   : > { %v625_v39 = vsub.f32 %v2335_v43, %v593_v57  ;;  %v626_v41 = vsub.f32 %v2336_v44, %v594_v58  ;;  %v694_v23 = vmul.f32 %v3536_v22, %v3536_v22  ;;  %v695_v62 = vmul.f32 %v3539_v40, %v3539_v40 }
 0x137   : > { %v562_v31 = vpop.xlane.xlu0 %561  ;;  %v564_v32 = vpop.xlane.xlu1 %563 }
 0x138   : > { %v595_v63 = vmul.f32 0.03125, %v562_v31  ;;  %750 = vadd.xlane.f32.xlu1 %v693_v14  ;;  %752 = vadd.xlane.f32.xlu0 %v694_v23  ;;  %v596_v2 = vmul.f32 0.03125, %v564_v32  ;;  %v3550_v15 = vmul.f32 %v3347_v53, %v625_v39  ;;  %v3553_v43 = vmul.f32 %v3347_v53, %v626_v41 }
 0x13a   : > { %v627_v42 = vsub.f32 %v2339_v46, %v595_v63  ;;  %v628_v44 = vsub.f32 %v2340_v47, %v596_v2  ;;  %v696_v17 = vmul.f32 %v3550_v15, %v3550_v15  ;;  %v697_v48 = vmul.f32 %v3553_v43, %v3553_v43 }
 0x13c   : > { %754 = vadd.xlane.f32.xlu1 %v695_v62  ;;  %756 = vadd.xlane.f32.xlu0 %v696_v17  ;;  %v3564_v25 = vmul.f32 %v3347_v53, %v627_v42  ;;  %v3567_v34 = vmul.f32 %v3347_v53, %v628_v44  ;;  %v3577_v44 = vld [vmem:[%s4299_s2] ss:$0 sm:$0xff] }
 0x13e   : > { %v698_v46 = vmul.f32 %v3564_v25, %v3564_v25  ;;  %v699_v45 = vmul.f32 %v3567_v34, %v3567_v34 }
 0x140   : > { %758 = vadd.xlane.f32.xlu1 %v697_v48  ;;  %760 = vadd.xlane.f32.xlu0 %v698_v46 }
 0x144   : > { %762 = vadd.xlane.f32.xlu1 %v699_v45 }
 0x191   : > { %v701_v47 = vpop.xlane.xlu0 %700 }
 0x192   : > { %v764_v35 = vmul.f32 0.03125, %v701_v47 }
 0x194   : > { %v796_v7 = vadd.f32 1e-05, %v764_v35 }
 0x195   : > { %v703_v12 = vpop.xlane.xlu1 %702  ;;  %v705_v51 = vpop.xlane.xlu0 %704 }
 0x196   : > { %2587 = vrsqrt.f32 %v796_v7  ;;  %v765_v1 = vmul.f32 0.03125, %v703_v12  ;;  %v766_v18 = vmul.f32 0.03125, %v705_v51 }
 0x198   : > { %v797_v20 = vadd.f32 1e-05, %v765_v1  ;;  %v798_v53 = vadd.f32 1e-05, %v766_v18  ;;  %v3584_v1 = vld [vmem:[%s4300_s3] ss:$0 sm:$0xff] }
 0x199   : > { %v707_v5 = vpop.xlane.xlu1 %706  ;;  %v709_v37 = vpop.xlane.xlu0 %708 }
 0x19a   : > { %2589 = vrsqrt.f32 %v797_v20  ;;  %v767_v38 = vmul.f32 0.03125, %v707_v5  ;;  %v768_v29 = vmul.f32 0.03125, %v709_v37 }
 0x19b   : > { %2591 = vrsqrt.f32 %v798_v53 }
 0x19c   : > { %v799_v55 = vadd.f32 1e-05, %v767_v38  ;;  %v800_v10 = vadd.f32 1e-05, %v768_v29 }
 0x19d   : > { %v711_v14 = vpop.xlane.xlu1 %710  ;;  %v713_v57 = vpop.xlane.xlu0 %712 }
 0x19e   : > { %2593 = vrsqrt.f32 %v799_v55  ;;  %v769_v58 = vmul.f32 0.03125, %v711_v14  ;;  %v770_v39 = vmul.f32 0.03125, %v713_v57 }
 0x19f   : > { %2595 = vrsqrt.f32 %v800_v10 }
 0x1a0   : > { %v2588_v41 = vpop.eup %2587  ;;  %v801_v23 = vadd.f32 1e-05, %v769_v58  ;;  %v802_v31 = vadd.f32 1e-05, %v770_v39 }
 0x1a1   : > { %v715_v32 = vpop.xlane.xlu1 %714  ;;  %v717_v62 = vpop.xlane.xlu0 %716  ;;  %v860_v63 = vmul.f32 %v2588_v41, %v3354_v60 }
 0x1a2   : > { %2597 = vrsqrt.f32 %v801_v23  ;;  %v771_v2 = vmul.f32 0.03125, %v715_v32  ;;  %v772_v42 = vmul.f32 0.03125, %v717_v62 }
 0x1a3   : > { %2599 = vrsqrt.f32 %v802_v31  ;;  %v899_v12 = vmul.f32 %v3577_v44, %v860_v63 }
 0x1a4   : > { %v2590_v17 = vpop.eup %2589  ;;  %v803_v48 = vadd.f32 1e-05, %v771_v2  ;;  %v804_v46 = vadd.f32 1e-05, %v772_v42 }
 0x1a5   : > { %v2592_v45 = vpop.eup %2591  ;;  %v719_v47 = vpop.xlane.xlu1 %718  ;;  %v861_v7 = vmul.f32 %v2590_v17, %v3368_v52  ;;  %v938_v55 = vadd.f32 %v3584_v1, %v899_v12 }
 0x1a6   : > { %v721_v35 = vpop.xlane.xlu0 %720  ;;  %2601 = vrsqrt.f32 %v803_v48  ;;  %v773_v60 = vmul.f32 0.03125, %v719_v47  ;;  %v862_v18 = vmul.f32 %v2592_v45, %v3357_v61 }
 0x1a7   : > { %v774_v51 = vmul.f32 0.03125, %v721_v35  ;;  %2603 = vrsqrt.f32 %v804_v46  ;;  %v900_v20 = vmul.f32 %v3577_v44, %v861_v7 }
 0x1a8   : > { %v2594_v53 = vpop.eup %2593  ;;  %v805_v5 = vadd.f32 1e-05, %v773_v60  ;;  %v901_v57 = vmul.f32 %v3577_v44, %v862_v18 }
 0x1a9   : > { %v806_v37 = vadd.f32 1e-05, %v774_v51  ;;  %v2596_v38 = vpop.eup %2595  ;;  %v723_v52 = vpop.xlane.xlu1 %722  ;;  %v939_v10 = vadd.f32 %v3584_v1, %v900_v20  ;;  %v863_v14 = vmul.f32 %v2594_v53, %v3371_v0 }
 0x1aa   : > { %v725_v29 = vpop.xlane.xlu0 %724  ;;  %2605 = vrsqrt.f32 %v805_v5  ;;  %v775_v58 = vmul.f32 0.03125, %v723_v52  ;;  %v864_v23 = vmul.f32 %v2596_v38, %v3382_v59  ;;  %v940_v0 = vadd.f32 %v3584_v1, %v901_v57 }
 0x1ab   : > { %v776_v61 = vmul.f32 0.03125, %v725_v29  ;;  %2607 = vrsqrt.f32 %v806_v37  ;;  %v970_v39 = vpack.c.bf16 %v939_v10, %v938_v55  ;;  %v902_v41 = vmul.f32 %v3577_v44, %v863_v14 }
 0x1ac   : > { %v2598_v31 = vpop.eup %2597  ;;  %v807_v32 = vadd.f32 1e-05, %v775_v58  ;;  %v903_v46 = vmul.f32 %v3577_v44, %v864_v23 }
 0x1ad   : > { %v808_v62 = vadd.f32 1e-05, %v776_v61  ;;  %v2600_v63 = vpop.eup %2599  ;;  %v727_v2 = vpop.xlane.xlu1 %726  ;;  %2420 = vmatprep.mubr.bf16.mxu0 %v970_v39  ;;  %v941_v17 = vadd.f32 %v3584_v1, %v902_v41  ;;  %v865_v48 = vmul.f32 %v2598_v31, %v3385_v8 }
 0x1ae   : > { %v729_v42 = vpop.xlane.xlu0 %728  ;;  %2609 = vrsqrt.f32 %v807_v32  ;;  %v777_v45 = vmul.f32 0.03125, %v727_v2  ;;  %v866_v59 = vmul.f32 %v2600_v63, %v3396_v50  ;;  %v942_v8 = vadd.f32 %v3584_v1, %v903_v46 }
 0x1af   : > { %v778_v47 = vmul.f32 0.03125, %v729_v42  ;;  %2611 = vrsqrt.f32 %v808_v62  ;;  %v971_v35 = vpack.c.bf16 %v941_v17, %v940_v0  ;;  %v904_v7 = vmul.f32 %v3577_v44, %v865_v48 }
 0x1b0   : > { %v2602_v12 = vpop.eup %2601  ;;  %v809_v60 = vadd.f32 1e-05, %v777_v45  ;;  %v905_v38 = vmul.f32 %v3577_v44, %v866_v59 }
 0x1b1   : > { %v810_v51 = vadd.f32 1e-05, %v778_v47  ;;  %v2604_v18 = vpop.eup %2603  ;;  %v731_v20 = vpop.xlane.xlu1 %730  ;;  %2421 = vmatmul.mubr.bf16.vlgmr.msra.gmra.mrb[0].mxu0 %v971_v35  ;;  %v943_v5 = vadd.f32 %v3584_v1, %v904_v7  ;;  %v867_v37 = vmul.f32 %v2602_v12, %v3399_v11 }
 0x1b2   : > { %v733_v53 = vpop.xlane.xlu0 %732  ;;  %2613 = vrsqrt.f32 %v809_v60  ;;  %v779_v50 = vmul.f32 0.03125, %v731_v20  ;;  %v868_v10 = vmul.f32 %v2604_v18, %v3410_v56  ;;  %v944_v11 = vadd.f32 %v3584_v1, %v905_v38 }
 0x1b3   : > { %v780_v52 = vmul.f32 0.03125, %v733_v53  ;;  %2615 = vrsqrt.f32 %v810_v51  ;;  %v972_v29 = vpack.c.bf16 %v943_v5, %v942_v8  ;;  %v906_v55 = vmul.f32 %v3577_v44, %v867_v37 }
 0x1b4   : > { %v2606_v14 = vpop.eup %2605  ;;  %v811_v57 = vadd.f32 1e-05, %v779_v50  ;;  %v907_v32 = vmul.f32 %v3577_v44, %v868_v10 }
 0x1b5   : > { %v812_v58 = vadd.f32 1e-05, %v780_v52  ;;  %v2608_v61 = vpop.eup %2607  ;;  %v735_v39 = vpop.xlane.xlu1 %734  ;;  %2424 = vmatprep.mubr.bf16.mxu0 %v972_v29  ;;  %v945_v23 = vadd.f32 %v3584_v1, %v906_v55  ;;  %v869_v31 = vmul.f32 %v2606_v14, %v3413_v13 }
 0x1b6   : > { %v737_v41 = vpop.xlane.xlu0 %736  ;;  %2617 = vrsqrt.f32 %v811_v57  ;;  %v781_v62 = vmul.f32 0.03125, %v735_v39  ;;  %v870_v56 = vmul.f32 %v2608_v61, %v3424_v3  ;;  %v946_v13 = vadd.f32 %v3584_v1, %v907_v32 }
 0x1b7   : > { %v782_v63 = vmul.f32 0.03125, %v737_v41  ;;  %2619 = vrsqrt.f32 %v812_v58  ;;  %v973_v2 = vpack.c.bf16 %v945_v23, %v944_v11  ;;  %v908_v42 = vmul.f32 %v3577_v44, %v869_v31 }
 0x1b8   : > { %v2610_v0 = vpop.eup %2609  ;;  %v813_v17 = vadd.f32 1e-05, %v781_v62  ;;  %v909_v7 = vmul.f32 %v3577_v44, %v870_v56 }
 0x1b9   : > { %v814_v48 = vadd.f32 1e-05, %v782_v63  ;;  %v2612_v46 = vpop.eup %2611  ;;  %v739_v45 = vpop.xlane.xlu1 %738  ;;  %2425 = vmatmul.mubr.bf16.gmra.mrb[4].mxu0 %v973_v2  ;;  %v947_v59 = vadd.f32 %v3584_v1, %v908_v42  ;;  %v871_v35 = vmul.f32 %v2610_v0, %v3427_v16 }
 0x1ba   : > { %v741_v47 = vpop.xlane.xlu0 %740  ;;  %2621 = vrsqrt.f32 %v813_v17  ;;  %v783_v3 = vmul.f32 0.03125, %v739_v45  ;;  %v872_v18 = vmul.f32 %v2612_v46, %v3438_v4  ;;  %v948_v16 = vadd.f32 %v3584_v1, %v909_v7 }
 0x1bb   : > { %v784_v12 = vmul.f32 0.03125, %v741_v47  ;;  %2623 = vrsqrt.f32 %v814_v48  ;;  %v974_v60 = vpack.c.bf16 %v947_v59, %v946_v13  ;;  %v910_v51 = vmul.f32 %v3577_v44, %v871_v35 }
 0x1bc   : > { %v2614_v20 = vpop.eup %2613  ;;  %v815_v53 = vadd.f32 1e-05, %v783_v3  ;;  %v911_v29 = vmul.f32 %v3577_v44, %v872_v18 }
 0x1bd   : > { %v816_v8 = vadd.f32 1e-05, %v784_v12  ;;  %v2616_v5 = vpop.eup %2615  ;;  %v743_v37 = vpop.xlane.xlu1 %742  ;;  %2428 = vmatprep.mubr.bf16.mxu0 %v974_v60  ;;  %v949_v50 = vadd.f32 %v3584_v1, %v910_v51  ;;  %v873_v52 = vmul.f32 %v2614_v20, %v3441_v19 }
 0x1be   : > { %v745_v38 = vpop.xlane.xlu0 %744  ;;  %2625 = vrsqrt.f32 %v815_v53  ;;  %v785_v55 = vmul.f32 0.03125, %v743_v37  ;;  %v874_v4 = vmul.f32 %v2616_v5, %v3452_v6  ;;  %v950_v19 = vadd.f32 %v3584_v1, %v911_v29 }
 0x1bf   : > { %v786_v10 = vmul.f32 0.03125, %v745_v38  ;;  %2627 = vrsqrt.f32 %v816_v8  ;;  %v975_v14 = vpack.c.bf16 %v949_v50, %v948_v16  ;;  %v912_v57 = vmul.f32 %v3577_v44, %v873_v52 }
 0x1c0   : > { %v2618_v58 = vpop.eup %2617  ;;  %v817_v61 = vadd.f32 1e-05, %v785_v55  ;;  %v913_v62 = vmul.f32 %v3577_v44, %v874_v4 }
 0x1c1   : > { %v818_v39 = vadd.f32 1e-05, %v786_v10  ;;  %v2620_v41 = vpop.eup %2619  ;;  %v747_v11 = vpop.xlane.xlu1 %746  ;;  %2429 = vmatmul.mubr.bf16.gmra.mrb[8].mxu0 %v975_v14  ;;  %v951_v31 = vadd.f32 %v3584_v1, %v912_v57  ;;  %v875_v32 = vmul.f32 %v2618_v58, %v3455_v21 }
 0x1c2   : > { %v749_v23 = vpop.xlane.xlu0 %748  ;;  %2629 = vrsqrt.f32 %v817_v61  ;;  %v787_v6 = vmul.f32 0.03125, %v747_v11  ;;  %v876_v42 = vmul.f32 %v2620_v41, %v3466_v49  ;;  %v952_v21 = vadd.f32 %v3584_v1, %v913_v62 }
 0x1c3   : > { %v788_v63 = vmul.f32 0.03125, %v749_v23  ;;  %2631 = vrsqrt.f32 %v818_v39  ;;  %v976_v56 = vpack.c.bf16 %v951_v31, %v950_v19  ;;  %v914_v2 = vmul.f32 %v3577_v44, %v875_v32 }
 0x1c4   : > { %v2622_v0 = vpop.eup %2621  ;;  %v819_v17 = vadd.f32 1e-05, %v787_v6  ;;  %v915_v35 = vmul.f32 %v3577_v44, %v876_v42 }
 0x1c5   : > { %v820_v48 = vadd.f32 1e-05, %v788_v63  ;;  %v2624_v46 = vpop.eup %2623  ;;  %v751_v45 = vpop.xlane.xlu1 %750  ;;  %2432 = vmatprep.mubr.bf16.mxu0 %v976_v56  ;;  %v953_v13 = vadd.f32 %v3584_v1, %v914_v2  ;;  %v877_v59 = vmul.f32 %v2622_v0, %v3469_v24 }
 0x1c6   : > { %v753_v47 = vpop.xlane.xlu0 %752  ;;  %2633 = vrsqrt.f32 %v819_v17  ;;  %v789_v7 = vmul.f32 0.03125, %v751_v45  ;;  %v878_v49 = vmul.f32 %v2624_v46, %v3480_v54  ;;  %v954_v24 = vadd.f32 %v3584_v1, %v915_v35 }
 0x1c7   : > { %v790_v3 = vmul.f32 0.03125, %v753_v47  ;;  %2635 = vrsqrt.f32 %v820_v48  ;;  %v977_v12 = vpack.c.bf16 %v953_v13, %v952_v21  ;;  %v916_v60 = vmul.f32 %v3577_v44, %v877_v59 }
 0x1c8   : > { %v2626_v51 = vpop.eup %2625  ;;  %v821_v18 = vadd.f32 1e-05, %v789_v7  ;;  %v917_v16 = vmul.f32 %v3577_v44, %v878_v49 }
 0x1c9   : > { %v822_v20 = vadd.f32 1e-05, %v790_v3  ;;  %v2628_v53 = vpop.eup %2627  ;;  %v755_v8 = vpop.xlane.xlu1 %754  ;;  %2433 = vmatmul.mubr.bf16.gmra.mrb[12].mxu0 %v977_v12  ;;  %v955_v37 = vadd.f32 %v3584_v1, %v916_v60  ;;  %v879_v38 = vmul.f32 %v2626_v51, %v3483_v27 }
 0x1ca   : > { %v757_v5 = vpop.xlane.xlu0 %756  ;;  %2637 = vrsqrt.f32 %v821_v18  ;;  %v791_v54 = vmul.f32 0.03125, %v755_v8  ;;  %v880_v55 = vmul.f32 %v2628_v53, %v3494_v9  ;;  %v956_v27 = vadd.f32 %v3584_v1, %v917_v16 }
 0x1cb   : > { %v792_v50 = vmul.f32 0.03125, %v757_v5  ;;  %2639 = vrsqrt.f32 %v822_v20  ;;  %v978_v52 = vpack.c.bf16 %v955_v37, %v954_v24  ;;  %v918_v29 = vmul.f32 %v3577_v44, %v879_v38 }
 0x1cc   : > { %v2630_v10 = vpop.eup %2629  ;;  %v823_v4 = vadd.f32 1e-05, %v791_v54  ;;  %v919_v11 = vmul.f32 %v3577_v44, %v880_v55 }
 0x1cd   : > { %v824_v14 = vadd.f32 1e-05, %v792_v50  ;;  %v2632_v57 = vpop.eup %2631  ;;  %v759_v58 = vpop.xlane.xlu1 %758  ;;  %2436 = vmatprep.mubr.bf16.mxu0 %v978_v52  ;;  %v957_v39 = vadd.f32 %v3584_v1, %v918_v29  ;;  %v881_v41 = vmul.f32 %v2630_v10, %v3497_v30 }
 0x1ce   : > { %v761_v61 = vpop.xlane.xlu0 %760  ;;  %2641 = vrsqrt.f32 %v823_v4  ;;  %v793_v23 = vmul.f32 0.03125, %v759_v58  ;;  %v882_v9 = vmul.f32 %v2632_v57, %v3508_v26  ;;  %v958_v42 = vadd.f32 %v3584_v1, %v919_v11 }
 0x1cf   : > { %v794_v19 = vmul.f32 0.03125, %v761_v61  ;;  %2643 = vrsqrt.f32 %v824_v14  ;;  %v979_v31 = vpack.c.bf16 %v957_v39, %v956_v27  ;;  %v920_v32 = vmul.f32 %v3577_v44, %v881_v41  ;;  %v3682_v61 = vld [vmem:[%s4302_s5] ss:$0 sm:$0xff] }
 0x1d0   : > { %v2634_v62 = vpop.eup %2633  ;;  %v825_v6 = vadd.f32 1e-05, %v793_v23  ;;  %v921_v17 = vmul.f32 %v3577_v44, %v882_v9 }
 0x1d1   : > { %v826_v63 = vadd.f32 1e-05, %v794_v19  ;;  %v2636_v56 = vpop.eup %2635  ;;  %v763_v2 = vpop.xlane.xlu1 %762  ;;  %2437 = vmatmul.mubr.bf16.gmra.mrb[16].mxu0 %v979_v31  ;;  %v959_v30 = vadd.f32 %v3584_v1, %v920_v32  ;;  %v883_v0 = vmul.f32 %v2634_v62, %v3511_v33 }
 0x1d2   : > { %2645 = vrsqrt.f32 %v825_v6  ;;  %v795_v26 = vmul.f32 0.03125, %v763_v2  ;;  %v884_v48 = vmul.f32 %v2636_v56, %v3522_v28  ;;  %v960_v59 = vadd.f32 %v3584_v1, %v921_v17 }
 0x1d3   : > { %2647 = vrsqrt.f32 %v826_v63  ;;  %v980_v46 = vpack.c.bf16 %v959_v30, %v958_v42  ;;  %v922_v45 = vmul.f32 %v3577_v44, %v883_v0 }
 0x1d4   : > { %v2638_v47 = vpop.eup %2637  ;;  %v827_v21 = vadd.f32 1e-05, %v795_v26  ;;  %v923_v7 = vmul.f32 %v3577_v44, %v884_v48 }
 0x1d5   : > { %v2640_v13 = vpop.eup %2639  ;;  %2440 = vmatprep.mubr.bf16.mxu0 %v980_v46  ;;  %v961_v35 = vadd.f32 %v3584_v1, %v922_v45  ;;  %v885_v33 = vmul.f32 %v2638_v47, %v3525_v36 }
 0x1d6   : > { %2649 = vrsqrt.f32 %v827_v21  ;;  %v886_v3 = vmul.f32 %v2640_v13, %v3536_v22  ;;  %v962_v51 = vadd.f32 %v3584_v1, %v923_v7 }
 0x1d7   : > { %v981_v28 = vpack.c.bf16 %v961_v35, %v960_v59  ;;  %v924_v49 = vmul.f32 %v3577_v44, %v885_v33 }
 0x1d8   : > { %v2642_v12 = vpop.eup %2641  ;;  %v925_v53 = vmul.f32 %v3577_v44, %v886_v3 }
 0x1d9   : > { %v2644_v60 = vpop.eup %2643  ;;  %2441 = vmatmul.mubr.bf16.gmra.mrb[20].mxu0 %v981_v28  ;;  %v963_v18 = vadd.f32 %v3584_v1, %v924_v49  ;;  %v887_v20 = vmul.f32 %v2642_v12, %v3539_v40 }
 0x1da   : > { %v888_v36 = vmul.f32 %v2644_v60, %v3550_v15  ;;  %v964_v37 = vadd.f32 %v3584_v1, %v925_v53 }
 0x1db   : > { %v982_v8 = vpack.c.bf16 %v963_v18, %v962_v51  ;;  %v926_v5 = vmul.f32 %v3577_v44, %v887_v20 }
 0x1dc   : > { %v2646_v22 = vpop.eup %2645  ;;  %v927_v54 = vmul.f32 %v3577_v44, %v888_v36 }
 0x1dd   : > { %v2648_v24 = vpop.eup %2647  ;;  %2444 = vmatprep.mubr.bf16.mxu0 %v982_v8  ;;  %v965_v38 = vadd.f32 %v3584_v1, %v926_v5  ;;  %v889_v16 = vmul.f32 %v2646_v22, %v3553_v43 }
 0x1de   : > { %v890_v40 = vmul.f32 %v2648_v24, %v3564_v25  ;;  %v966_v29 = vadd.f32 %v3584_v1, %v927_v54 }
 0x1df   : > { %v983_v50 = vpack.c.bf16 %v965_v38, %v964_v37  ;;  %v928_v52 = vmul.f32 %v3577_v44, %v889_v16 }
 0x1e0   : > { %v2650_v15 = vpop.eup %2649  ;;  %v929_v4 = vmul.f32 %v3577_v44, %v890_v40 }
 0x1e1   : > { %2445 = vmatmul.mubr.bf16.gmra.mrb[24].mxu0 %v983_v50  ;;  %v967_v55 = vadd.f32 %v3584_v1, %v928_v52  ;;  %v891_v10 = vmul.f32 %v2650_v15, %v3567_v34 }
 0x1e2   : > { %v968_v57 = vadd.f32 %v3584_v1, %v929_v4 }
 0x1e3   : > { %v984_v14 = vpack.c.bf16 %v967_v55, %v966_v29  ;;  %v930_v43 = vmul.f32 %v3577_v44, %v891_v10 }
 0x1e5   : > { %2448 = vmatprep.mubr.bf16.mxu0 %v984_v14  ;;  %v969_v25 = vadd.f32 %v3584_v1, %v930_v43 }
 0x1e7   : > { %v985_v58 = vpack.c.bf16 %v969_v25, %v968_v57 }
 0x1e9   : > { %2449 = vmatmul.mubr.bf16.gmra.mrb[28].mxu0 %v985_v58 }
 0x284   : > { %v2422_v27 = vpop.f32.mrb[0].mxu0 }
 0x285   : > { %v1091_v39 = vpop.f32.mrb[1].mxu0  ;;  %v3692_v1 = vadd.f32 %v2422_v27, %v3682_v61 }
 0x286   : > { %v3685_v34 = vadd.f32 %v3682_v61, %v1091_v39  ;;  %v2423_v41 = vpop.f32.mrb[2].mxu0 }
 0x287   : > { %v1094_v11 = vpop.f32.mrb[3].mxu0  ;;  %v3696_v23 = vadd.f32 %v2423_v41, %v3682_v61 }
 0x288   : > { %v3688_v44 = vadd.f32 %v3682_v61, %v1094_v11  ;;  %1218 = vadd.xlane.f32.xlu0 %v3685_v34 }
 0x28a   : > { %1220 = vadd.xlane.f32.xlu1 %v3688_v44 }
 0x28c   : > { %1222 = vadd.xlane.f32.xlu0 %v3692_v1  ;;  %v2426_v19 = vpop.f32.mrb[4].mxu0 }
 0x28d   : > { %v1107_v9 = vpop.f32.mrb[5].mxu0  ;;  %v3708_v63 = vadd.f32 %v2426_v19, %v3682_v61  ;;  %v3815_v19 = vld [vmem:[%s4303_s6] ss:$0 sm:$0xff] }
 0x28e   : > { %v3700_v31 = vadd.f32 %v3682_v61, %v1107_v9  ;;  %1224 = vadd.xlane.f32.xlu1 %v3696_v23  ;;  %v2427_v32 = vpop.f32.mrb[6].mxu0 }
 0x28f   : > { %v1110_v62 = vpop.f32.mrb[7].mxu0  ;;  %v3712_v56 = vadd.f32 %v2427_v32, %v3682_v61 }
 0x290   : > { %v3704_v6 = vadd.f32 %v3682_v61, %v1110_v62  ;;  %1226 = vadd.xlane.f32.xlu0 %v3700_v31 }
 0x292   : > { %1228 = vadd.xlane.f32.xlu1 %v3704_v6 }
 0x294   : > { %1230 = vadd.xlane.f32.xlu0 %v3708_v63  ;;  %v2430_v2 = vpop.f32.mrb[8].mxu0 }
 0x295   : > { %v1123_v42 = vpop.f32.mrb[9].mxu0  ;;  %v3724_v48 = vadd.f32 %v2430_v2, %v3682_v61 }
 0x296   : > { %v3716_v30 = vadd.f32 %v3682_v61, %v1123_v42  ;;  %1232 = vadd.xlane.f32.xlu1 %v3712_v56  ;;  %v2431_v0 = vpop.f32.mrb[10].mxu0 }
 0x297   : > { %v1126_v17 = vpop.f32.mrb[11].mxu0  ;;  %v3728_v46 = vadd.f32 %v2431_v0, %v3682_v61 }
 0x298   : > { %v3720_v26 = vadd.f32 %v3682_v61, %v1126_v17  ;;  %1234 = vadd.xlane.f32.xlu0 %v3716_v30 }
 0x29a   : > { %1236 = vadd.xlane.f32.xlu1 %v3720_v26 }
 0x29c   : > { %1238 = vadd.xlane.f32.xlu0 %v3724_v48  ;;  %v2434_v45 = vpop.f32.mrb[12].mxu0 }
 0x29d   : > { %v1139_v47 = vpop.f32.mrb[13].mxu0  ;;  %v3740_v33 = vadd.f32 %v2434_v45, %v3682_v61 }
 0x29e   : > { %v3732_v21 = vadd.f32 %v3682_v61, %v1139_v47  ;;  %1240 = vadd.xlane.f32.xlu1 %v3728_v46  ;;  %v2435_v13 = vpop.f32.mrb[14].mxu0 }
 0x29f   : > { %v1142_v59 = vpop.f32.mrb[15].mxu0  ;;  %v3744_v7 = vadd.f32 %v2435_v13, %v3682_v61 }
 0x2a0   : > { %v3736_v35 = vadd.f32 %v3682_v61, %v1142_v59  ;;  %1242 = vadd.xlane.f32.xlu0 %v3732_v21 }
 0x2a2   : > { %1244 = vadd.xlane.f32.xlu1 %v3736_v35 }
 0x2a4   : > { %1246 = vadd.xlane.f32.xlu0 %v3740_v33  ;;  %v2438_v3 = vpop.f32.mrb[16].mxu0 }
 0x2a5   : > { %v1155_v28 = vpop.f32.mrb[17].mxu0  ;;  %v3756_v18 = vadd.f32 %v2438_v3, %v3682_v61 }
 0x2a6   : > { %v3748_v49 = vadd.f32 %v3682_v61, %v1155_v28  ;;  %1248 = vadd.xlane.f32.xlu1 %v3744_v7  ;;  %v2439_v12 = vpop.f32.mrb[18].mxu0 }
 0x2a7   : > { %v1158_v60 = vpop.f32.mrb[19].mxu0  ;;  %v3760_v20 = vadd.f32 %v2439_v12, %v3682_v61 }
 0x2a8   : > { %v3752_v51 = vadd.f32 %v3682_v61, %v1158_v60  ;;  %1250 = vadd.xlane.f32.xlu0 %v3748_v49 }
 0x2aa   : > { %1252 = vadd.xlane.f32.xlu1 %v3752_v51 }
 0x2ac   : > { %1254 = vadd.xlane.f32.xlu0 %v3756_v18  ;;  %v2442_v53 = vpop.f32.mrb[20].mxu0 }
 0x2ad   : > { %v1171_v36 = vpop.f32.mrb[21].mxu0  ;;  %v3772_v37 = vadd.f32 %v2442_v53, %v3682_v61 }
 0x2ae   : > { %v3764_v8 = vadd.f32 %v3682_v61, %v1171_v36  ;;  %1256 = vadd.xlane.f32.xlu1 %v3760_v20  ;;  %v2443_v5 = vpop.f32.mrb[22].mxu0 }
 0x2af   : > { %v1174_v22 = vpop.f32.mrb[23].mxu0  ;;  %v3776_v38 = vadd.f32 %v2443_v5, %v3682_v61 }
 0x2b0   : > { %v3768_v24 = vadd.f32 %v3682_v61, %v1174_v22  ;;  %1258 = vadd.xlane.f32.xlu0 %v3764_v8 }
 0x2b2   : > { %1260 = vadd.xlane.f32.xlu1 %v3768_v24 }
 0x2b4   : > { %1262 = vadd.xlane.f32.xlu0 %v3772_v37  ;;  %v2446_v16 = vpop.f32.mrb[24].mxu0 }
 0x2b5   : > { %v1187_v54 = vpop.f32.mrb[25].mxu0  ;;  %v3788_v29 = vadd.f32 %v2446_v16, %v3682_v61 }
 0x2b6   : > { %v3780_v40 = vadd.f32 %v3682_v61, %v1187_v54  ;;  %1264 = vadd.xlane.f32.xlu1 %v3776_v38  ;;  %v2447_v50 = vpop.f32.mrb[26].mxu0 }
 0x2b7   : > { %v1190_v52 = vpop.f32.mrb[27].mxu0  ;;  %v3792_v55 = vadd.f32 %v2447_v50, %v3682_v61 }
 0x2b8   : > { %v3784_v15 = vadd.f32 %v3682_v61, %v1190_v52  ;;  %1266 = vadd.xlane.f32.xlu0 %v3780_v40 }
 0x2ba   : > { %1268 = vadd.xlane.f32.xlu1 %v3784_v15 }
 0x2bc   : > { %1270 = vadd.xlane.f32.xlu0 %v3788_v29  ;;  %v2450_v10 = vpop.f32.mrb[28].mxu0 }
 0x2bd   : > { %v1203_v4 = vpop.f32.mrb[29].mxu0  ;;  %v3804_v58 = vadd.f32 %v2450_v10, %v3682_v61 }
 0x2be   : > { %v3796_v14 = vadd.f32 %v3682_v61, %v1203_v4  ;;  %1272 = vadd.xlane.f32.xlu1 %v3792_v55  ;;  %v2451_v43 = vpop.f32.mrb[30].mxu0 }
 0x2bf   : > { %v1206_v57 = vpop.f32.mrb[31].mxu0  ;;  %v3808_v27 = vadd.f32 %v2451_v43, %v3682_v61 }
 0x2c0   : > { %v3800_v25 = vadd.f32 %v3682_v61, %v1206_v57  ;;  %1274 = vadd.xlane.f32.xlu0 %v3796_v14 }
 0x2c2   : > { %1276 = vadd.xlane.f32.xlu1 %v3800_v25 }
 0x2c4   : > { %1278 = vadd.xlane.f32.xlu0 %v3804_v58 }
 0x2c6   : > { %1280 = vadd.xlane.f32.xlu1 %v3808_v27 }
 0x315   : > { %v1219_v39 = vpop.xlane.xlu0 %1218 }
 0x316   : > { %v1282_v41 = vmul.f32 0.015625, %v1219_v39 }
 0x317   : > { %v1221_v11 = vpop.xlane.xlu1 %1220 }
 0x318   : > { %v1314_v9 = vsub.f32 %v3685_v34, %v1282_v41  ;;  %v1283_v32 = vmul.f32 0.015625, %v1221_v11 }
 0x319   : > { %v1223_v62 = vpop.xlane.xlu0 %1222 }
 0x31a   : > { %v1315_v2 = vsub.f32 %v3688_v44, %v1283_v32  ;;  %v1284_v61 = vmul.f32 0.015625, %v1223_v62  ;;  %v3820_v42 = vmul.f32 %v3815_v19, %v1314_v9 }
 0x31b   : > { %v1225_v0 = vpop.xlane.xlu1 %1224 }
 0x31c   : > { %v1316_v17 = vsub.f32 %v3692_v1, %v1284_v61  ;;  %v1285_v45 = vmul.f32 0.015625, %v1225_v0  ;;  %v1385_v47 = vmul.f32 %v3820_v42, %v3820_v42  ;;  %v3826_v13 = vmul.f32 %v3815_v19, %v1315_v2 }
 0x31d   : > { %v1227_v59 = vpop.xlane.xlu0 %1226 }
 0x31e   : > { %v3829_v34 = vmul.f32 %v3815_v19, %v1316_v17  ;;  %v1317_v44 = vsub.f32 %v3696_v23, %v1285_v45  ;;  %v1286_v3 = vmul.f32 0.015625, %v1227_v59  ;;  %1417 = vadd.xlane.f32.xlu0 %v1385_v47  ;;  %v1386_v28 = vmul.f32 %v3826_v13, %v3826_v13 }
 0x31f   : > { %v1229_v12 = vpop.xlane.xlu1 %1228 }
 0x320   : > { %v3835_v1 = vmul.f32 %v3815_v19, %v1317_v44  ;;  %v1318_v60 = vsub.f32 %v3700_v31, %v1286_v3  ;;  %v1287_v53 = vmul.f32 0.015625, %v1229_v12  ;;  %1419 = vadd.xlane.f32.xlu1 %v1386_v28  ;;  %v1387_v36 = vmul.f32 %v3829_v34, %v3829_v34 }
 0x321   : > { %v1231_v5 = vpop.xlane.xlu0 %1230 }
 0x322   : > { %v3841_v22 = vmul.f32 %v3815_v19, %v1318_v60  ;;  %v1319_v23 = vsub.f32 %v3704_v6, %v1287_v53  ;;  %v1288_v16 = vmul.f32 0.015625, %v1231_v5  ;;  %1421 = vadd.xlane.f32.xlu0 %v1387_v36  ;;  %v1388_v54 = vmul.f32 %v3835_v1, %v3835_v1 }
 0x323   : > { %v1233_v50 = vpop.xlane.xlu1 %1232 }
 0x324   : > { %v3847_v52 = vmul.f32 %v3815_v19, %v1319_v23  ;;  %v1320_v31 = vsub.f32 %v3708_v63, %v1288_v16  ;;  %v1289_v10 = vmul.f32 0.015625, %v1233_v50  ;;  %1423 = vadd.xlane.f32.xlu1 %v1388_v54  ;;  %v1389_v4 = vmul.f32 %v3841_v22, %v3841_v22 }
 0x325   : > { %v1235_v43 = vpop.xlane.xlu0 %1234 }
 0x326   : > { %v3853_v57 = vmul.f32 %v3815_v19, %v1320_v31  ;;  %v1321_v6 = vsub.f32 %v3712_v56, %v1289_v10  ;;  %v1290_v39 = vmul.f32 0.015625, %v1235_v43  ;;  %1425 = vadd.xlane.f32.xlu0 %v1389_v4  ;;  %v1390_v41 = vmul.f32 %v3847_v52, %v3847_v52 }
 0x327   : > { %v1237_v11 = vpop.xlane.xlu1 %1236 }
 0x328   : > { %v3859_v9 = vmul.f32 %v3815_v19, %v1321_v6  ;;  %v1322_v63 = vsub.f32 %v3716_v30, %v1290_v39  ;;  %v1291_v32 = vmul.f32 0.015625, %v1237_v11  ;;  %1427 = vadd.xlane.f32.xlu1 %v1390_v41  ;;  %v1391_v62 = vmul.f32 %v3853_v57, %v3853_v57 }
 0x329   : > { %v1239_v2 = vpop.xlane.xlu0 %1238 }
 0x32a   : > { %v3865_v61 = vmul.f32 %v3815_v19, %v1322_v63  ;;  %v1323_v56 = vsub.f32 %v3720_v26, %v1291_v32  ;;  %v1292_v0 = vmul.f32 0.015625, %v1239_v2  ;;  %1429 = vadd.xlane.f32.xlu0 %v1391_v62  ;;  %v1392_v17 = vmul.f32 %v3859_v9, %v3859_v9 }
 0x32b   : > { %v1241_v45 = vpop.xlane.xlu1 %1240 }
 0x32c   : > { %v3871_v47 = vmul.f32 %v3815_v19, %v1323_v56  ;;  %v1324_v30 = vsub.f32 %v3724_v48, %v1292_v0  ;;  %v1293_v59 = vmul.f32 0.015625, %v1241_v45  ;;  %1431 = vadd.xlane.f32.xlu1 %v1392_v17  ;;  %v1393_v44 = vmul.f32 %v3865_v61, %v3865_v61 }
 0x32d   : > { %v1243_v3 = vpop.xlane.xlu0 %1242 }
 0x32e   : > { %v3877_v28 = vmul.f32 %v3815_v19, %v1324_v30  ;;  %v1325_v26 = vsub.f32 %v3728_v46, %v1293_v59  ;;  %v1294_v12 = vmul.f32 0.015625, %v1243_v3  ;;  %1433 = vadd.xlane.f32.xlu0 %v1393_v44  ;;  %v1394_v60 = vmul.f32 %v3871_v47, %v3871_v47  ;;  %v2579_v59 = vld [vmem:[#allocation7] sm:$0xff]  }
 0x32f   : > { %v1245_v53 = vpop.xlane.xlu1 %1244  ;;  %2452 = vmatprep.subr.bf16.mxu1 %v2579_v59 }
 0x330   : > { %v3883_v36 = vmul.f32 %v3815_v19, %v1325_v26  ;;  %v1326_v48 = vsub.f32 %v3732_v21, %v1294_v12  ;;  %v1295_v5 = vmul.f32 0.015625, %v1245_v53  ;;  %1435 = vadd.xlane.f32.xlu1 %v1394_v60  ;;  %v1395_v23 = vmul.f32 %v3877_v28, %v3877_v28  ;;  %2453 = vmatpush3.bf16.msra.mxu1 %v2579_v59 }
 0x331   : > { %v1247_v16 = vpop.xlane.xlu0 %1246 }
 0x332   : > { %v3889_v54 = vmul.f32 %v3815_v19, %v1326_v48  ;;  %v1327_v46 = vsub.f32 %v3736_v35, %v1295_v5  ;;  %v1296_v50 = vmul.f32 0.015625, %v1247_v16  ;;  %1437 = vadd.xlane.f32.xlu0 %v1395_v23  ;;  %v1396_v31 = vmul.f32 %v3883_v36, %v3883_v36  ;;  %v2580_v23 = vld [vmem:[#allocation7 + $0x8] sm:$0xff]  }
 0x333   : > { %v1249_v10 = vpop.xlane.xlu1 %1248  ;;  %2454 = vmatprep.subr.bf16.mxu1 %v2580_v23 }
 0x334   : > { %v3895_v4 = vmul.f32 %v3815_v19, %v1327_v46  ;;  %v1328_v21 = vsub.f32 %v3740_v33, %v1296_v50  ;;  %v1297_v43 = vmul.f32 0.015625, %v1249_v10  ;;  %1439 = vadd.xlane.f32.xlu1 %v1396_v31  ;;  %v1397_v6 = vmul.f32 %v3889_v54, %v3889_v54  ;;  %2455 = vmatpush3.bf16.msra.mxu1 %v2580_v23 }
 0x335   : > { %v1251_v39 = vpop.xlane.xlu0 %1250 }
 0x336   : > { %v3901_v41 = vmul.f32 %v3815_v19, %v1328_v21  ;;  %v1329_v35 = vsub.f32 %v3744_v7, %v1297_v43  ;;  %v1298_v11 = vmul.f32 0.015625, %v1251_v39  ;;  %1441 = vadd.xlane.f32.xlu0 %v1397_v6  ;;  %v1398_v63 = vmul.f32 %v3895_v4, %v3895_v4  ;;  %v2581_v39 = vld [vmem:[#allocation7 + $0x10] sm:$0xff]  }
 0x337   : > { %v1253_v32 = vpop.xlane.xlu1 %1252  ;;  %2456 = vmatprep.subr.bf16.mxu1 %v2581_v39 }
 0x338   : > { %v3907_v62 = vmul.f32 %v3815_v19, %v1329_v35  ;;  %v1330_v33 = vsub.f32 %v3748_v49, %v1298_v11  ;;  %v1299_v2 = vmul.f32 0.015625, %v1253_v32  ;;  %1443 = vadd.xlane.f32.xlu1 %v1398_v63  ;;  %v1399_v56 = vmul.f32 %v3901_v41, %v3901_v41  ;;  %2457 = vmatpush3.bf16.msra.mxu1 %v2581_v39 }
 0x339   : > { %v1255_v0 = vpop.xlane.xlu0 %1254 }
 0x33a   : > { %v3913_v17 = vmul.f32 %v3815_v19, %v1330_v33  ;;  %v1331_v7 = vsub.f32 %v3752_v51, %v1299_v2  ;;  %v1300_v45 = vmul.f32 0.015625, %v1255_v0  ;;  %1445 = vadd.xlane.f32.xlu0 %v1399_v56  ;;  %v1400_v30 = vmul.f32 %v3907_v62, %v3907_v62 }
 0x33b   : > { %v1257_v44 = vpop.xlane.xlu1 %1256 }
 0x33c   : > { %v3919_v49 = vmul.f32 %v3815_v19, %v1331_v7  ;;  %v1332_v3 = vsub.f32 %v3756_v18, %v1300_v45  ;;  %v1301_v26 = vmul.f32 0.015625, %v1257_v44  ;;  %1447 = vadd.xlane.f32.xlu1 %v1400_v30  ;;  %v1401_v12 = vmul.f32 %v3913_v17, %v3913_v17  ;;  %v2582_v7 = vld [vmem:[#allocation7 + $0x18] sm:$0xff]  }
 0x33d   : > { %v1259_v60 = vpop.xlane.xlu0 %1258  ;;  %2458 = vmatprep.subr.bf16.mxu1 %v2582_v7 }
 0x33e   : > { %v3925_v51 = vmul.f32 %v3815_v19, %v1332_v3  ;;  %v1333_v53 = vsub.f32 %v3760_v20, %v1301_v26  ;;  %v1302_v48 = vmul.f32 0.015625, %v1259_v60  ;;  %1449 = vadd.xlane.f32.xlu0 %v1401_v12  ;;  %v1402_v5 = vmul.f32 %v3919_v49, %v3919_v49  ;;  %2459 = vmatpush3.bf16.msra.mxu1 %v2582_v7 }
 0x33f   : > { %v1261_v18 = vpop.xlane.xlu1 %1260 }
 0x340   : > { %v3931_v16 = vmul.f32 %v3815_v19, %v1333_v53  ;;  %v1334_v46 = vsub.f32 %v3764_v8, %v1302_v48  ;;  %v1303_v50 = vmul.f32 0.015625, %v1261_v18  ;;  %1451 = vadd.xlane.f32.xlu1 %v1402_v5  ;;  %v1403_v31 = vmul.f32 %v3925_v51, %v3925_v51  ;;  %v2583_v53 = vld [vmem:[#allocation7 + $0x20] sm:$0xff]  }
 0x341   : > { %v1263_v10 = vpop.xlane.xlu0 %1262  ;;  %2460 = vmatprep.subr.bf16.mxu1 %v2583_v53 }
 0x342   : > { %v3937_v20 = vmul.f32 %v3815_v19, %v1334_v46  ;;  %v1335_v21 = vsub.f32 %v3768_v24, %v1303_v50  ;;  %v1304_v43 = vmul.f32 0.015625, %v1263_v10  ;;  %1453 = vadd.xlane.f32.xlu0 %v1403_v31  ;;  %v1404_v6 = vmul.f32 %v3931_v16, %v3931_v16  ;;  %2461 = vmatpush3.bf16.msra.mxu1 %v2583_v53 }
 0x343   : > { %v1265_v8 = vpop.xlane.xlu1 %1264 }
 0x344   : > { %v3943_v35 = vmul.f32 %v3815_v19, %v1335_v21  ;;  %v1336_v11 = vsub.f32 %v3772_v37, %v1304_v43  ;;  %v1305_v63 = vmul.f32 0.015625, %v1265_v8  ;;  %1455 = vadd.xlane.f32.xlu1 %v1404_v6  ;;  %v1405_v32 = vmul.f32 %v3937_v20, %v3937_v20  ;;  %v2584_v21 = vld [vmem:[#allocation7 + $0x28] sm:$0xff]  }
 0x345   : > { %v1267_v33 = vpop.xlane.xlu0 %1266  ;;  %2462 = vmatprep.subr.bf16.mxu1 %v2584_v21 }
 0x346   : > { %v3949_v24 = vmul.f32 %v3815_v19, %v1336_v11  ;;  %v1337_v2 = vsub.f32 %v3776_v38, %v1305_v63  ;;  %v1306_v56 = vmul.f32 0.015625, %v1267_v33  ;;  %1457 = vadd.xlane.f32.xlu0 %v1405_v32  ;;  %v1406_v0 = vmul.f32 %v3943_v35, %v3943_v35  ;;  %2463 = vmatpush3.bf16.msra.mxu1 %v2584_v21 }
 0x347   : > { %v1269_v37 = vpop.xlane.xlu1 %1268 }
 0x348   : > { %v3955_v45 = vmul.f32 %v3815_v19, %v1337_v2  ;;  %v1338_v30 = vsub.f32 %v3780_v40, %v1306_v56  ;;  %v1307_v59 = vmul.f32 0.015625, %v1269_v37  ;;  %1459 = vadd.xlane.f32.xlu1 %v1406_v0  ;;  %v1407_v44 = vmul.f32 %v3949_v24, %v3949_v24  ;;  %v2585_v2 = vld [vmem:[#allocation7 + $0x30] sm:$0xff]  }
 0x349   : > { %v1271_v3 = vpop.xlane.xlu0 %1270  ;;  %2464 = vmatprep.subr.bf16.mxu1 %v2585_v2 }
 0x34a   : > { %v3961_v38 = vmul.f32 %v3815_v19, %v1338_v30  ;;  %v1339_v26 = vsub.f32 %v3784_v15, %v1307_v59  ;;  %v1308_v12 = vmul.f32 0.015625, %v1271_v3  ;;  %1461 = vadd.xlane.f32.xlu0 %v1407_v44  ;;  %v1408_v60 = vmul.f32 %v3955_v45, %v3955_v45  ;;  %2465 = vmatpush3.bf16.msra.mxu1 %v2585_v2  ;;  %v2586_v44 = vld [vmem:[#allocation7 + $0x38] sm:$0xff]  }
 0x34b   : > { %v1273_v40 = vpop.xlane.xlu1 %1272  ;;  %2466 = vmatprep.subr.bf16.mxu1 %v2586_v44 }
 0x34c   : > { %v3967_v48 = vmul.f32 %v3815_v19, %v1339_v26  ;;  %v1340_v5 = vsub.f32 %v3788_v29, %v1308_v12  ;;  %v1309_v23 = vmul.f32 0.015625, %v1273_v40  ;;  %1463 = vadd.xlane.f32.xlu1 %v1408_v60  ;;  %v1409_v18 = vmul.f32 %v3961_v38, %v3961_v38 }
 0x34d   : > { %v1275_v46 = vpop.xlane.xlu0 %1274 }
 0x34e   : > { %v3973_v15 = vmul.f32 %v3815_v19, %v1340_v5  ;;  %v1341_v50 = vsub.f32 %v3792_v55, %v1309_v23  ;;  %v1310_v31 = vmul.f32 0.015625, %v1275_v46  ;;  %1465 = vadd.xlane.f32.xlu0 %v1409_v18  ;;  %v1410_v10 = vmul.f32 %v3967_v48, %v3967_v48  ;;  %2467 = vmatpush3.bf16.msra.mxu1 %v2586_v44 }
 0x34f   : > { %v1277_v29 = vpop.xlane.xlu1 %1276 }
 0x350   : > { %v3979_v43 = vmul.f32 %v3815_v19, %v1341_v50  ;;  %v1342_v6 = vsub.f32 %v3796_v14, %v1310_v31  ;;  %v1311_v39 = vmul.f32 0.015625, %v1277_v29  ;;  %1467 = vadd.xlane.f32.xlu1 %v1410_v10  ;;  %v1411_v8 = vmul.f32 %v3973_v15, %v3973_v15 }
 0x351   : > { %v1279_v11 = vpop.xlane.xlu0 %1278 }
 0x352   : > { %v3985_v55 = vmul.f32 %v3815_v19, %v1342_v6  ;;  %v1343_v63 = vsub.f32 %v3800_v25, %v1311_v39  ;;  %v1312_v32 = vmul.f32 0.015625, %v1279_v11  ;;  %1469 = vadd.xlane.f32.xlu0 %v1411_v8  ;;  %v1412_v33 = vmul.f32 %v3979_v43, %v3979_v43 }
 0x353   : > { %v1281_v14 = vpop.xlane.xlu1 %1280 }
 0x354   : > { %v3991_v56 = vmul.f32 %v3815_v19, %v1343_v63  ;;  %v1344_v0 = vsub.f32 %v3804_v58, %v1312_v32  ;;  %v1313_v7 = vmul.f32 0.015625, %v1281_v14  ;;  %1471 = vadd.xlane.f32.xlu1 %v1412_v33  ;;  %v1413_v37 = vmul.f32 %v3985_v55, %v3985_v55 }
 0x356   : > { %v3997_v25 = vmul.f32 %v3815_v19, %v1344_v0  ;;  %v1345_v30 = vsub.f32 %v3808_v27, %v1313_v7  ;;  %1473 = vadd.xlane.f32.xlu0 %v1413_v37  ;;  %v1414_v59 = vmul.f32 %v3991_v56, %v3991_v56  ;;  %v4012_v0 = vld [vmem:[%s4304_s7] ss:$0 sm:$0xff] }
 0x358   : > { %v4003_v3 = vmul.f32 %v3815_v19, %v1345_v30  ;;  %1475 = vadd.xlane.f32.xlu1 %v1414_v59  ;;  %v1415_v58 = vmul.f32 %v3997_v25, %v3997_v25 }
 0x35a   : > { %1477 = vadd.xlane.f32.xlu0 %v1415_v58  ;;  %v1416_v26 = vmul.f32 %v4003_v3, %v4003_v3  ;;  %v4018_v58 = vld [vmem:[%s4305_s8] ss:$0 sm:$0xff] }
 0x35c   : > { %1479 = vadd.xlane.f32.xlu1 %v1416_v26 }
 0x3ab   : > { %v1418_v27 = vpop.xlane.xlu0 %1417 }
 0x3ac   : > { %v1481_v12 = vmul.f32 0.015625, %v1418_v27 }
 0x3ad   : > { %v1420_v60 = vpop.xlane.xlu1 %1419 }
 0x3ae   : > { %v1513_v53 = vadd.f32 1e-05, %v1481_v12  ;;  %v1482_v40 = vmul.f32 0.015625, %v1420_v60 }
 0x3af   : > { %v1422_v5 = vpop.xlane.xlu0 %1421 }
 0x3b0   : > { %2651 = vrsqrt.f32 %v1513_v53  ;;  %v1514_v19 = vadd.f32 1e-05, %v1482_v40  ;;  %v1483_v23 = vmul.f32 0.015625, %v1422_v5 }
 0x3b1   : > { %v1424_v18 = vpop.xlane.xlu1 %1423 }
 0x3b2   : > { %2653 = vrsqrt.f32 %v1514_v19  ;;  %v1515_v46 = vadd.f32 1e-05, %v1483_v23  ;;  %v1484_v50 = vmul.f32 0.015625, %v1424_v18 }
 0x3b3   : > { %v1426_v31 = vpop.xlane.xlu0 %1425 }
 0x3b4   : > { %2655 = vrsqrt.f32 %v1515_v46  ;;  %v1516_v10 = vadd.f32 1e-05, %v1484_v50  ;;  %v1485_v21 = vmul.f32 0.015625, %v1426_v31 }
 0x3b5   : > { %v1428_v29 = vpop.xlane.xlu1 %1427 }
 0x3b6   : > { %2657 = vrsqrt.f32 %v1516_v10  ;;  %v1517_v6 = vadd.f32 1e-05, %v1485_v21  ;;  %v1486_v39 = vmul.f32 0.015625, %v1428_v29 }
 0x3b7   : > { %v1430_v8 = vpop.xlane.xlu0 %1429 }
 0x3b8   : > { %2659 = vrsqrt.f32 %v1517_v6  ;;  %v1518_v11 = vadd.f32 1e-05, %v1486_v39  ;;  %v1487_v63 = vmul.f32 0.015625, %v1430_v8 }
 0x3b9   : > { %v1432_v32 = vpop.xlane.xlu1 %1431 }
 0x3ba   : > { %v2652_v33 = vpop.eup %2651  ;;  %2661 = vrsqrt.f32 %v1518_v11  ;;  %v1519_v2 = vadd.f32 1e-05, %v1487_v63  ;;  %v1488_v14 = vmul.f32 0.015625, %v1432_v32 }
 0x3bb   : > { %v1434_v7 = vpop.xlane.xlu0 %1433  ;;  %v1577_v37 = vmul.f32 %v2652_v33, %v3820_v42 }
 0x3bc   : > { %v2654_v30 = vpop.eup %2653  ;;  %2663 = vrsqrt.f32 %v1519_v2  ;;  %v1520_v59 = vadd.f32 1e-05, %v1488_v14  ;;  %v1489_v44 = vmul.f32 0.015625, %v1434_v7 }
 0x3bd   : > { %v1436_v26 = vpop.xlane.xlu1 %1435  ;;  %v1578_v27 = vmul.f32 %v2654_v30, %v3826_v13  ;;  %v1616_v12 = vmul.f32 %v4012_v0, %v1577_v37 }
 0x3be   : > { %v2656_v60 = vpop.eup %2655  ;;  %2665 = vrsqrt.f32 %v1520_v59  ;;  %v1521_v53 = vadd.f32 1e-05, %v1489_v44  ;;  %v1490_v40 = vmul.f32 0.015625, %v1436_v26 }
 0x3bf   : > { %v1579_v42 = vmul.f32 %v2656_v60, %v3829_v34  ;;  %v1438_v5 = vpop.xlane.xlu0 %1437  ;;  %v1617_v19 = vmul.f32 %v4012_v0, %v1578_v27  ;;  %v1655_v23 = vadd.f32 %v4018_v58, %v1616_v12 }
 0x3c0   : > { %v2658_v18 = vpop.eup %2657  ;;  %v1522_v46 = vadd.f32 1e-05, %v1490_v40  ;;  %v1491_v50 = vmul.f32 0.015625, %v1438_v5  ;;  %2667 = vrsqrt.f32 %v1521_v53 }
 0x3c1   : > { %v1580_v31 = vmul.f32 %v2658_v18, %v3835_v1  ;;  %v1440_v10 = vpop.xlane.xlu1 %1439  ;;  %v4027_v13 = vadd.f32 %v4018_v58, %v1617_v19  ;;  %v1719_v21 = vmul.f32 0.70710677, %v1655_v23  ;;  %v1618_v34 = vmul.f32 %v4012_v0, %v1579_v42 }
 0x3c2   : > { %v2660_v29 = vpop.eup %2659  ;;  %v1523_v6 = vadd.f32 1e-05, %v1491_v50  ;;  %v1492_v39 = vmul.f32 0.015625, %v1440_v10 }
 0x3c3   : > { %v1581_v8 = vmul.f32 %v2660_v29, %v3841_v22  ;;  %v1442_v11 = vpop.xlane.xlu0 %1441  ;;  %v1720_v63 = vmul.f32 0.70710677, %v4027_v13  ;;  %2669 = verf.f32 %v1719_v21  ;;  %v1619_v2 = vmul.f32 %v4012_v0, %v1580_v31 }
 0x3c4   : > { %v2662_v32 = vpop.eup %2661  ;;  %2671 = vrsqrt.f32 %v1522_v46  ;;  %v1524_v1 = vadd.f32 1e-05, %v1492_v39  ;;  %v1493_v33 = vmul.f32 0.015625, %v1442_v11  ;;  %v1657_v37 = vadd.f32 %v4018_v58, %v1618_v34 }
 0x3c5   : > { %v1582_v14 = vmul.f32 %v2662_v32, %v3847_v52  ;;  %v1444_v7 = vpop.xlane.xlu1 %1443  ;;  %2673 = verf.f32 %v1720_v63  ;;  %v1620_v30 = vmul.f32 %v4012_v0, %v1581_v8  ;;  %v1658_v26 = vadd.f32 %v4018_v58, %v1619_v2 }
 0x3c6   : > { %v2664_v59 = vpop.eup %2663  ;;  %2675 = vrsqrt.f32 %v1523_v6  ;;  %v1525_v22 = vadd.f32 1e-05, %v1493_v33  ;;  %v1494_v44 = vmul.f32 0.015625, %v1444_v7  ;;  %v1721_v12 = vmul.f32 0.70710677, %v1657_v37 }
 0x3c7   : > { %2677 = vrsqrt.f32 %v1524_v1  ;;  %v1446_v27 = vpop.xlane.xlu0 %1445  ;;  %v1621_v60 = vmul.f32 %v4012_v0, %v1582_v14  ;;  %v1583_v42 = vmul.f32 %v2664_v59, %v3853_v57  ;;  %v1722_v19 = vmul.f32 0.70710677, %v1658_v26 }
 0x3c8   : > { %v2666_v53 = vpop.eup %2665  ;;  %2679 = vrsqrt.f32 %v1525_v22  ;;  %v1526_v52 = vadd.f32 1e-05, %v1494_v44  ;;  %v1495_v40 = vmul.f32 0.015625, %v1446_v27  ;;  %v1659_v18 = vadd.f32 %v4018_v58, %v1620_v30 }
 0x3c9   : > { %v1448_v5 = vpop.xlane.xlu1 %1447  ;;  %2681 = verf.f32 %v1721_v12  ;;  %v1660_v31 = vadd.f32 %v4018_v58, %v1621_v60  ;;  %v1584_v10 = vmul.f32 %v2666_v53, %v3859_v9  ;;  %v1687_v11 = vmul.f32 0.5, %v1655_v23 }
 0x3ca   : > { %2683 = vrsqrt.f32 %v1526_v52  ;;  %v1527_v46 = vadd.f32 1e-05, %v1495_v40  ;;  %v1496_v50 = vmul.f32 0.015625, %v1448_v5  ;;  %v1723_v29 = vmul.f32 0.70710677, %v1659_v18  ;;  %v2668_v6 = vpop.eup %2667 }
 0x3cb   : > { %v1450_v21 = vpop.xlane.xlu0 %1449  ;;  %2685 = verf.f32 %v1722_v19  ;;  %v1724_v63 = vmul.f32 0.70710677, %v1660_v31  ;;  %v1622_v32 = vmul.f32 %v4012_v0, %v1583_v42  ;;  %v1688_v30 = vmul.f32 0.5, %v4027_v13 }
 0x3cc   : > { %2687 = vrsqrt.f32 %v1527_v46  ;;  %v1528_v39 = vadd.f32 1e-05, %v1496_v50  ;;  %v1497_v34 = vmul.f32 0.015625, %v1450_v21  ;;  %v1623_v59 = vmul.f32 %v4012_v0, %v1584_v10 }
 0x3cd   : > { %v2670_v57 = vpop.eup %2669  ;;  %v1452_v8 = vpop.xlane.xlu1 %1451  ;;  %2689 = verf.f32 %v1723_v29  ;;  %v1661_v22 = vadd.f32 %v4018_v58, %v1622_v32  ;;  %v1689_v60 = vmul.f32 0.5, %v1657_v37  ;;  %v1585_v52 = vmul.f32 %v2668_v6, %v3865_v61 }
 0x3ce   : > { %v2672_v1 = vpop.eup %2671  ;;  %2691 = vrsqrt.f32 %v1528_v39  ;;  %v1529_v33 = vadd.f32 1e-05, %v1497_v34  ;;  %v1498_v2 = vmul.f32 0.015625, %v1452_v8  ;;  %v1783_v14 = vadd.f32 1.0, %v2670_v57 }
 0x3cf   : > { %v2674_v9 = vpop.eup %2673  ;;  %v1454_v7 = vpop.xlane.xlu0 %1453  ;;  %2693 = verf.f32 %v1724_v63  ;;  %v1690_v42 = vmul.f32 0.5, %v1658_v26  ;;  %v1662_v5 = vadd.f32 %v4018_v58, %v1623_v59  ;;  %v1586_v29 = vmul.f32 %v2672_v1, %v3871_v47 }
 0x3d0   : > { %v2676_v44 = vpop.eup %2675  ;;  %v1530_v23 = vadd.f32 1e-05, %v1498_v2  ;;  %v1499_v27 = vmul.f32 0.015625, %v1454_v7  ;;  %v1784_v12 = vadd.f32 1.0, %v2674_v9  ;;  %2695 = vrsqrt.f32 %v1529_v33 }
 0x3d1   : > { %v2678_v53 = vpop.eup %2677  ;;  %v1456_v40 = vpop.xlane.xlu1 %1455  ;;  %v1815_v50 = vmul.f32 %v1783_v14, %v1687_v11  ;;  %v1691_v34 = vmul.f32 0.5, %v1659_v18  ;;  %v1725_v57 = vmul.f32 0.70710677, %v1661_v22  ;;  %v1726_v37 = vmul.f32 0.70710677, %v1662_v5 }
 0x3d2   : > { %v2680_v19 = vpop.eup %2679  ;;  %v1531_v13 = vadd.f32 1e-05, %v1499_v27  ;;  %v1500_v46 = vmul.f32 0.015625, %v1456_v40  ;;  %v1816_v10 = vmul.f32 %v1784_v12, %v1688_v30  ;;  %2697 = vrsqrt.f32 %v1530_v23 }
 0x3d3   : > { %v2682_v21 = vpop.eup %2681  ;;  %v1458_v39 = vpop.xlane.xlu0 %1457  ;;  %v1692_v63 = vmul.f32 0.5, %v1660_v31  ;;  %v1587_v32 = vmul.f32 %v2676_v44, %v3877_v28  ;;  %2699 = verf.f32 %v1725_v57  ;;  %v1624_v11 = vmul.f32 %v4012_v0, %v1585_v52 }
 0x3d4   : > { %v2684_v8 = vpop.eup %2683  ;;  %v1501_v61 = vmul.f32 0.015625, %v1458_v39  ;;  %v1847_v6 = vpack.c.bf16 %v1816_v10, %v1815_v50  ;;  %v1785_v2 = vadd.f32 1.0, %v2682_v21  ;;  %2701 = vrsqrt.f32 %v1531_v13 }
 0x3d5   : > { %v2686_v26 = vpop.eup %2685  ;;  %v1460_v33 = vpop.xlane.xlu1 %1459  ;;  %v1532_v47 = vadd.f32 1e-05, %v1500_v46  ;;  %v1588_v7 = vmul.f32 %v2678_v53, %v3883_v36  ;;  %2703 = verf.f32 %v1726_v37  ;;  %v1625_v31 = vmul.f32 %v4012_v0, %v1586_v29 }
 0x3d6   : > { %v2688_v14 = vpop.eup %2687  ;;  %v1502_v1 = vmul.f32 0.015625, %v1460_v33  ;;  %2468 = vmatprep.mubr.bf16.mxu1 %v1847_v6  ;;  %v1786_v18 = vadd.f32 1.0, %v2686_v26  ;;  %v1533_v30 = vadd.f32 1e-05, %v1501_v61  ;;  %v1817_v23 = vmul.f32 %v1785_v2, %v1689_v60 }
 0x3d7   : > { %v2690_v9 = vpop.eup %2689  ;;  %v1462_v59 = vpop.xlane.xlu0 %1461  ;;  %v1693_v12 = vmul.f32 0.5, %v1661_v22  ;;  %v4054_v40 = vmul.f32 %v2680_v19, %v3889_v54  ;;  %v1663_v50 = vadd.f32 %v4018_v58, %v1624_v11  ;;  %v1664_v36 = vadd.f32 %v4018_v58, %v1625_v31 }
 0x3d8   : > { %v2692_v28 = vpop.eup %2691  ;;  %v1503_v44 = vmul.f32 0.015625, %v1462_v59  ;;  %v1818_v27 = vmul.f32 %v1786_v18, %v1690_v42  ;;  %v1787_v46 = vadd.f32 1.0, %v2690_v9  ;;  %2705 = vrsqrt.f32 %v1532_v47 }
 0x3d9   : > { %v2694_v52 = vpop.eup %2693  ;;  %v1464_v13 = vpop.xlane.xlu1 %1463  ;;  %v1534_v53 = vadd.f32 1e-05, %v1502_v1  ;;  %v4059_v39 = vmul.f32 %v2684_v8, %v3895_v4  ;;  %2707 = vrsqrt.f32 %v1533_v30  ;;  %v1694_v42 = vmul.f32 0.5, %v1662_v5 }
 0x3da   : > { %v1504_v10 = vmul.f32 0.015625, %v1464_v13  ;;  %v1848_v21 = vpack.c.bf16 %v1818_v27, %v1817_v23  ;;  %v2696_v29 = vpop.eup %2695  ;;  %v1788_v60 = vadd.f32 1.0, %v2694_v52  ;;  %v4062_v54 = vmul.f32 %v2688_v14, %v3901_v41 }
 0x3db   : > { %v1466_v22 = vpop.xlane.xlu0 %1465  ;;  %v4065_v19 = vmul.f32 %v2692_v28, %v3907_v62  ;;  %v1535_v57 = vadd.f32 1e-05, %v1503_v44  ;;  %v1819_v6 = vmul.f32 %v1787_v46, %v1691_v34  ;;  %v1727_v33 = vmul.f32 0.70710677, %v1663_v50 }
 0x3dc   : > { %2469 = vmatmul.mubr.bf16.vlgmr.msra.gmra.mrb[0].mxu1 %v1848_v21  ;;  %v1505_v37 = vmul.f32 0.015625, %v1466_v22  ;;  %v1820_v26 = vmul.f32 %v1788_v60, %v1692_v63  ;;  %v1728_v2 = vmul.f32 0.70710677, %v1664_v36  ;;  %v2698_v4 = vpop.eup %2697  ;;  %2709 = vrsqrt.f32 %v1534_v53 }
 0x3dd   : > { %v1468_v61 = vpop.xlane.xlu1 %1467  ;;  %v1536_v8 = vadd.f32 1e-05, %v1504_v10  ;;  %v1626_v5 = vmul.f32 %v4012_v0, %v1587_v32  ;;  %v2700_v47 = vpop.eup %2699  ;;  %v4069_v41 = vmul.f32 %v2696_v29, %v3913_v17  ;;  %2711 = verf.f32 %v1727_v33 }
 0x3de   : > { %v1506_v11 = vmul.f32 0.015625, %v1468_v61  ;;  %v1849_v62 = vpack.c.bf16 %v1820_v26, %v1819_v6  ;;  %v1627_v1 = vmul.f32 %v4012_v0, %v1588_v7  ;;  %v2702_v18 = vpop.eup %2701  ;;  %2713 = vrsqrt.f32 %v1535_v57 }
 0x3df   : > { %v1470_v14 = vpop.xlane.xlu0 %1469  ;;  %v1537_v34 = vadd.f32 1e-05, %v1505_v37  ;;  %v1789_v9 = vadd.f32 1.0, %v2700_v47  ;;  %v2704_v30 = vpop.eup %2703  ;;  %2715 = verf.f32 %v1728_v2  ;;  %v1665_v32 = vadd.f32 %v4018_v58, %v1626_v5 }
 0x3e0   : > { %v1507_v63 = vmul.f32 0.015625, %v1470_v14  ;;  %v1538_v59 = vadd.f32 1e-05, %v1506_v11  ;;  %2472 = vmatprep.mubr.bf16.mxu1 %v1849_v62  ;;  %v1666_v17 = vadd.f32 %v4018_v58, %v1627_v1  ;;  %2717 = vrsqrt.f32 %v1536_v8 }
 0x3e1   : > { %v1472_v31 = vpop.xlane.xlu1 %1471  ;;  %v1790_v23 = vadd.f32 1.0, %v2704_v30  ;;  %v1594_v7 = vmul.f32 %v2698_v4, %v3919_v49  ;;  %v4076_v27 = vmul.f32 %v2702_v18, %v3925_v51  ;;  %v1695_v13 = vmul.f32 0.5, %v1663_v50 }
 0x3e2   : > { %v1539_v28 = vadd.f32 1e-05, %v1507_v63  ;;  %v1508_v44 = vmul.f32 0.015625, %v1472_v31  ;;  %v1696_v46 = vmul.f32 0.5, %v1664_v36  ;;  %v2706_v53 = vpop.eup %2705  ;;  %2719 = vrsqrt.f32 %v1537_v34 }
 0x3e3   : > { %v1474_v52 = vpop.xlane.xlu0 %1473  ;;  %v1821_v10 = vmul.f32 %v1789_v9, %v1693_v12  ;;  %v1822_v21 = vmul.f32 %v1790_v23, %v1694_v42  ;;  %v2708_v22 = vpop.eup %2707  ;;  %2721 = vrsqrt.f32 %v1538_v59  ;;  %v1729_v57 = vmul.f32 0.70710677, %v1665_v32 }
 0x3e4   : > { %v1509_v29 = vmul.f32 0.015625, %v1474_v52  ;;  %v1730_v37 = vmul.f32 0.70710677, %v1666_v17  ;;  %v1628_v61 = vmul.f32 %v4012_v0, %v4054_v40  ;;  %2723 = vrsqrt.f32 %v1539_v28 }
 0x3e5   : > { %v1476_v60 = vpop.xlane.xlu1 %1475  ;;  %v1540_v49 = vadd.f32 1e-05, %v1508_v44  ;;  %v1850_v51 = vpack.c.bf16 %v1822_v21, %v1821_v10  ;;  %2725 = verf.f32 %v1729_v57  ;;  %v1629_v12 = vmul.f32 %v4012_v0, %v4059_v39 }
 0x3e6   : > { %v1510_v6 = vmul.f32 0.015625, %v1476_v60  ;;  %v1541_v26 = vadd.f32 1e-05, %v1509_v29  ;;  %v1667_v36 = vadd.f32 %v4018_v58, %v1628_v61  ;;  %v2710_v42 = vpop.eup %2709  ;;  %v4084_v33 = vmul.f32 %v2706_v53, %v3931_v16 }
 0x3e7   : > { %v1478_v50 = vpop.xlane.xlu0 %1477  ;;  %v4087_v2 = vmul.f32 %v2708_v22, %v3937_v20  ;;  %2473 = vmatmul.mubr.bf16.gmra.mrb[4].mxu1 %v1850_v51  ;;  %v2712_v8 = vpop.eup %2711  ;;  %v4089_v5 = vmul.f32 0.5, %v1665_v32  ;;  %2727 = verf.f32 %v1730_v37  ;;  %v1668_v47 = vadd.f32 %v4018_v58, %v1629_v12 }
 0x3e8   : > { %v1542_v40 = vadd.f32 1e-05, %v1510_v6  ;;  %v1511_v4 = vmul.f32 0.015625, %v1478_v50  ;;  %v1630_v39 = vmul.f32 %v4012_v0, %v4062_v54  ;;  %v2714_v62 = vpop.eup %2713  ;;  %2729 = vrsqrt.f32 %v1540_v49 }
 0x3e9   : > { %v1480_v11 = vpop.xlane.xlu1 %1479  ;;  %v1791_v16 = vadd.f32 1.0, %v2712_v8  ;;  %v2716_v20 = vpop.eup %2715  ;;  %2731 = vrsqrt.f32 %v1541_v26  ;;  %v1698_v18 = vmul.f32 0.5, %v1666_v17  ;;  %v1731_v34 = vmul.f32 0.70710677, %v1667_v36 }
 0x3ea   : > { %v1543_v14 = vadd.f32 1e-05, %v1511_v4  ;;  %v1512_v1 = vmul.f32 0.015625, %v1480_v11  ;;  %v1732_v63 = vmul.f32 0.70710677, %v1668_v47  ;;  %v2718_v9 = vpop.eup %2717  ;;  %v1598_v30 = vmul.f32 %v2710_v42, %v3943_v35 }
 0x3eb   : > { %2733 = vrsqrt.f32 %v1542_v40  ;;  %v1792_v59 = vadd.f32 1.0, %v2716_v20  ;;  %v1823_v31 = vmul.f32 %v1791_v16, %v1695_v13  ;;  %v1631_v54 = vmul.f32 %v4012_v0, %v4065_v19 }
 0x3ec   : > { %v1544_v32 = vadd.f32 1e-05, %v1512_v1  ;;  %2735 = verf.f32 %v1731_v34  ;;  %v1669_v28 = vadd.f32 %v4018_v58, %v1630_v39  ;;  %v2720_v44 = vpop.eup %2719  ;;  %v1632_v17 = vmul.f32 %v4012_v0, %v4069_v41 }
 0x3ed   : > { %v1824_v23 = vmul.f32 %v1792_v59, %v1696_v46  ;;  %2737 = vrsqrt.f32 %v1543_v14  ;;  %v1633_v52 = vmul.f32 %v4012_v0, %v1594_v7  ;;  %v2722_v53 = vpop.eup %2721  ;;  %v1599_v35 = vmul.f32 %v2714_v62, %v3949_v24 }
 0x3ee   : > { %v1600_v13 = vmul.f32 %v2718_v9, %v3955_v45  ;;  %2739 = verf.f32 %v1732_v63  ;;  %v1670_v10 = vadd.f32 %v4018_v58, %v1631_v54  ;;  %v2724_v21 = vpop.eup %2723  ;;  %v1733_v29 = vmul.f32 0.70710677, %v1669_v28 }
 0x3ef   : > { %v1851_v19 = vpack.c.bf16 %v1824_v23, %v1823_v31  ;;  %v1671_v22 = vadd.f32 %v4018_v58, %v1632_v17  ;;  %v1672_v46 = vadd.f32 %v4018_v58, %v1633_v52  ;;  %v2726_v60 = vpop.eup %2725  ;;  %2741 = vrsqrt.f32 %v1544_v32 }
 0x3f0   : > { %v1699_v41 = vmul.f32 0.5, %v1667_v36  ;;  %v1734_v57 = vmul.f32 0.70710677, %v1670_v10  ;;  %v1634_v7 = vmul.f32 %v4012_v0, %v4076_v27  ;;  %v1601_v24 = vmul.f32 %v2720_v44, %v3961_v38 }
 0x3f1   : > { %2476 = vmatprep.mubr.bf16.mxu1 %v1851_v19  ;;  %v1793_v45 = vadd.f32 1.0, %v2726_v60  ;;  %v1700_v37 = vmul.f32 0.5, %v1668_v47  ;;  %2743 = verf.f32 %v1733_v29  ;;  %v2728_v61 = vpop.eup %2727  ;;  %v1602_v49 = vmul.f32 %v2722_v53, %v3967_v48 }
 0x3f2   : > { %2745 = verf.f32 %v1734_v57  ;;  %v1735_v51 = vmul.f32 0.70710677, %v1671_v22  ;;  %v1736_v6 = vmul.f32 0.70710677, %v1672_v46  ;;  %v2730_v26 = vpop.eup %2729  ;;  %v1603_v50 = vmul.f32 %v2724_v21, %v3973_v15 }
 0x3f3   : > { %v1794_v12 = vadd.f32 1.0, %v2728_v61  ;;  %v1635_v36 = vmul.f32 %v4012_v0, %v4084_v33  ;;  %v1673_v27 = vadd.f32 %v4018_v58, %v1634_v7  ;;  %v2732_v38 = vpop.eup %2731  ;;  %v1701_v42 = vmul.f32 0.5, %v1669_v28 }
 0x3f4   : > { %2747 = verf.f32 %v1735_v51  ;;  %v1636_v40 = vmul.f32 %v4012_v0, %v4087_v2  ;;  %v1637_v48 = vmul.f32 %v4012_v0, %v1598_v30  ;;  %v1825_v8 = vmul.f32 %v1793_v45, %v4089_v5 }
 0x3f5   : > { %v2734_v4 = vpop.eup %2733  ;;  %v1826_v11 = vmul.f32 %v1794_v12, %v1698_v18  ;;  %2749 = verf.f32 %v1736_v6  ;;  %v1674_v15 = vadd.f32 %v4018_v58, %v1635_v36  ;;  %v1604_v33 = vmul.f32 %v2730_v26, %v3979_v43 }
 0x3f6   : > { %v2736_v47 = vpop.eup %2735  ;;  %v1737_v39 = vmul.f32 0.70710677, %v1673_v27  ;;  %v4121_v62 = vadd.f32 %v4018_v58, %v1636_v40  ;;  %v4124_v16 = vadd.f32 %v4018_v58, %v1637_v48  ;;  %v1702_v20 = vmul.f32 0.5, %v1670_v10 }
 0x3f7   : > { %v2738_v2 = vpop.eup %2737  ;;  %v1852_v14 = vpack.c.bf16 %v1826_v11, %v1825_v8  ;;  %v1795_v1 = vadd.f32 1.0, %v2736_v47  ;;  %v1738_v34 = vmul.f32 0.70710677, %v1674_v15  ;;  %v1605_v18 = vmul.f32 %v2732_v38, %v3985_v55 }
 0x3f8   : > { %v2740_v5 = vpop.eup %2739  ;;  %v1703_v63 = vmul.f32 0.5, %v1671_v22  ;;  %v1704_v9 = vmul.f32 0.5, %v1672_v46  ;;  %2751 = verf.f32 %v1737_v39  ;;  %v1606_v43 = vmul.f32 %v2734_v4, %v3991_v56 }
 0x3f9   : > { %2477 = vmatmul.mubr.bf16.gmra.mrb[8].mxu1 %v1852_v14  ;;  %v1796_v30 = vadd.f32 1.0, %v2740_v5  ;;  %2753 = verf.f32 %v1738_v34  ;;  %v1739_v59 = vmul.f32 0.70710677, %v4121_v62  ;;  %v2742_v31 = vpop.eup %2741  ;;  %v1740_v32 = vmul.f32 0.70710677, %v4124_v16 }
 0x3fa   : > { %v1638_v54 = vmul.f32 %v4012_v0, %v1599_v35  ;;  %v1639_v28 = vmul.f32 %v4012_v0, %v1600_v13  ;;  %v1640_v44 = vmul.f32 %v4012_v0, %v1601_v24  ;;  %v1827_v23 = vmul.f32 %v1795_v1, %v1699_v41 }
 0x3fb   : > { %v2744_v55 = vpop.eup %2743  ;;  %v1828_v17 = vmul.f32 %v1796_v30, %v1700_v37  ;;  %2755 = verf.f32 %v1739_v59  ;;  %v1641_v56 = vmul.f32 %v4012_v0, %v1602_v49  ;;  %v1607_v46 = vmul.f32 %v2738_v2, %v3997_v25 }
 0x3fc   : > { %v2746_v52 = vpop.eup %2745  ;;  %v1797_v53 = vadd.f32 1.0, %v2744_v55  ;;  %2757 = verf.f32 %v1740_v32  ;;  %v4135_v10 = vadd.f32 %v4018_v58, %v1638_v54  ;;  %v4138_v21 = vadd.f32 %v4018_v58, %v1639_v28 }
 0x3fd   : > { %v1853_v35 = vpack.c.bf16 %v1828_v17, %v1827_v23  ;;  %v1798_v19 = vadd.f32 1.0, %v2746_v52  ;;  %v4141_v13 = vadd.f32 %v4018_v58, %v1640_v44  ;;  %v4144_v29 = vadd.f32 %v4018_v58, %v1641_v56 }
 0x3fe   : > { %v2748_v22 = vpop.eup %2747  ;;  %v1705_v60 = vmul.f32 0.5, %v1673_v27  ;;  %v1741_v41 = vmul.f32 0.70710677, %v4135_v10  ;;  %v1642_v57 = vmul.f32 %v4012_v0, %v1603_v50  ;;  %v1829_v24 = vmul.f32 %v1797_v53, %v1701_v42 }
 0x3ff   : > { %v2750_v7 = vpop.eup %2749  ;;  %2480 = vmatprep.mubr.bf16.mxu1 %v1853_v35  ;;  %v1830_v45 = vmul.f32 %v1798_v19, %v1702_v20  ;;  %v1799_v37 = vadd.f32 1.0, %v2748_v22  ;;  %v1742_v61 = vmul.f32 0.70710677, %v4138_v21  ;;  %v1706_v51 = vmul.f32 0.5, %v1674_v15 }
 0x400   : > { %v1800_v49 = vadd.f32 1.0, %v2750_v7  ;;  %2759 = verf.f32 %v1741_v41  ;;  %v1743_v6 = vmul.f32 0.70710677, %v4141_v13  ;;  %v1744_v25 = vmul.f32 0.70710677, %v4144_v29 }
 0x401   : > { %v1854_v26 = vpack.c.bf16 %v1830_v45, %v1829_v24  ;;  %v1831_v12 = vmul.f32 %v1799_v37, %v1703_v63  ;;  %2761 = verf.f32 %v1742_v61  ;;  %v1643_v50 = vmul.f32 %v4012_v0, %v1604_v33 }
 0x402   : > { %v2752_v36 = vpop.eup %2751  ;;  %v1832_v27 = vmul.f32 %v1800_v49, %v1704_v9  ;;  %2763 = verf.f32 %v1743_v6  ;;  %v4154_v38 = vadd.f32 %v4018_v58, %v1642_v57  ;;  %v1644_v48 = vmul.f32 %v4012_v0, %v1605_v18 }
 0x403   : > { %v2754_v42 = vpop.eup %2753  ;;  %2481 = vmatmul.mubr.bf16.gmra.mrb[12].mxu1 %v1854_v26  ;;  %v1801_v40 = vadd.f32 1.0, %v2752_v36  ;;  %2765 = verf.f32 %v1744_v25  ;;  %v1645_v4 = vmul.f32 %v4012_v0, %v1606_v43  ;;  %v1608_v8 = vmul.f32 %v2742_v31, %v4003_v3 }
 0x404   : > { %v1855_v11 = vpack.c.bf16 %v1832_v27, %v1831_v12  ;;  %v1802_v15 = vadd.f32 1.0, %v2754_v42  ;;  %v1682_v47 = vadd.f32 %v4018_v58, %v1643_v50  ;;  %v1707_v33 = vmul.f32 0.5, %v4121_v62 }
 0x405   : > { %v2756_v39 = vpop.eup %2755  ;;  %v1745_v2 = vmul.f32 0.70710677, %v4154_v38  ;;  %v1683_v14 = vadd.f32 %v4018_v58, %v1644_v48  ;;  %v1684_v1 = vadd.f32 %v4018_v58, %v1645_v4  ;;  %v1833_v34 = vmul.f32 %v1801_v40, %v1705_v60 }
 0x406   : > { %v2758_v20 = vpop.eup %2757  ;;  %2484 = vmatprep.mubr.bf16.mxu1 %v1855_v11  ;;  %v1834_v5 = vmul.f32 %v1802_v15, %v1706_v51  ;;  %v1803_v18 = vadd.f32 1.0, %v2756_v39  ;;  %v1746_v63 = vmul.f32 0.70710677, %v1682_v47  ;;  %v1708_v3 = vmul.f32 0.5, %v4124_v16 }
 0x407   : > { %v1804_v9 = vadd.f32 1.0, %v2758_v20  ;;  %2767 = verf.f32 %v1745_v2  ;;  %v1747_v62 = vmul.f32 0.70710677, %v1683_v14  ;;  %v1748_v31 = vmul.f32 0.70710677, %v1684_v1 }
 0x408   : > { %v1856_v43 = vpack.c.bf16 %v1834_v5, %v1833_v34  ;;  %v1835_v30 = vmul.f32 %v1803_v18, %v1707_v33  ;;  %2769 = verf.f32 %v1746_v63  ;;  %v1646_v32 = vmul.f32 %v4012_v0, %v1607_v46 }
 0x409   : > { %v1836_v59 = vmul.f32 %v1804_v9, %v1708_v3  ;;  %v1647_v54 = vmul.f32 %v4012_v0, %v1608_v8  ;;  %2771 = verf.f32 %v1747_v62  ;;  %v1709_v56 = vmul.f32 0.5, %v4135_v10 }
 0x40a   : > { %v2760_v28 = vpop.eup %2759  ;;  %2773 = verf.f32 %v1748_v31  ;;  %v1685_v16 = vadd.f32 %v4018_v58, %v1646_v32  ;;  %v1710_v52 = vmul.f32 0.5, %v4138_v21  ;;  %v1711_v0 = vmul.f32 0.5, %v4141_v13 }
 0x40b   : > { %v2762_v44 = vpop.eup %2761  ;;  %2485 = vmatmul.mubr.bf16.gmra.mrb[16].mxu1 %v1856_v43  ;;  %v1857_v55 = vpack.c.bf16 %v1836_v59, %v1835_v30  ;;  %v1805_v23 = vadd.f32 1.0, %v2760_v28  ;;  %v1686_v35 = vadd.f32 %v4018_v58, %v1647_v54  ;;  %v1712_v22 = vmul.f32 0.5, %v4144_v29 }
 0x40c   : > { %v2764_v17 = vpop.eup %2763  ;;  %v1806_v53 = vadd.f32 1.0, %v2762_v44  ;;  %v1749_v60 = vmul.f32 0.70710677, %v1685_v16  ;;  %v1713_v13 = vmul.f32 0.5, %v4154_v38  ;;  %v1714_v51 = vmul.f32 0.5, %v1682_v47 }
 0x40d   : > { %v2766_v19 = vpop.eup %2765  ;;  %2488 = vmatprep.mubr.bf16.mxu1 %v1857_v55  ;;  %v1807_v46 = vadd.f32 1.0, %v2764_v17  ;;  %v1837_v41 = vmul.f32 %v1805_v23, %v1709_v56  ;;  %v1750_v24 = vmul.f32 0.70710677, %v1686_v35  ;;  %v1715_v27 = vmul.f32 0.5, %v1683_v14  ;;  %v4178_v14 = vld [vmem:[%s4307_s10] ss:$0 sm:$0xff] }
 0x40e   : > { %v1838_v57 = vmul.f32 %v1806_v53, %v1710_v52  ;;  %v1808_v7 = vadd.f32 1.0, %v2766_v19  ;;  %2775 = verf.f32 %v1749_v60  ;;  %v1716_v50 = vmul.f32 0.5, %v1684_v1 }
 0x40f   : > { %v1839_v10 = vmul.f32 %v1807_v46, %v1711_v0  ;;  %2777 = verf.f32 %v1750_v24  ;;  %v1717_v38 = vmul.f32 0.5, %v1685_v16  ;;  %v1718_v47 = vmul.f32 0.5, %v1686_v35 }
 0x410   : > { %v1858_v45 = vpack.c.bf16 %v1838_v57, %v1837_v41  ;;  %v1840_v37 = vmul.f32 %v1808_v7, %v1712_v22 }
 0x411   : > { %v2768_v21 = vpop.eup %2767 }
 0x412   : > { %v2770_v61 = vpop.eup %2769  ;;  %v1859_v58 = vpack.c.bf16 %v1840_v37, %v1839_v10  ;;  %v1809_v49 = vadd.f32 1.0, %v2768_v21 }
 0x413   : > { %2489 = vmatmul.mubr.bf16.gmra.mrb[20].mxu1 %v1858_v45  ;;  %v1810_v29 = vadd.f32 1.0, %v2770_v61  ;;  %v2772_v6 = vpop.eup %2771 }
 0x414   : > { %2492 = vmatprep.mubr.bf16.mxu1 %v1859_v58  ;;  %v2774_v26 = vpop.eup %2773  ;;  %v1841_v12 = vmul.f32 %v1809_v49, %v1713_v13  ;;  %v1811_v36 = vadd.f32 1.0, %v2772_v6 }
 0x415   : > { %v1842_v25 = vmul.f32 %v1810_v29, %v1714_v51  ;;  %v1812_v42 = vadd.f32 1.0, %v2774_v26 }
 0x416   : > { %v1843_v48 = vmul.f32 %v1811_v36, %v1715_v27 }
 0x417   : > { %v1860_v40 = vpack.c.bf16 %v1842_v25, %v1841_v12  ;;  %v1844_v4 = vmul.f32 %v1812_v42, %v1716_v50 }
 0x418   : > { %v2776_v8 = vpop.eup %2775 }
 0x419   : > { %v2778_v11 = vpop.eup %2777  ;;  %v1861_v15 = vpack.c.bf16 %v1844_v4, %v1843_v48  ;;  %v1813_v39 = vadd.f32 1.0, %v2776_v8 }
 0x41a   : > { %v1814_v33 = vadd.f32 1.0, %v2778_v11 }
 0x41b   : > { %2493 = vmatmul.mubr.bf16.gmra.mrb[24].mxu1 %v1860_v40  ;;  %v1845_v2 = vmul.f32 %v1813_v39, %v1717_v38 }
 0x41c   : > { %2496 = vmatprep.mubr.bf16.mxu1 %v1861_v15  ;;  %v1846_v20 = vmul.f32 %v1814_v33, %v1718_v47 }
 0x41e   : > { %v1862_v34 = vpack.c.bf16 %v1846_v20, %v1845_v2 }
 0x423   : > { %2497 = vmatmul.mubr.bf16.gmra.mrb[28].mxu1 %v1862_v34 }
 0x4af   : > { %v2470_v1 = vpop.f32.mrb[0].mxu1 }
 0x4b0   : > { %v1977_v5 = vadd.f32 %v2470_v1, %v4178_v14  ;;  %v1968_v18 = vpop.f32.mrb[1].mxu1 }
 0x4b1   : > { %v1969_v63 = vadd.f32 %v4178_v14, %v1968_v18  ;;  %v2471_v3 = vpop.f32.mrb[2].mxu1 }
 0x4b2   : > { %2097 = vst [vmem:[%s4182_s28 + $0x10] sm:$0xff] %v1977_v5  ;;  %v1980_v9 = vadd.f32 %v2471_v3, %v4178_v14  ;;  %v1971_v43 = vpop.f32.mrb[3].mxu1 }
 0x4b3   : > { %2095 = vst [vmem:[%s4182_s28] sm:$0xff] %v1969_v63  ;;  %v1972_v30 = vadd.f32 %v4178_v14, %v1971_v43 }
 0x4b4   : > { %2098 = vst [vmem:[%s4182_s28 + $0x18] sm:$0xff] %v1980_v9 }
 0x4b5   : > { %2096 = vst [vmem:[%s4182_s28 + $0x8] sm:$0xff] %v1972_v30 }
 0x4ba   : > { %v2474_v62 = vpop.f32.mrb[4].mxu1 }
 0x4bb   : > { %v1993_v59 = vadd.f32 %v2474_v62, %v4178_v14  ;;  %v1984_v31 = vpop.f32.mrb[5].mxu1 }
 0x4bc   : > { %v1985_v32 = vadd.f32 %v4178_v14, %v1984_v31  ;;  %v2475_v54 = vpop.f32.mrb[6].mxu1 }
 0x4bd   : > { %2101 = vst [vmem:[%s4182_s28 + $0x30] sm:$0xff] %v1993_v59  ;;  %v1996_v28 = vadd.f32 %v2475_v54, %v4178_v14  ;;  %v1987_v44 = vpop.f32.mrb[7].mxu1 }
 0x4be   : > { %2099 = vst [vmem:[%s4182_s28 + $0x20] sm:$0xff] %v1985_v32  ;;  %v1988_v55 = vadd.f32 %v4178_v14, %v1987_v44 }
 0x4bf   : > { %2102 = vst [vmem:[%s4182_s28 + $0x38] sm:$0xff] %v1996_v28 }
 0x4c0   : > { %2100 = vst [vmem:[%s4182_s28 + $0x28] sm:$0xff] %v1988_v55 }
 0x4cc   : > { %v2478_v23 = vpop.f32.mrb[8].mxu1 }
 0x4cd   : > { %v2009_v16 = vadd.f32 %v2478_v23, %v4178_v14  ;;  %v2000_v17 = vpop.f32.mrb[9].mxu1 }
 0x4ce   : > { %v2001_v56 = vadd.f32 %v4178_v14, %v2000_v17  ;;  %v2479_v52 = vpop.f32.mrb[10].mxu1 }
 0x4cf   : > { %2105 = vst [vmem:[%s4182_s28 + $0x50] sm:$0xff] %v2009_v16  ;;  %v2012_v53 = vadd.f32 %v2479_v52, %v4178_v14  ;;  %v2003_v35 = vpop.f32.mrb[11].mxu1 }
 0x4d0   : > { %2103 = vst [vmem:[%s4182_s28 + $0x40] sm:$0xff] %v2001_v56  ;;  %v2004_v19 = vadd.f32 %v4178_v14, %v2003_v35 }
 0x4d1   : > { %2106 = vst [vmem:[%s4182_s28 + $0x58] sm:$0xff] %v2012_v53 }
 0x4d2   : > { %2104 = vst [vmem:[%s4182_s28 + $0x48] sm:$0xff] %v2004_v19 }
 0x4d6   : > { %v2482_v0 = vpop.f32.mrb[12].mxu1 }
 0x4d7   : > { %v2025_v22 = vadd.f32 %v2482_v0, %v4178_v14  ;;  %v2016_v46 = vpop.f32.mrb[13].mxu1 }
 0x4d8   : > { %v2017_v60 = vadd.f32 %v4178_v14, %v2016_v46  ;;  %v2483_v41 = vpop.f32.mrb[14].mxu1 }
 0x4d9   : > { %2109 = vst [vmem:[%s4182_s28 + $0x70] sm:$0xff] %v2025_v22  ;;  %v2028_v57 = vadd.f32 %v2483_v41, %v4178_v14  ;;  %v2019_v7 = vpop.f32.mrb[15].mxu1 }
 0x4da   : > { %2107 = vst [vmem:[%s4182_s28 + $0x60] sm:$0xff] %v2017_v60  ;;  %v2020_v24 = vadd.f32 %v4178_v14, %v2019_v7 }
 0x4db   : > { %2110 = vst [vmem:[%s4182_s28 + $0x78] sm:$0xff] %v2028_v57 }
 0x4dc   : > { %2108 = vst [vmem:[%s4182_s28 + $0x68] sm:$0xff] %v2020_v24 }
 0x4de   : > { %v2486_v45 = vpop.f32.mrb[16].mxu1 }
 0x4df   : > { %v2041_v10 = vadd.f32 %v2486_v45, %v4178_v14  ;;  %v2032_v37 = vpop.f32.mrb[17].mxu1 }
 0x4e0   : > { %v2033_v21 = vadd.f32 %v4178_v14, %v2032_v37  ;;  %v2487_v61 = vpop.f32.mrb[18].mxu1 }
 0x4e1   : > { %2113 = vst [vmem:[%s4182_s28 + $0x90] sm:$0xff] %v2041_v10  ;;  %v2044_v58 = vadd.f32 %v2487_v61, %v4178_v14  ;;  %v2035_v49 = vpop.f32.mrb[19].mxu1 }
 0x4e2   : > { %2111 = vst [vmem:[%s4182_s28 + $0x80] sm:$0xff] %v2033_v21  ;;  %v2036_v13 = vadd.f32 %v4178_v14, %v2035_v49 }
 0x4e3   : > { %2114 = vst [vmem:[%s4182_s28 + $0x98] sm:$0xff] %v2044_v58 }
 0x4e4   : > { %2112 = vst [vmem:[%s4182_s28 + $0x88] sm:$0xff] %v2036_v13 }
 0x4e6   : > { %v2490_v51 = vpop.f32.mrb[20].mxu1 }
 0x4e7   : > { %v2057_v29 = vadd.f32 %v2490_v51, %v4178_v14  ;;  %v2048_v6 = vpop.f32.mrb[21].mxu1 }
 0x4e8   : > { %v2049_v26 = vadd.f32 %v4178_v14, %v2048_v6  ;;  %v2491_v12 = vpop.f32.mrb[22].mxu1 }
 0x4e9   : > { %2117 = vst [vmem:[%s4182_s28 + $0xb0] sm:$0xff] %v2057_v29  ;;  %v2060_v25 = vadd.f32 %v2491_v12, %v4178_v14  ;;  %v2051_v36 = vpop.f32.mrb[23].mxu1 }
 0x4ea   : > { %2115 = vst [vmem:[%s4182_s28 + $0xa0] sm:$0xff] %v2049_v26  ;;  %v2052_v27 = vadd.f32 %v4178_v14, %v2051_v36 }
 0x4eb   : > { %2118 = vst [vmem:[%s4182_s28 + $0xb8] sm:$0xff] %v2060_v25 }
 0x4ec   : > { %2116 = vst [vmem:[%s4182_s28 + $0xa8] sm:$0xff] %v2052_v27 }
 0x4ee   : > { %v2494_v50 = vpop.f32.mrb[24].mxu1 }
 0x4ef   : > { %v2073_v42 = vadd.f32 %v2494_v50, %v4178_v14  ;;  %v2064_v40 = vpop.f32.mrb[25].mxu1 }
 0x4f0   : > { %v2065_v48 = vadd.f32 %v4178_v14, %v2064_v40  ;;  %v2495_v4 = vpop.f32.mrb[26].mxu1 }
 0x4f1   : > { %2121 = vst [vmem:[%s4182_s28 + $0xd0] sm:$0xff] %v2073_v42  ;;  %v2076_v8 = vadd.f32 %v2495_v4, %v4178_v14  ;;  %v2067_v11 = vpop.f32.mrb[27].mxu1 }
 0x4f2   : > { %2119 = vst [vmem:[%s4182_s28 + $0xc0] sm:$0xff] %v2065_v48  ;;  %v2068_v15 = vadd.f32 %v4178_v14, %v2067_v11 }
 0x4f3   : > { %2122 = vst [vmem:[%s4182_s28 + $0xd8] sm:$0xff] %v2076_v8 }
 0x4f4   : > { %2120 = vst [vmem:[%s4182_s28 + $0xc8] sm:$0xff] %v2068_v15 }
 0x4f6   : > { %v2498_v39 = vpop.f32.mrb[28].mxu1 }
 0x4f7   : > { %v2089_v38 = vadd.f32 %v2498_v39, %v4178_v14  ;;  %v2080_v47 = vpop.f32.mrb[29].mxu1 }
 0x4f8   : > { %v2081_v33 = vadd.f32 %v4178_v14, %v2080_v47  ;;  %v2499_v2 = vpop.f32.mrb[30].mxu1 }
 0x4f9   : > { %2125 = vst [vmem:[%s4182_s28 + $0xf0] sm:$0xff] %v2089_v38  ;;  %v2092_v20 = vadd.f32 %v2499_v2, %v4178_v14  ;;  %v2083_v34 = vpop.f32.mrb[31].mxu1 }
 0x4fa   : > { %2123 = vst [vmem:[%s4182_s28 + $0xe0] sm:$0xff] %v2081_v33  ;;  %v2084_v1 = vadd.f32 %v4178_v14, %v2083_v34 }
 0x4fb   : > { %2126 = vst [vmem:[%s4182_s28 + $0xf8] sm:$0xff] %v2092_v20 }
 0x4fc   : > { %2124 = vst [vmem:[%s4182_s28 + $0xe8] sm:$0xff] %v2084_v1 }
 0x4fd   : > { %2878 = shalt.err (!%p2875_p1)
}
 0x4fe   : > { %s2879_s14 = scalar_lea.hbm %s4247_s30, 4096  ;;  %s2883_s29 = scalar_lea.hbm %s4332_s26, 8192 }
 0x4ff   : > { %p2880_p13 = scmp.ne.s32.totalorder %s4247_s30, %s2879_s14  ;;  %p2884_p4 = scmp.lt.u32.totalorder %s4247_s30, %s4332_s26 }
 0x500   : > { %p2885_p5 = scmp.lt.u32.totalorder %s2883_s29, %s2879_s14  ;;  %p2887_p11 = scmp.lt.u32.totalorder %s2879_s14, %s4247_s30 }
 0x501   : > { %p2881_p6 = pnand %p2880_p13, %p4333_p0 }
 0x502   : > { %p2886_p8 = por %p2885_p5, %p2884_p4 }
 0x503   : > { %p2882_p10 = pneg %p2881_p6 }
 0x504   : > { %p2888_p2 = por %p2887_p11, %p2886_p8 }
 0x506   : > { %p2889_p3 = pnand %p2888_p2, %p2882_p10 }
 0x508   : > { %2892 = shalt.err (!%p2889_p3)
}
 0x509   : > { %s2943_s23 = smov 128   ;;  %s2944_s12 = smov 8  }
 0x50a   : > { %2510 = dma.vmem_to_hbm [thread:$0]  (%p4333_p0), %s4249_s13, 4096, %s4247_s30, %s2128_s21, %s2943_s23, %s2943_s23, %s2944_s12  }
 0x50b PF: > { %s4334_s11 = sld [smem:[#allocation12_spill]]  ;;  %s4335_s28 = sld [smem:[#allocation13_spill]] }
 0x50c   : > { %p4337_p9 = scmp.ge.s32.totalorder %s2935_s20, 2 }
 0x511   : > { %s2156_s27 = sand.u32 1, %s4334_s11   ;;  %p4336_p7 = scmp.ne.s32.totalorder %s4335_s28, 0 }
 0x512   : > { %s2157_s14 = scalar_lea.sflag [#allocation4], %s2156_s27 }
 0x513   : > { %p2524_p12 = pnand %p4337_p9, %p4336_p7 }
 0x515   : > { %2918 = dma.done.wait (!%p2524_p12), %s2157_s14, 4096  }
 0x516   : > { %2920 = vsyncadd (!%p2524_p12), %s2157_s14, 4294963200  ;;  %p25_p1 = scmp.ge.s32.totalorder %s3121_s24, 4   ;;  %s4338_s17 = smov %s2927_s18 }
 0x517   : > { %s4339_s18 = smov %s2931_s19  ;;  %s4340_s19 = smov %s3137_s16 }
 0x518   : > { %s4341_s20 = smov %s3121_s24  ;;  %27 = sbr.rel (!%p25_p1) target bundleno = 8 (0x8), region = 117 }
 0x51f   :  { %2162 = vsyncpa [#allocation3], 1 }
 0x520   :  { %2164 = vsyncpa [#allocation3 + $0x1], 1 }
 0x521   :  { %2165 = vsyncpa [#allocation6], 1 }
 0x522   :  { %2166 = vsyncpa [#allocation4], 1 }
 0x523   :  { %2168 = vsyncpa [#allocation4 + $0x1], 1 }

</bundles_post_ra>
